<compile_context>
chip_gen: v7x
topology: tpu7x:2x2x1
jax: 0.10.0
libtpu: 0.0.40
codegen_flags: <defaults>
</compile_context>

<pallas_src>
import functools

import jax
import jax.numpy as jnp
from jax.experimental import pallas as pl
from jax.experimental.pallas import tpu as pltpu

_VMEM_LIMIT_BYTES = 64 * 1024 * 1024   # explicit scoped-VMEM ceiling (v7x guidance)


def _round_up(x, m):
    return ((x + m - 1) // m) * m


# ----------------------- Tiled matmul + bias kernel (Linear) ----------------------- #

def _linear_kernel(x_ref, w_ref, b_ref, o_ref, acc_ref):
    @pl.when(pl.program_id(2) == 0)
    def _():
        acc_ref[...] = jnp.zeros_like(acc_ref)

    acc_ref[...] += jnp.dot(x_ref[...], w_ref[...], preferred_element_type=jnp.float32)

    @pl.when(pl.program_id(2) == pl.num_programs(2) - 1)
    def _():
        o_ref[...] = (acc_ref[...] + b_ref[...]).astype(o_ref.dtype)


def linear(x, w_t, b, *, block_m=256, block_n=512, block_k=512, mxu_dtype=jnp.float32):
    """x: (N, K) @ w_t: (K, V) + b: (1, V) -> (N, V), tiled over M/N/K with padding.

    Non-divisible shapes are zero-padded to the tile (never the whole-operand fallback),
    so the 2D parallel grid and the K accumulator survive arbitrary shapes.
    """
    N0, K0 = x.shape
    V0 = w_t.shape[1]
    bm = min(block_m, _round_up(N0, 8))
    bn = min(block_n, _round_up(V0, 128))
    bk = min(block_k, _round_up(K0, 128))
    M, K, V = _round_up(N0, bm), _round_up(K0, bk), _round_up(V0, bn)

    x_p = x.astype(mxu_dtype)
    w_p = w_t.astype(mxu_dtype)
    if (M, K) != (N0, K0):
        x_p = jnp.pad(x_p, ((0, M - N0), (0, K - K0)))
    if (K, V) != (K0, V0):
        w_p = jnp.pad(w_p, ((0, K - K0), (0, V - V0)))
    b_p = jnp.pad(b, ((0, 0), (0, V - V0))) if V != V0 else b

    out = pl.pallas_call(
        _linear_kernel,
        out_shape=jax.ShapeDtypeStruct((M, V), jnp.float32),
        grid_spec=pltpu.PrefetchScalarGridSpec(
            num_scalar_prefetch=0,
            grid=(M // bm, V // bn, K // bk),
            in_specs=[
                pl.BlockSpec((bm, bk), lambda i, j, k: (i, k)),
                pl.BlockSpec((bk, bn), lambda i, j, k: (k, j)),
                pl.BlockSpec((1, bn), lambda i, j, k: (0, j)),
            ],
            out_specs=pl.BlockSpec((bm, bn), lambda i, j, k: (i, j)),
            scratch_shapes=[pltpu.VMEM((bm, bn), jnp.float32)],
        ),
        compiler_params=pltpu.CompilerParams(
            dimension_semantics=("parallel", "parallel", "arbitrary"),
            vmem_limit_bytes=_VMEM_LIMIT_BYTES),
    )(x_p, w_p, b_p)
    if (M, V) != (N0, V0):
        out = out[:N0, :V0]
    return out


# -------------- Fused 2-layer LSTM recurrence + output head kernel ----------------- #

def _pick_time_chunk(T):
    """Largest convenient chunk that divides T (bounded to keep static unroll modest)."""
    for tc in (32, 16, 8):
        if T % tc == 0:
            return tc
    return T            # small / odd T: single chunk (block dim == full dim)


def _lstm2_kernel(gx0_ref, whh0_ref, w1_ref, b1_ref, wh_ref, bh_ref, h0_ref, c0_ref,
                  logits_ref, hn_ref, cn_ref,
                  h_scr, c_scr, *, hidden_size, t_chunk, batch_chunk):
    b = pl.program_id(0)                 # batch shard ("parallel")
    s = pl.program_id(1)                 # time chunk ("arbitrary", sequential)
    H = hidden_size
    Bc = batch_chunk

    @pl.when(s == 0)
    def _():
        h_scr[...] = h0_ref[:, pl.ds(b * Bc, Bc), :]
        c_scr[...] = c0_ref[:, pl.ds(b * Bc, Bc), :]

    def cell(gates, c_prev):
        # PyTorch gate order: i, f, g, o (combined bias already folded in).
        i_g = jax.nn.sigmoid(gates[:, 0 * H:1 * H])
        f_g = jax.nn.sigmoid(gates[:, 1 * H:2 * H])
        g_g = jnp.tanh(gates[:, 2 * H:3 * H])
        o_g = jax.nn.sigmoid(gates[:, 3 * H:4 * H])
        c_new = f_g * c_prev + i_g * g_g
        h_new = o_g * jnp.tanh(c_new)
        return h_new, c_new

    whh0 = whh0_ref[...]                 # (H, 4H)   VMEM-resident, single copy
    w1 = w1_ref[...]                     # (2H, 4H)  [W_ih1^T ; W_hh1^T] stacked
    wh = wh_ref[...]                     # (H, V)    output head
    mxu_dt = whh0.dtype
    # Hoisted bias broadcast: one broadcast per chunk, not one per unrolled step.
    b1b = jnp.broadcast_to(b1_ref[...], (Bc, 4 * H))

    h0 = h_scr[0]
    h1 = h_scr[1]
    c0 = c_scr[0]
    c1 = c_scr[1]

    h1_steps = []
    # Statically unrolled inner time loop (t_chunk is a small compile-time constant).
    for t in range(t_chunk):
        # layer 0: only the recurrent matmul remains on the sequential chain;
        # gx0 is loaded per-step from VMEM (no chunk-sized live value).
        g0 = gx0_ref[:, t, :] + jnp.dot(h0.astype(mxu_dt), whh0,
                                        preferred_element_type=jnp.float32)
        h0, c0 = cell(g0, c0)
        # layer 1: single fused matmul [h0, h1] @ [W_ih1^T; W_hh1^T].
        h01 = jnp.concatenate([h0.astype(mxu_dt), h1.astype(mxu_dt)], axis=1)
        g1 = jnp.dot(h01, w1, preferred_element_type=jnp.float32) + b1b
        h1, c1 = cell(g1, c1)
        h1_steps.append(h1)

    # Fused output head: one dense MXU matmul + one dense store per chunk
    # (replaces per-step masked h_seq stores and the separate h_seq HBM round-trip).
    h_chunk = jnp.stack(h1_steps, axis=1)                       # (Bc, Tc, H) f32
    logits = jnp.dot(h_chunk.reshape(Bc * t_chunk, H).astype(mxu_dt), wh,
                     preferred_element_type=jnp.float32)
    logits = logits.reshape(Bc, t_chunk, -1) + bh_ref[...]
    logits_ref[...] = logits.astype(logits_ref.dtype)

    h_stack = jnp.stack([h0, h1])
    c_stack = jnp.stack([c0, c1])
    h_scr[...] = h_stack
    c_scr[...] = c_stack

    @pl.when(s == pl.num_programs(1) - 1)                       # final states written once
    def _():
        hn_ref[...] = h_stack.astype(hn_ref.dtype)
        cn_ref[...] = c_stack.astype(cn_ref.dtype)


def lstm2_recurrence(gx0, w_hh0_t, w1_t, b1, w_head_t, b_head, h0, c0, *, batch_shards=1):
    """Fused 2-layer LSTM recurrence + fused Linear head.

    gx0:      (B, T, 4H)  precomputed layer-0 input gates (x @ W_ih0^T + b0), batch-first
    w_hh0_t:  (H, 4H)     layer-0 recurrent weight (pre-transposed)
    w1_t:     (2H, 4H)    [W_ih1^T ; W_hh1^T] stacked (single layer-1 matmul per step)
    b1:       (1, 4H)     layer-1 combined bias
    w_head_t: (H, V)      output head weight (pre-transposed), b_head: (1, V)
    h0, c0:   (2, B, H)   initial states
    returns logits (B, T, V), h_n (2, B, H), c_n (2, B, H)
    """
    B, T, _ = gx0.shape
    H = w_hh0_t.shape[0]
    V = w_head_t.shape[1]
    assert B % batch_shards == 0
    Bc = B // batch_shards
    # batch sharding (v7x 2nd TensorCore) only when the shard keeps sublane-aligned blocks
    assert batch_shards == 1 or Bc % 8 == 0, "batch shard must keep (8,128)-aligned blocks"
    t_chunk = _pick_time_chunk(T)
    n_chunks = T // t_chunk
    kernel = functools.partial(_lstm2_kernel, hidden_size=H, t_chunk=t_chunk, batch_chunk=Bc)

    # Grid-invariant operands: whole-array VMEM residence (single copy, no double buffering).
    def vmem_full():
        return pl.BlockSpec(memory_space=pltpu.MemorySpace.VMEM)

    grid_spec = pltpu.PrefetchScalarGridSpec(
        num_scalar_prefetch=0,
        grid=(batch_shards, n_chunks),
        in_specs=[
            pl.BlockSpec((Bc, t_chunk, 4 * H), lambda b, s: (b, s, 0)),   # gx0: pipelined
            vmem_full(),   # W_hh0^T
            vmem_full(),   # [W_ih1^T ; W_hh1^T]
            vmem_full(),   # b1
            vmem_full(),   # head weight
            vmem_full(),   # head bias
            vmem_full(),   # h0
            vmem_full(),   # c0
        ],
        out_specs=[
            pl.BlockSpec((Bc, t_chunk, V), lambda b, s: (b, s, 0)),       # logits (batch-first)
            pl.BlockSpec((2, Bc, H), lambda b, s: (0, b, 0)),             # h_n
            pl.BlockSpec((2, Bc, H), lambda b, s: (0, b, 0)),             # c_n
        ],
        scratch_shapes=[
            pltpu.VMEM((2, Bc, H), jnp.float32),                          # h carries (2 layers)
            pltpu.VMEM((2, Bc, H), jnp.float32),                          # c carries
        ],
    )

    return pl.pallas_call(
        kernel,
        out_shape=(
            jax.ShapeDtypeStruct((B, T, V), jnp.float32),
            jax.ShapeDtypeStruct((2, B, H), jnp.float32),
            jax.ShapeDtypeStruct((2, B, H), jnp.float32),
        ),
        grid_spec=grid_spec,
        compiler_params=pltpu.CompilerParams(
            dimension_semantics=("parallel", "arbitrary"),   # time recurrence is sequential
            vmem_limit_bytes=_VMEM_LIMIT_BYTES),
    )(gx0, w_hh0_t, w1_t, b1, w_head_t, b_head, h0, c0)


# --------------------------------- Model (wrapper) --------------------------------- #

def init_params(key, vocab_size, hidden_size, num_layers):
    """Deterministic init matching nn.LSTM / nn.Linear shapes (uniform +-1/sqrt(H))."""
    params = {"lstm": [], "linear": {}}
    bound = 1.0 / jnp.sqrt(jnp.float32(hidden_size))
    for layer in range(num_layers):
        in_size = vocab_size if layer == 0 else hidden_size
        key, k1, k2, k3, k4 = jax.random.split(key, 5)
        w_ih = jax.random.uniform(k1, (4 * hidden_size, in_size), jnp.float32, -bound, bound)
        w_hh = jax.random.uniform(k2, (4 * hidden_size, hidden_size), jnp.float32, -bound, bound)
        b_ih = jax.random.uniform(k3, (4 * hidden_size,), jnp.float32, -bound, bound)
        b_hh = jax.random.uniform(k4, (4 * hidden_size,), jnp.float32, -bound, bound)
        params["lstm"].append({
            "w_ih_t": w_ih.T,                              # (in_size, 4H)
            "w_hh_t": w_hh.T,                              # (H, 4H)
            "bias": (b_ih + b_hh).reshape(1, -1),          # (1, 4H) combined bias
        })
    key, k1, k2 = jax.random.split(key, 3)
    w = jax.random.uniform(k1, (vocab_size, hidden_size), jnp.float32, -bound, bound)
    b = jax.random.uniform(k2, (vocab_size,), jnp.float32, -bound, bound)
    params["linear"] = {"w_t": w.T, "b": b.reshape(1, -1)}
    return params


def lstm_model_forward(params, sequence, hs=None, *, mxu_dtype=jnp.float32, batch_shards=1):
    """Mirrors lstm_model.forward (eval mode).

    sequence: (B, T, vocab)  batch_first one-hot floats, like the PyTorch module
    hs: optional (h0, c0), each (num_layers, B, H); zeros if None
    mxu_dtype: matmul operand dtype (bf16 recommended on v6e/v7x; accumulation stays f32)
    batch_shards: >1 only for v7x megacore batch sharding of the recurrence
    returns (output (B*T, vocab), (h_n, c_n))
    """
    B, T, V_in = sequence.shape
    num_layers = len(params["lstm"])
    assert num_layers == 2, "fused recurrence kernel implements the num_layers=2 config"
    H = params["lstm"][0]["w_hh_t"].shape[0]

    if hs is None:
        h0 = jnp.zeros((num_layers, B, H), jnp.float32)
        c0 = jnp.zeros((num_layers, B, H), jnp.float32)
    else:
        h0, c0 = hs

    p0, p1 = params["lstm"]
    x_flat = sequence.reshape(B * T, V_in).astype(jnp.float32)

    # (1) Hoisted layer-0 input projection (+ combined layer-0 bias): one big tiled matmul.
    gx0 = linear(x_flat, p0["w_ih_t"], p0["bias"], mxu_dtype=mxu_dtype).reshape(B, T, 4 * H)

    # (2) Fused two-layer recurrence + fused output head (logits emitted directly).
    w1_t = jnp.concatenate([p1["w_ih_t"], p1["w_hh_t"]], axis=0).astype(mxu_dtype)
    logits3, h_n, c_n = lstm2_recurrence(
        gx0,
        p0["w_hh_t"].astype(mxu_dtype),
        w1_t,
        p1["bias"],
        params["linear"]["w_t"].astype(mxu_dtype),
        params["linear"]["b"],
        h0, c0,
        batch_shards=batch_shards)

    # out.reshape(-1, hidden) @ W^T: already done in-kernel; this reshape is free (batch-first).
    return logits3.reshape(B * T, -1), (h_n, c_n)


# ----------------------------- Pure-JAX reference (check) -------------------------- #

def _reference_forward(params, sequence, hs=None):
    B, T, V = sequence.shape
    L = len(params["lstm"])
    H = params["lstm"][0]["w_hh_t"].shape[0]
    hp = jax.lax.Precision.HIGHEST
    if hs is None:
        h = [jnp.zeros((B, H), jnp.float32) for _ in range(L)]
        c = [jnp.zeros((B, H), jnp.float32) for _ in range(L)]
    else:
        h = [hs[0][l] for l in range(L)]
        c = [hs[1][l] for l in range(L)]
    outs = []
    for t in range(T):
        x = sequence[:, t, :].astype(jnp.float32)
        for l in range(L):
            p = params["lstm"][l]
            g = (jnp.dot(x, p["w_ih_t"], precision=hp)
                 + jnp.dot(h[l], p["w_hh_t"], precision=hp) + p["bias"])
            i_g = jax.nn.sigmoid(g[:, :H])
            f_g = jax.nn.sigmoid(g[:, H:2 * H])
            g_g = jnp.tanh(g[:, 2 * H:3 * H])
            o_g = jax.nn.sigmoid(g[:, 3 * H:])
            c[l] = f_g * c[l] + i_g * g_g
            h[l] = o_g * jnp.tanh(c[l])
            x = h[l]
        outs.append(x)
    out = jnp.stack(outs, axis=1).reshape(B * T, H)
    logits = jnp.dot(out, params["linear"]["w_t"], precision=hp) + params["linear"]["b"]
    return logits, (jnp.stack(h), jnp.stack(c))


if __name__ == "__main__":
    VOCAB_SIZE = 16
    HIDDEN = 32
    NUM_LAYERS = 2
    BATCH = 2
    SEQ = 8

    key = jax.random.PRNGKey(0)
    kp, kx = jax.random.split(key)
    params = init_params(kp, VOCAB_SIZE, HIDDEN, NUM_LAYERS)

    # synthetic one-hot sequence input, shape (B, T, vocab) like the PyTorch module
    ids = jax.random.randint(kx, (BATCH, SEQ), 0, VOCAB_SIZE)
    x = jax.nn.one_hot(ids, VOCAB_SIZE, dtype=jnp.float32)

    logits, (h_n, c_n) = jax.jit(lstm_model_forward)(params, x)
    jax.block_until_ready((logits, h_n, c_n))

    assert logits.shape == (BATCH * SEQ, VOCAB_SIZE)
    assert h_n.shape == (NUM_LAYERS, BATCH, HIDDEN)
    assert c_n.shape == (NUM_LAYERS, BATCH, HIDDEN)

    # structural correctness check against a pure-JAX reference (loose tol: matmul paths differ)
    ref_logits, (ref_h, ref_c) = _reference_forward(params, x)
    assert bool(jnp.allclose(logits, ref_logits, atol=2e-2, rtol=2e-2))
    assert bool(jnp.allclose(h_n, ref_h, atol=2e-2, rtol=2e-2))
    assert bool(jnp.allclose(c_n, ref_c, atol=2e-2, rtol=2e-2))

    # bf16 MXU-operand variant (the v6e/v7x production knob): f32 accumulation/elementwise.
    fwd_bf16 = jax.jit(functools.partial(lstm_model_forward, mxu_dtype=jnp.bfloat16))
    logits_bf, (h_bf, c_bf) = fwd_bf16(params, x)
    jax.block_until_ready((logits_bf, h_bf, c_bf))
    assert logits_bf.shape == logits.shape
    assert bool(jnp.allclose(logits_bf, logits, atol=1e-1, rtol=1e-1))

    print("KERNEL_OK")
</pallas_src>

<mosaic_0001>
module attributes {stable_mosaic.version = 11 : i64} {
  func.func @_linear_kernel(%arg0: i32, %arg1: i32, %arg2: i32, %arg3: memref<16x128xf32, #tpu.memory_space<vmem>>, %arg4: memref<128x128xf32, #tpu.memory_space<vmem>>, %arg5: memref<1x128xf32, #tpu.memory_space<vmem>>, %arg6: memref<16x128xf32, #tpu.memory_space<vmem>>, %arg7: memref<16x128xf32, #tpu.memory_space<vmem>>) attributes {dimension_semantics = [#tpu.dimension_semantics<parallel>, #tpu.dimension_semantics<parallel>, #tpu.dimension_semantics<arbitrary>], iteration_bounds = array<i64: 1, 1, 1>, scalar_prefetch = 0 : i64, scratch_operands = 1 : i64, tpu.core_type = #tpu.core_type<tc>, window_params = [{transform_indices = @transform_0, window_bounds = array<i64: 16, 128>}, {transform_indices = @transform_1, window_bounds = array<i64: 128, 128>}, {transform_indices = @transform_2, window_bounds = array<i64: 1, 128>}, {transform_indices = @transform_3, window_bounds = array<i64: 16, 128>}]} {
    %c0_i32 = arith.constant 0 : i32
    %0 = arith.cmpi eq, %arg2, %c0_i32 : i32
    %1 = arith.extui %0 : i1 to i32
    %c0_i32_0 = arith.constant 0 : i32
    %2 = arith.cmpi ne, %1, %c0_i32_0 : i32
    scf.if %2 {
      %cst_10 = arith.constant 0.000000e+00 : f32
      %12 = vector.broadcast %cst_10 : f32 to vector<16x128xf32>
      %c0_11 = arith.constant 0 : index
      %c0_12 = arith.constant 0 : index
      %13 = vector.load %arg7[%c0_11, %c0_12] : memref<16x128xf32, #tpu.memory_space<vmem>>, vector<16x128xf32>
      tpu.vector_store %arg7[%c0_11, %c0_12], %12 {strides = array<i32>} : memref<16x128xf32, #tpu.memory_space<vmem>>, vector<16x128xf32>,
    } else {
    }
    %c0 = arith.constant 0 : index
    %c0_1 = arith.constant 0 : index
    %3 = vector.load %arg7[%c0, %c0_1] : memref<16x128xf32, #tpu.memory_space<vmem>>, vector<16x128xf32>
    %c0_2 = arith.constant 0 : index
    %c0_3 = arith.constant 0 : index
    %4 = vector.load %arg3[%c0_2, %c0_3] : memref<16x128xf32, #tpu.memory_space<vmem>>, vector<16x128xf32>
    %c0_4 = arith.constant 0 : index
    %c0_5 = arith.constant 0 : index
    %5 = vector.load %arg4[%c0_4, %c0_5] : memref<128x128xf32, #tpu.memory_space<vmem>>, vector<128x128xf32>
    %cst = arith.constant dense<0.000000e+00> : vector<16x128xf32>
    %6 = tpu.matmul %4, %5, %cst {dimension_numbers = #tpu.dot_dimension_numbers<[1], [0], [0], [1], [0, 0, 1, 1], [], []>} : vector<16x128xf32>, vector<128x128xf32>, vector<16x128xf32> -> vector<16x128xf32>
    %7 = arith.addf %3, %6 : vector<16x128xf32>
    %c0_6 = arith.constant 0 : index
    %c0_7 = arith.constant 0 : index
    %8 = vector.load %arg7[%c0_6, %c0_7] : memref<16x128xf32, #tpu.memory_space<vmem>>, vector<16x128xf32>
    tpu.vector_store %arg7[%c0_6, %c0_7], %7 {strides = array<i32>} : memref<16x128xf32, #tpu.memory_space<vmem>>, vector<16x128xf32>,
    %c0_i32_8 = arith.constant 0 : i32
    %9 = arith.cmpi eq, %arg2, %c0_i32_8 : i32
    %10 = arith.extui %9 : i1 to i32
    %c0_i32_9 = arith.constant 0 : i32
    %11 = arith.cmpi ne, %10, %c0_i32_9 : i32
    scf.if %11 {
      %c0_10 = arith.constant 0 : index
      %c0_11 = arith.constant 0 : index
      %12 = vector.load %arg7[%c0_10, %c0_11] : memref<16x128xf32, #tpu.memory_space<vmem>>, vector<16x128xf32>
      %c0_12 = arith.constant 0 : index
      %c0_13 = arith.constant 0 : index
      %13 = vector.load %arg5[%c0_12, %c0_13] : memref<1x128xf32, #tpu.memory_space<vmem>>, vector<1x128xf32>
      %14 = vector.broadcast %13 : vector<1x128xf32> to vector<16x128xf32>
      %15 = arith.addf %12, %14 : vector<16x128xf32>
      %c0_14 = arith.constant 0 : index
      %c0_15 = arith.constant 0 : index
      %16 = vector.load %arg6[%c0_14, %c0_15] : memref<16x128xf32, #tpu.memory_space<vmem>>, vector<16x128xf32>
      tpu.vector_store %arg6[%c0_14, %c0_15], %15 {strides = array<i32>} : memref<16x128xf32, #tpu.memory_space<vmem>>, vector<16x128xf32>,
    } else {
    }
    return
  }
  func.func @transform_0(%arg0: i32, %arg1: i32, %arg2: i32) -> (i32, i32) {
    %c0_i32 = arith.constant 0 : i32
    return %arg0, %arg2 : i32, i32
  }
  func.func @transform_1(%arg0: i32, %arg1: i32, %arg2: i32) -> (i32, i32) {
    %c0_i32 = arith.constant 0 : i32
    return %arg2, %arg1 : i32, i32
  }
  func.func @transform_2(%arg0: i32, %arg1: i32, %arg2: i32) -> (i32, i32) {
    %c0_i32 = arith.constant 0 : i32
    %c0_i32_0 = arith.constant 0 : i32
    return %c0_i32, %arg1 : i32, i32
  }
  func.func @transform_3(%arg0: i32, %arg1: i32, %arg2: i32) -> (i32, i32) {
    %c0_i32 = arith.constant 0 : i32
    return %arg0, %arg1 : i32, i32
  }
}

module attributes {stable_mosaic.version = 11 : i64} {
  func.func @_lstm2_kernel(%arg0: i32, %arg1: i32, %arg2: memref<2x8x128xf32, #tpu.memory_space<vmem>>, %arg3: memref<32x128xf32, #tpu.memory_space<vmem>>, %arg4: memref<64x128xf32, #tpu.memory_space<vmem>>, %arg5: memref<1x128xf32, #tpu.memory_space<vmem>>, %arg6: memref<32x16xf32, #tpu.memory_space<vmem>>, %arg7: memref<1x16xf32, #tpu.memory_space<vmem>>, %arg8: memref<2x2x32xf32, #tpu.memory_space<vmem>>, %arg9: memref<2x2x32xf32, #tpu.memory_space<vmem>>, %arg10: memref<2x8x16xf32, #tpu.memory_space<vmem>>, %arg11: memref<2x2x32xf32, #tpu.memory_space<vmem>>, %arg12: memref<2x2x32xf32, #tpu.memory_space<vmem>>, %arg13: memref<2x2x32xf32, #tpu.memory_space<vmem>>, %arg14: memref<2x2x32xf32, #tpu.memory_space<vmem>>) attributes {dimension_semantics = [#tpu.dimension_semantics<parallel>, #tpu.dimension_semantics<arbitrary>], iteration_bounds = array<i64: 1, 1>, scalar_prefetch = 0 : i64, scratch_operands = 2 : i64, tpu.core_type = #tpu.core_type<tc>, window_params = [{transform_indices = @transform_0, window_bounds = array<i64: 2, 8, 128>}, {pipeline_mode = #tpu.pipeline_mode<synchronous>, transform_indices = @transform_1, window_bounds = array<i64: 32, 128>}, {pipeline_mode = #tpu.pipeline_mode<synchronous>, transform_indices = @transform_2, window_bounds = array<i64: 64, 128>}, {pipeline_mode = #tpu.pipeline_mode<synchronous>, transform_indices = @transform_3, window_bounds = array<i64: 1, 128>}, {pipeline_mode = #tpu.pipeline_mode<synchronous>, transform_indices = @transform_4, window_bounds = array<i64: 32, 16>}, {pipeline_mode = #tpu.pipeline_mode<synchronous>, transform_indices = @transform_5, window_bounds = array<i64: 1, 16>}, {pipeline_mode = #tpu.pipeline_mode<synchronous>, transform_indices = @transform_6, window_bounds = array<i64: 2, 2, 32>}, {pipeline_mode = #tpu.pipeline_mode<synchronous>, transform_indices = @transform_7, window_bounds = array<i64: 2, 2, 32>}, {transform_indices = @transform_8, window_bounds = array<i64: 2, 8, 16>}, {transform_indices = @transform_9, window_bounds = array<i64: 2, 2, 32>}, {transform_indices = @transform_10, window_bounds = array<i64: 2, 2, 32>}]} {
    %c0_i32 = arith.constant 0 : i32
    %0 = arith.cmpi eq, %arg1, %c0_i32 : i32
    %1 = arith.extui %0 : i1 to i32
    %c0_i32_0 = arith.constant 0 : i32
    %2 = arith.cmpi ne, %1, %c0_i32_0 : i32
    scf.if %2 {
      %c2_i32 = arith.constant 2 : i32
      %501 = arith.muli %arg0, %c2_i32 : i32
      %c0_114 = arith.constant 0 : index
      %502 = arith.index_cast %501 : i32 to index
      %c0_115 = arith.constant 0 : index
      %503 = vector.load %arg8[%c0_114, %502, %c0_115] : memref<2x2x32xf32, #tpu.memory_space<vmem>>, vector<2x2x32xf32>
      %c0_116 = arith.constant 0 : index
      %c0_117 = arith.constant 0 : index
      %c0_118 = arith.constant 0 : index
      %504 = vector.load %arg13[%c0_116, %c0_117, %c0_118] : memref<2x2x32xf32, #tpu.memory_space<vmem>>, vector<2x2x32xf32>
      tpu.vector_store %arg13[%c0_116, %c0_117, %c0_118], %503 {strides = array<i32>} : memref<2x2x32xf32, #tpu.memory_space<vmem>>, vector<2x2x32xf32>,
      %c2_i32_119 = arith.constant 2 : i32
      %505 = arith.muli %arg0, %c2_i32_119 : i32
      %c0_120 = arith.constant 0 : index
      %506 = arith.index_cast %505 : i32 to index
      %c0_121 = arith.constant 0 : index
      %507 = vector.load %arg9[%c0_120, %506, %c0_121] : memref<2x2x32xf32, #tpu.memory_space<vmem>>, vector<2x2x32xf32>
      %c0_122 = arith.constant 0 : index
      %c0_123 = arith.constant 0 : index
      %c0_124 = arith.constant 0 : index
      %508 = vector.load %arg14[%c0_122, %c0_123, %c0_124] : memref<2x2x32xf32, #tpu.memory_space<vmem>>, vector<2x2x32xf32>
      tpu.vector_store %arg14[%c0_122, %c0_123, %c0_124], %507 {strides = array<i32>} : memref<2x2x32xf32, #tpu.memory_space<vmem>>, vector<2x2x32xf32>,
    } else {
    }
    %c0 = arith.constant 0 : index
    %c0_1 = arith.constant 0 : index
    %3 = vector.load %arg3[%c0, %c0_1] : memref<32x128xf32, #tpu.memory_space<vmem>>, vector<32x128xf32>
    %c0_2 = arith.constant 0 : index
    %c0_3 = arith.constant 0 : index
    %4 = vector.load %arg4[%c0_2, %c0_3] : memref<64x128xf32, #tpu.memory_space<vmem>>, vector<64x128xf32>
    %c0_4 = arith.constant 0 : index
    %c0_5 = arith.constant 0 : index
    %5 = vector.load %arg6[%c0_4, %c0_5] : memref<32x16xf32, #tpu.memory_space<vmem>>, vector<32x16xf32>
    %c0_6 = arith.constant 0 : index
    %c0_7 = arith.constant 0 : index
    %6 = vector.load %arg5[%c0_6, %c0_7] : memref<1x128xf32, #tpu.memory_space<vmem>>, vector<1x128xf32>
    %7 = vector.shape_cast %6 : vector<1x128xf32> to vector<1x128xf32>
    %8 = vector.broadcast %7 : vector<1x128xf32> to vector<2x128xf32>
    %c0_8 = arith.constant 0 : index
    %c0_9 = arith.constant 0 : index
    %c0_10 = arith.constant 0 : index
    %9 = vector.load %arg13[%c0_8, %c0_9, %c0_10] : memref<2x2x32xf32, #tpu.memory_space<vmem>>, vector<1x2x32xf32>
    %10 = vector.shape_cast %9 : vector<1x2x32xf32> to vector<2x32xf32>
    %c1 = arith.constant 1 : index
    %c0_11 = arith.constant 0 : index
    %c0_12 = arith.constant 0 : index
    %11 = vector.load %arg13[%c1, %c0_11, %c0_12] : memref<2x2x32xf32, #tpu.memory_space<vmem>>, vector<1x2x32xf32>
    %12 = vector.shape_cast %11 : vector<1x2x32xf32> to vector<2x32xf32>
    %c0_13 = arith.constant 0 : index
    %c0_14 = arith.constant 0 : index
    %c0_15 = arith.constant 0 : index
    %13 = vector.load %arg14[%c0_13, %c0_14, %c0_15] : memref<2x2x32xf32, #tpu.memory_space<vmem>>, vector<1x2x32xf32>
    %14 = vector.shape_cast %13 : vector<1x2x32xf32> to vector<2x32xf32>
    %c1_16 = arith.constant 1 : index
    %c0_17 = arith.constant 0 : index
    %c0_18 = arith.constant 0 : index
    %15 = vector.load %arg14[%c1_16, %c0_17, %c0_18] : memref<2x2x32xf32, #tpu.memory_space<vmem>>, vector<1x2x32xf32>
    %16 = vector.shape_cast %15 : vector<1x2x32xf32> to vector<2x32xf32>
    %c0_19 = arith.constant 0 : index
    %c0_20 = arith.constant 0 : index
    %c0_21 = arith.constant 0 : index
    %17 = vector.load %arg2[%c0_19, %c0_20, %c0_21] : memref<2x8x128xf32, #tpu.memory_space<vmem>>, vector<2x1x128xf32>
    %18 = vector.shape_cast %17 : vector<2x1x128xf32> to vector<2x128xf32>
    %cst = arith.constant dense<0.000000e+00> : vector<2x128xf32>
    %19 = tpu.matmul %10, %3, %cst {dimension_numbers = #tpu.dot_dimension_numbers<[1], [0], [0], [1], [0, 0, 1, 1], [], []>} : vector<2x32xf32>, vector<32x128xf32>, vector<2x128xf32> -> vector<2x128xf32>
    %20 = arith.addf %18, %19 : vector<2x128xf32>
    %21 = vector.extract_strided_slice %20 {offsets = [0, 0], sizes = [2, 32], strides = [1, 1]} : vector<2x128xf32> to vector<2x32xf32>
    %22 = arith.negf %21 : vector<2x32xf32>
    %23 = math.exp %22 : vector<2x32xf32>
    %cst_22 = arith.constant 1.000000e+00 : f32
    %24 = vector.broadcast %cst_22 : f32 to vector<2x32xf32>
    %25 = arith.addf %24, %23 : vector<2x32xf32>
    %26 = arith.divf %24, %25 : vector<2x32xf32>
    %27 = vector.extract_strided_slice %20 {offsets = [0, 32], sizes = [2, 32], strides = [1, 1]} : vector<2x128xf32> to vector<2x32xf32>
    %28 = arith.negf %27 : vector<2x32xf32>
    %29 = math.exp %28 : vector<2x32xf32>
    %cst_23 = arith.constant 1.000000e+00 : f32
    %30 = vector.broadcast %cst_23 : f32 to vector<2x32xf32>
    %31 = arith.addf %30, %29 : vector<2x32xf32>
    %32 = arith.divf %30, %31 : vector<2x32xf32>
    %33 = vector.extract_strided_slice %20 {offsets = [0, 64], sizes = [2, 32], strides = [1, 1]} : vector<2x128xf32> to vector<2x32xf32>
    %34 = math.tanh %33 : vector<2x32xf32>
    %35 = vector.extract_strided_slice %20 {offsets = [0, 96], sizes = [2, 32], strides = [1, 1]} : vector<2x128xf32> to vector<2x32xf32>
    %36 = arith.negf %35 : vector<2x32xf32>
    %37 = math.exp %36 : vector<2x32xf32>
    %cst_24 = arith.constant 1.000000e+00 : f32
    %38 = vector.broadcast %cst_24 : f32 to vector<2x32xf32>
    %39 = arith.addf %38, %37 : vector<2x32xf32>
    %40 = arith.divf %38, %39 : vector<2x32xf32>
    %41 = arith.mulf %32, %14 : vector<2x32xf32>
    %42 = arith.mulf %26, %34 : vector<2x32xf32>
    %43 = arith.addf %41, %42 : vector<2x32xf32>
    %44 = math.tanh %43 : vector<2x32xf32>
    %45 = arith.mulf %40, %44 : vector<2x32xf32>
    %46 = tpu.concatenate %45, %12 in 1 : vector<2x32xf32>, vector<2x32xf32> -> vector<2x64xf32>
    %cst_25 = arith.constant dense<0.000000e+00> : vector<2x128xf32>
    %47 = tpu.matmul %46, %4, %cst_25 {dimension_numbers = #tpu.dot_dimension_numbers<[1], [0], [0], [1], [0, 0, 1, 1], [], []>} : vector<2x64xf32>, vector<64x128xf32>, vector<2x128xf32> -> vector<2x128xf32>
    %48 = arith.addf %47, %8 : vector<2x128xf32>
    %49 = vector.extract_strided_slice %48 {offsets = [0, 0], sizes = [2, 32], strides = [1, 1]} : vector<2x128xf32> to vector<2x32xf32>
    %50 = arith.negf %49 : vector<2x32xf32>
    %51 = math.exp %50 : vector<2x32xf32>
    %cst_26 = arith.constant 1.000000e+00 : f32
    %52 = vector.broadcast %cst_26 : f32 to vector<2x32xf32>
    %53 = arith.addf %52, %51 : vector<2x32xf32>
    %54 = arith.divf %52, %53 : vector<2x32xf32>
    %55 = vector.extract_strided_slice %48 {offsets = [0, 32], sizes = [2, 32], strides = [1, 1]} : vector<2x128xf32> to vector<2x32xf32>
    %56 = arith.negf %55 : vector<2x32xf32>
    %57 = math.exp %56 : vector<2x32xf32>
    %cst_27 = arith.constant 1.000000e+00 : f32
    %58 = vector.broadcast %cst_27 : f32 to vector<2x32xf32>
    %59 = arith.addf %58, %57 : vector<2x32xf32>
    %60 = arith.divf %58, %59 : vector<2x32xf32>
    %61 = vector.extract_strided_slice %48 {offsets = [0, 64], sizes = [2, 32], strides = [1, 1]} : vector<2x128xf32> to vector<2x32xf32>
    %62 = math.tanh %61 : vector<2x32xf32>
    %63 = vector.extract_strided_slice %48 {offsets = [0, 96], sizes = [2, 32], strides = [1, 1]} : vector<2x128xf32> to vector<2x32xf32>
    %64 = arith.negf %63 : vector<2x32xf32>
    %65 = math.exp %64 : vector<2x32xf32>
    %cst_28 = arith.constant 1.000000e+00 : f32
    %66 = vector.broadcast %cst_28 : f32 to vector<2x32xf32>
    %67 = arith.addf %66, %65 : vector<2x32xf32>
    %68 = arith.divf %66, %67 : vector<2x32xf32>
    %69 = arith.mulf %60, %16 : vector<2x32xf32>
    %70 = arith.mulf %54, %62 : vector<2x32xf32>
    %71 = arith.addf %69, %70 : vector<2x32xf32>
    %72 = math.tanh %71 : vector<2x32xf32>
    %73 = arith.mulf %68, %72 : vector<2x32xf32>
    %c0_29 = arith.constant 0 : index
    %c1_30 = arith.constant 1 : index
    %c0_31 = arith.constant 0 : index
    %74 = vector.load %arg2[%c0_29, %c1_30, %c0_31] : memref<2x8x128xf32, #tpu.memory_space<vmem>>, vector<2x1x128xf32>
    %75 = vector.shape_cast %74 : vector<2x1x128xf32> to vector<2x128xf32>
    %cst_32 = arith.constant dense<0.000000e+00> : vector<2x128xf32>
    %76 = tpu.matmul %45, %3, %cst_32 {dimension_numbers = #tpu.dot_dimension_numbers<[1], [0], [0], [1], [0, 0, 1, 1], [], []>} : vector<2x32xf32>, vector<32x128xf32>, vector<2x128xf32> -> vector<2x128xf32>
    %77 = arith.addf %75, %76 : vector<2x128xf32>
    %78 = vector.extract_strided_slice %77 {offsets = [0, 0], sizes = [2, 32], strides = [1, 1]} : vector<2x128xf32> to vector<2x32xf32>
    %79 = arith.negf %78 : vector<2x32xf32>
    %80 = math.exp %79 : vector<2x32xf32>
    %cst_33 = arith.constant 1.000000e+00 : f32
    %81 = vector.broadcast %cst_33 : f32 to vector<2x32xf32>
    %82 = arith.addf %81, %80 : vector<2x32xf32>
    %83 = arith.divf %81, %82 : vector<2x32xf32>
    %84 = vector.extract_strided_slice %77 {offsets = [0, 32], sizes = [2, 32], strides = [1, 1]} : vector<2x128xf32> to vector<2x32xf32>
    %85 = arith.negf %84 : vector<2x32xf32>
    %86 = math.exp %85 : vector<2x32xf32>
    %cst_34 = arith.constant 1.000000e+00 : f32
    %87 = vector.broadcast %cst_34 : f32 to vector<2x32xf32>
    %88 = arith.addf %87, %86 : vector<2x32xf32>
    %89 = arith.divf %87, %88 : vector<2x32xf32>
    %90 = vector.extract_strided_slice %77 {offsets = [0, 64], sizes = [2, 32], strides = [1, 1]} : vector<2x128xf32> to vector<2x32xf32>
    %91 = math.tanh %90 : vector<2x32xf32>
    %92 = vector.extract_strided_slice %77 {offsets = [0, 96], sizes = [2, 32], strides = [1, 1]} : vector<2x128xf32> to vector<2x32xf32>
    %93 = arith.negf %92 : vector<2x32xf32>
    %94 = math.exp %93 : vector<2x32xf32>
    %cst_35 = arith.constant 1.000000e+00 : f32
    %95 = vector.broadcast %cst_35 : f32 to vector<2x32xf32>
    %96 = arith.addf %95, %94 : vector<2x32xf32>
    %97 = arith.divf %95, %96 : vector<2x32xf32>
    %98 = arith.mulf %89, %43 : vector<2x32xf32>
    %99 = arith.mulf %83, %91 : vector<2x32xf32>
    %100 = arith.addf %98, %99 : vector<2x32xf32>
    %101 = math.tanh %100 : vector<2x32xf32>
    %102 = arith.mulf %97, %101 : vector<2x32xf32>
    %103 = tpu.concatenate %102, %73 in 1 : vector<2x32xf32>, vector<2x32xf32> -> vector<2x64xf32>
    %cst_36 = arith.constant dense<0.000000e+00> : vector<2x128xf32>
    %104 = tpu.matmul %103, %4, %cst_36 {dimension_numbers = #tpu.dot_dimension_numbers<[1], [0], [0], [1], [0, 0, 1, 1], [], []>} : vector<2x64xf32>, vector<64x128xf32>, vector<2x128xf32> -> vector<2x128xf32>
    %105 = arith.addf %104, %8 : vector<2x128xf32>
    %106 = vector.extract_strided_slice %105 {offsets = [0, 0], sizes = [2, 32], strides = [1, 1]} : vector<2x128xf32> to vector<2x32xf32>
    %107 = arith.negf %106 : vector<2x32xf32>
    %108 = math.exp %107 : vector<2x32xf32>
    %cst_37 = arith.constant 1.000000e+00 : f32
    %109 = vector.broadcast %cst_37 : f32 to vector<2x32xf32>
    %110 = arith.addf %109, %108 : vector<2x32xf32>
    %111 = arith.divf %109, %110 : vector<2x32xf32>
    %112 = vector.extract_strided_slice %105 {offsets = [0, 32], sizes = [2, 32], strides = [1, 1]} : vector<2x128xf32> to vector<2x32xf32>
    %113 = arith.negf %112 : vector<2x32xf32>
    %114 = math.exp %113 : vector<2x32xf32>
    %cst_38 = arith.constant 1.000000e+00 : f32
    %115 = vector.broadcast %cst_38 : f32 to vector<2x32xf32>
    %116 = arith.addf %115, %114 : vector<2x32xf32>
    %117 = arith.divf %115, %116 : vector<2x32xf32>
    %118 = vector.extract_strided_slice %105 {offsets = [0, 64], sizes = [2, 32], strides = [1, 1]} : vector<2x128xf32> to vector<2x32xf32>
    %119 = math.tanh %118 : vector<2x32xf32>
    %120 = vector.extract_strided_slice %105 {offsets = [0, 96], sizes = [2, 32], strides = [1, 1]} : vector<2x128xf32> to vector<2x32xf32>
    %121 = arith.negf %120 : vector<2x32xf32>
    %122 = math.exp %121 : vector<2x32xf32>
    %cst_39 = arith.constant 1.000000e+00 : f32
    %123 = vector.broadcast %cst_39 : f32 to vector<2x32xf32>
    %124 = arith.addf %123, %122 : vector<2x32xf32>
    %125 = arith.divf %123, %124 : vector<2x32xf32>
    %126 = arith.mulf %117, %71 : vector<2x32xf32>
    %127 = arith.mulf %111, %119 : vector<2x32xf32>
    %128 = arith.addf %126, %127 : vector<2x32xf32>
    %129 = math.tanh %128 : vector<2x32xf32>
    %130 = arith.mulf %125, %129 : vector<2x32xf32>
    %c0_40 = arith.constant 0 : index
    %c2 = arith.constant 2 : index
    %c0_41 = arith.constant 0 : index
    %131 = vector.load %arg2[%c0_40, %c2, %c0_41] : memref<2x8x128xf32, #tpu.memory_space<vmem>>, vector<2x1x128xf32>
    %132 = vector.shape_cast %131 : vector<2x1x128xf32> to vector<2x128xf32>
    %cst_42 = arith.constant dense<0.000000e+00> : vector<2x128xf32>
    %133 = tpu.matmul %102, %3, %cst_42 {dimension_numbers = #tpu.dot_dimension_numbers<[1], [0], [0], [1], [0, 0, 1, 1], [], []>} : vector<2x32xf32>, vector<32x128xf32>, vector<2x128xf32> -> vector<2x128xf32>
    %134 = arith.addf %132, %133 : vector<2x128xf32>
    %135 = vector.extract_strided_slice %134 {offsets = [0, 0], sizes = [2, 32], strides = [1, 1]} : vector<2x128xf32> to vector<2x32xf32>
    %136 = arith.negf %135 : vector<2x32xf32>
    %137 = math.exp %136 : vector<2x32xf32>
    %cst_43 = arith.constant 1.000000e+00 : f32
    %138 = vector.broadcast %cst_43 : f32 to vector<2x32xf32>
    %139 = arith.addf %138, %137 : vector<2x32xf32>
    %140 = arith.divf %138, %139 : vector<2x32xf32>
    %141 = vector.extract_strided_slice %134 {offsets = [0, 32], sizes = [2, 32], strides = [1, 1]} : vector<2x128xf32> to vector<2x32xf32>
    %142 = arith.negf %141 : vector<2x32xf32>
    %143 = math.exp %142 : vector<2x32xf32>
    %cst_44 = arith.constant 1.000000e+00 : f32
    %144 = vector.broadcast %cst_44 : f32 to vector<2x32xf32>
    %145 = arith.addf %144, %143 : vector<2x32xf32>
    %146 = arith.divf %144, %145 : vector<2x32xf32>
    %147 = vector.extract_strided_slice %134 {offsets = [0, 64], sizes = [2, 32], strides = [1, 1]} : vector<2x128xf32> to vector<2x32xf32>
    %148 = math.tanh %147 : vector<2x32xf32>
    %149 = vector.extract_strided_slice %134 {offsets = [0, 96], sizes = [2, 32], strides = [1, 1]} : vector<2x128xf32> to vector<2x32xf32>
    %150 = arith.negf %149 : vector<2x32xf32>
    %151 = math.exp %150 : vector<2x32xf32>
    %cst_45 = arith.constant 1.000000e+00 : f32
    %152 = vector.broadcast %cst_45 : f32 to vector<2x32xf32>
    %153 = arith.addf %152, %151 : vector<2x32xf32>
    %154 = arith.divf %152, %153 : vector<2x32xf32>
    %155 = arith.mulf %146, %100 : vector<2x32xf32>
    %156 = arith.mulf %140, %148 : vector<2x32xf32>
    %157 = arith.addf %155, %156 : vector<2x32xf32>
    %158 = math.tanh %157 : vector<2x32xf32>
    %159 = arith.mulf %154, %158 : vector<2x32xf32>
    %160 = tpu.concatenate %159, %130 in 1 : vector<2x32xf32>, vector<2x32xf32> -> vector<2x64xf32>
    %cst_46 = arith.constant dense<0.000000e+00> : vector<2x128xf32>
    %161 = tpu.matmul %160, %4, %cst_46 {dimension_numbers = #tpu.dot_dimension_numbers<[1], [0], [0], [1], [0, 0, 1, 1], [], []>} : vector<2x64xf32>, vector<64x128xf32>, vector<2x128xf32> -> vector<2x128xf32>
    %162 = arith.addf %161, %8 : vector<2x128xf32>
    %163 = vector.extract_strided_slice %162 {offsets = [0, 0], sizes = [2, 32], strides = [1, 1]} : vector<2x128xf32> to vector<2x32xf32>
    %164 = arith.negf %163 : vector<2x32xf32>
    %165 = math.exp %164 : vector<2x32xf32>
    %cst_47 = arith.constant 1.000000e+00 : f32
    %166 = vector.broadcast %cst_47 : f32 to vector<2x32xf32>
    %167 = arith.addf %166, %165 : vector<2x32xf32>
    %168 = arith.divf %166, %167 : vector<2x32xf32>
    %169 = vector.extract_strided_slice %162 {offsets = [0, 32], sizes = [2, 32], strides = [1, 1]} : vector<2x128xf32> to vector<2x32xf32>
    %170 = arith.negf %169 : vector<2x32xf32>
    %171 = math.exp %170 : vector<2x32xf32>
    %cst_48 = arith.constant 1.000000e+00 : f32
    %172 = vector.broadcast %cst_48 : f32 to vector<2x32xf32>
    %173 = arith.addf %172, %171 : vector<2x32xf32>
    %174 = arith.divf %172, %173 : vector<2x32xf32>
    %175 = vector.extract_strided_slice %162 {offsets = [0, 64], sizes = [2, 32], strides = [1, 1]} : vector<2x128xf32> to vector<2x32xf32>
    %176 = math.tanh %175 : vector<2x32xf32>
    %177 = vector.extract_strided_slice %162 {offsets = [0, 96], sizes = [2, 32], strides = [1, 1]} : vector<2x128xf32> to vector<2x32xf32>
    %178 = arith.negf %177 : vector<2x32xf32>
    %179 = math.exp %178 : vector<2x32xf32>
    %cst_49 = arith.constant 1.000000e+00 : f32
    %180 = vector.broadcast %cst_49 : f32 to vector<2x32xf32>
    %181 = arith.addf %180, %179 : vector<2x32xf32>
    %182 = arith.divf %180, %181 : vector<2x32xf32>
    %183 = arith.mulf %174, %128 : vector<2x32xf32>
    %184 = arith.mulf %168, %176 : vector<2x32xf32>
    %185 = arith.addf %183, %184 : vector<2x32xf32>
    %186 = math.tanh %185 : vector<2x32xf32>
    %187 = arith.mulf %182, %186 : vector<2x32xf32>
    %c0_50 = arith.constant 0 : index
    %c3 = arith.constant 3 : index
    %c0_51 = arith.constant 0 : index
    %188 = vector.load %arg2[%c0_50, %c3, %c0_51] : memref<2x8x128xf32, #tpu.memory_space<vmem>>, vector<2x1x128xf32>
    %189 = vector.shape_cast %188 : vector<2x1x128xf32> to vector<2x128xf32>
    %cst_52 = arith.constant dense<0.000000e+00> : vector<2x128xf32>
    %190 = tpu.matmul %159, %3, %cst_52 {dimension_numbers = #tpu.dot_dimension_numbers<[1], [0], [0], [1], [0, 0, 1, 1], [], []>} : vector<2x32xf32>, vector<32x128xf32>, vector<2x128xf32> -> vector<2x128xf32>
    %191 = arith.addf %189, %190 : vector<2x128xf32>
    %192 = vector.extract_strided_slice %191 {offsets = [0, 0], sizes = [2, 32], strides = [1, 1]} : vector<2x128xf32> to vector<2x32xf32>
    %193 = arith.negf %192 : vector<2x32xf32>
    %194 = math.exp %193 : vector<2x32xf32>
    %cst_53 = arith.constant 1.000000e+00 : f32
    %195 = vector.broadcast %cst_53 : f32 to vector<2x32xf32>
    %196 = arith.addf %195, %194 : vector<2x32xf32>
    %197 = arith.divf %195, %196 : vector<2x32xf32>
    %198 = vector.extract_strided_slice %191 {offsets = [0, 32], sizes = [2, 32], strides = [1, 1]} : vector<2x128xf32> to vector<2x32xf32>
    %199 = arith.negf %198 : vector<2x32xf32>
    %200 = math.exp %199 : vector<2x32xf32>
    %cst_54 = arith.constant 1.000000e+00 : f32
    %201 = vector.broadcast %cst_54 : f32 to vector<2x32xf32>
    %202 = arith.addf %201, %200 : vector<2x32xf32>
    %203 = arith.divf %201, %202 : vector<2x32xf32>
    %204 = vector.extract_strided_slice %191 {offsets = [0, 64], sizes = [2, 32], strides = [1, 1]} : vector<2x128xf32> to vector<2x32xf32>
    %205 = math.tanh %204 : vector<2x32xf32>
    %206 = vector.extract_strided_slice %191 {offsets = [0, 96], sizes = [2, 32], strides = [1, 1]} : vector<2x128xf32> to vector<2x32xf32>
    %207 = arith.negf %206 : vector<2x32xf32>
    %208 = math.exp %207 : vector<2x32xf32>
    %cst_55 = arith.constant 1.000000e+00 : f32
    %209 = vector.broadcast %cst_55 : f32 to vector<2x32xf32>
    %210 = arith.addf %209, %208 : vector<2x32xf32>
    %211 = arith.divf %209, %210 : vector<2x32xf32>
    %212 = arith.mulf %203, %157 : vector<2x32xf32>
    %213 = arith.mulf %197, %205 : vector<2x32xf32>
    %214 = arith.addf %212, %213 : vector<2x32xf32>
    %215 = math.tanh %214 : vector<2x32xf32>
    %216 = arith.mulf %211, %215 : vector<2x32xf32>
    %217 = tpu.concatenate %216, %187 in 1 : vector<2x32xf32>, vector<2x32xf32> -> vector<2x64xf32>
    %cst_56 = arith.constant dense<0.000000e+00> : vector<2x128xf32>
    %218 = tpu.matmul %217, %4, %cst_56 {dimension_numbers = #tpu.dot_dimension_numbers<[1], [0], [0], [1], [0, 0, 1, 1], [], []>} : vector<2x64xf32>, vector<64x128xf32>, vector<2x128xf32> -> vector<2x128xf32>
    %219 = arith.addf %218, %8 : vector<2x128xf32>
    %220 = vector.extract_strided_slice %219 {offsets = [0, 0], sizes = [2, 32], strides = [1, 1]} : vector<2x128xf32> to vector<2x32xf32>
    %221 = arith.negf %220 : vector<2x32xf32>
    %222 = math.exp %221 : vector<2x32xf32>
    %cst_57 = arith.constant 1.000000e+00 : f32
    %223 = vector.broadcast %cst_57 : f32 to vector<2x32xf32>
    %224 = arith.addf %223, %222 : vector<2x32xf32>
    %225 = arith.divf %223, %224 : vector<2x32xf32>
    %226 = vector.extract_strided_slice %219 {offsets = [0, 32], sizes = [2, 32], strides = [1, 1]} : vector<2x128xf32> to vector<2x32xf32>
    %227 = arith.negf %226 : vector<2x32xf32>
    %228 = math.exp %227 : vector<2x32xf32>
    %cst_58 = arith.constant 1.000000e+00 : f32
    %229 = vector.broadcast %cst_58 : f32 to vector<2x32xf32>
    %230 = arith.addf %229, %228 : vector<2x32xf32>
    %231 = arith.divf %229, %230 : vector<2x32xf32>
    %232 = vector.extract_strided_slice %219 {offsets = [0, 64], sizes = [2, 32], strides = [1, 1]} : vector<2x128xf32> to vector<2x32xf32>
    %233 = math.tanh %232 : vector<2x32xf32>
    %234 = vector.extract_strided_slice %219 {offsets = [0, 96], sizes = [2, 32], strides = [1, 1]} : vector<2x128xf32> to vector<2x32xf32>
    %235 = arith.negf %234 : vector<2x32xf32>
    %236 = math.exp %235 : vector<2x32xf32>
    %cst_59 = arith.constant 1.000000e+00 : f32
    %237 = vector.broadcast %cst_59 : f32 to vector<2x32xf32>
    %238 = arith.addf %237, %236 : vector<2x32xf32>
    %239 = arith.divf %237, %238 : vector<2x32xf32>
    %240 = arith.mulf %231, %185 : vector<2x32xf32>
    %241 = arith.mulf %225, %233 : vector<2x32xf32>
    %242 = arith.addf %240, %241 : vector<2x32xf32>
    %243 = math.tanh %242 : vector<2x32xf32>
    %244 = arith.mulf %239, %243 : vector<2x32xf32>
    %c0_60 = arith.constant 0 : index
    %c4 = arith.constant 4 : index
    %c0_61 = arith.constant 0 : index
    %245 = vector.load %arg2[%c0_60, %c4, %c0_61] : memref<2x8x128xf32, #tpu.memory_space<vmem>>, vector<2x1x128xf32>
    %246 = vector.shape_cast %245 : vector<2x1x128xf32> to vector<2x128xf32>
    %cst_62 = arith.constant dense<0.000000e+00> : vector<2x128xf32>
    %247 = tpu.matmul %216, %3, %cst_62 {dimension_numbers = #tpu.dot_dimension_numbers<[1], [0], [0], [1], [0, 0, 1, 1], [], []>} : vector<2x32xf32>, vector<32x128xf32>, vector<2x128xf32> -> vector<2x128xf32>
    %248 = arith.addf %246, %247 : vector<2x128xf32>
    %249 = vector.extract_strided_slice %248 {offsets = [0, 0], sizes = [2, 32], strides = [1, 1]} : vector<2x128xf32> to vector<2x32xf32>
    %250 = arith.negf %249 : vector<2x32xf32>
    %251 = math.exp %250 : vector<2x32xf32>
    %cst_63 = arith.constant 1.000000e+00 : f32
    %252 = vector.broadcast %cst_63 : f32 to vector<2x32xf32>
    %253 = arith.addf %252, %251 : vector<2x32xf32>
    %254 = arith.divf %252, %253 : vector<2x32xf32>
    %255 = vector.extract_strided_slice %248 {offsets = [0, 32], sizes = [2, 32], strides = [1, 1]} : vector<2x128xf32> to vector<2x32xf32>
    %256 = arith.negf %255 : vector<2x32xf32>
    %257 = math.exp %256 : vector<2x32xf32>
    %cst_64 = arith.constant 1.000000e+00 : f32
    %258 = vector.broadcast %cst_64 : f32 to vector<2x32xf32>
    %259 = arith.addf %258, %257 : vector<2x32xf32>
    %260 = arith.divf %258, %259 : vector<2x32xf32>
    %261 = vector.extract_strided_slice %248 {offsets = [0, 64], sizes = [2, 32], strides = [1, 1]} : vector<2x128xf32> to vector<2x32xf32>
    %262 = math.tanh %261 : vector<2x32xf32>
    %263 = vector.extract_strided_slice %248 {offsets = [0, 96], sizes = [2, 32], strides = [1, 1]} : vector<2x128xf32> to vector<2x32xf32>
    %264 = arith.negf %263 : vector<2x32xf32>
    %265 = math.exp %264 : vector<2x32xf32>
    %cst_65 = arith.constant 1.000000e+00 : f32
    %266 = vector.broadcast %cst_65 : f32 to vector<2x32xf32>
    %267 = arith.addf %266, %265 : vector<2x32xf32>
    %268 = arith.divf %266, %267 : vector<2x32xf32>
    %269 = arith.mulf %260, %214 : vector<2x32xf32>
    %270 = arith.mulf %254, %262 : vector<2x32xf32>
    %271 = arith.addf %269, %270 : vector<2x32xf32>
    %272 = math.tanh %271 : vector<2x32xf32>
    %273 = arith.mulf %268, %272 : vector<2x32xf32>
    %274 = tpu.concatenate %273, %244 in 1 : vector<2x32xf32>, vector<2x32xf32> -> vector<2x64xf32>
    %cst_66 = arith.constant dense<0.000000e+00> : vector<2x128xf32>
    %275 = tpu.matmul %274, %4, %cst_66 {dimension_numbers = #tpu.dot_dimension_numbers<[1], [0], [0], [1], [0, 0, 1, 1], [], []>} : vector<2x64xf32>, vector<64x128xf32>, vector<2x128xf32> -> vector<2x128xf32>
    %276 = arith.addf %275, %8 : vector<2x128xf32>
    %277 = vector.extract_strided_slice %276 {offsets = [0, 0], sizes = [2, 32], strides = [1, 1]} : vector<2x128xf32> to vector<2x32xf32>
    %278 = arith.negf %277 : vector<2x32xf32>
    %279 = math.exp %278 : vector<2x32xf32>
    %cst_67 = arith.constant 1.000000e+00 : f32
    %280 = vector.broadcast %cst_67 : f32 to vector<2x32xf32>
    %281 = arith.addf %280, %279 : vector<2x32xf32>
    %282 = arith.divf %280, %281 : vector<2x32xf32>
    %283 = vector.extract_strided_slice %276 {offsets = [0, 32], sizes = [2, 32], strides = [1, 1]} : vector<2x128xf32> to vector<2x32xf32>
    %284 = arith.negf %283 : vector<2x32xf32>
    %285 = math.exp %284 : vector<2x32xf32>
    %cst_68 = arith.constant 1.000000e+00 : f32
    %286 = vector.broadcast %cst_68 : f32 to vector<2x32xf32>
    %287 = arith.addf %286, %285 : vector<2x32xf32>
    %288 = arith.divf %286, %287 : vector<2x32xf32>
    %289 = vector.extract_strided_slice %276 {offsets = [0, 64], sizes = [2, 32], strides = [1, 1]} : vector<2x128xf32> to vector<2x32xf32>
    %290 = math.tanh %289 : vector<2x32xf32>
    %291 = vector.extract_strided_slice %276 {offsets = [0, 96], sizes = [2, 32], strides = [1, 1]} : vector<2x128xf32> to vector<2x32xf32>
    %292 = arith.negf %291 : vector<2x32xf32>
    %293 = math.exp %292 : vector<2x32xf32>
    %cst_69 = arith.constant 1.000000e+00 : f32
    %294 = vector.broadcast %cst_69 : f32 to vector<2x32xf32>
    %295 = arith.addf %294, %293 : vector<2x32xf32>
    %296 = arith.divf %294, %295 : vector<2x32xf32>
    %297 = arith.mulf %288, %242 : vector<2x32xf32>
    %298 = arith.mulf %282, %290 : vector<2x32xf32>
    %299 = arith.addf %297, %298 : vector<2x32xf32>
    %300 = math.tanh %299 : vector<2x32xf32>
    %301 = arith.mulf %296, %300 : vector<2x32xf32>
    %c0_70 = arith.constant 0 : index
    %c5 = arith.constant 5 : index
    %c0_71 = arith.constant 0 : index
    %302 = vector.load %arg2[%c0_70, %c5, %c0_71] : memref<2x8x128xf32, #tpu.memory_space<vmem>>, vector<2x1x128xf32>
    %303 = vector.shape_cast %302 : vector<2x1x128xf32> to vector<2x128xf32>
    %cst_72 = arith.constant dense<0.000000e+00> : vector<2x128xf32>
    %304 = tpu.matmul %273, %3, %cst_72 {dimension_numbers = #tpu.dot_dimension_numbers<[1], [0], [0], [1], [0, 0, 1, 1], [], []>} : vector<2x32xf32>, vector<32x128xf32>, vector<2x128xf32> -> vector<2x128xf32>
    %305 = arith.addf %303, %304 : vector<2x128xf32>
    %306 = vector.extract_strided_slice %305 {offsets = [0, 0], sizes = [2, 32], strides = [1, 1]} : vector<2x128xf32> to vector<2x32xf32>
    %307 = arith.negf %306 : vector<2x32xf32>
    %308 = math.exp %307 : vector<2x32xf32>
    %cst_73 = arith.constant 1.000000e+00 : f32
    %309 = vector.broadcast %cst_73 : f32 to vector<2x32xf32>
    %310 = arith.addf %309, %308 : vector<2x32xf32>
    %311 = arith.divf %309, %310 : vector<2x32xf32>
    %312 = vector.extract_strided_slice %305 {offsets = [0, 32], sizes = [2, 32], strides = [1, 1]} : vector<2x128xf32> to vector<2x32xf32>
    %313 = arith.negf %312 : vector<2x32xf32>
    %314 = math.exp %313 : vector<2x32xf32>
    %cst_74 = arith.constant 1.000000e+00 : f32
    %315 = vector.broadcast %cst_74 : f32 to vector<2x32xf32>
    %316 = arith.addf %315, %314 : vector<2x32xf32>
    %317 = arith.divf %315, %316 : vector<2x32xf32>
    %318 = vector.extract_strided_slice %305 {offsets = [0, 64], sizes = [2, 32], strides = [1, 1]} : vector<2x128xf32> to vector<2x32xf32>
    %319 = math.tanh %318 : vector<2x32xf32>
    %320 = vector.extract_strided_slice %305 {offsets = [0, 96], sizes = [2, 32], strides = [1, 1]} : vector<2x128xf32> to vector<2x32xf32>
    %321 = arith.negf %320 : vector<2x32xf32>
    %322 = math.exp %321 : vector<2x32xf32>
    %cst_75 = arith.constant 1.000000e+00 : f32
    %323 = vector.broadcast %cst_75 : f32 to vector<2x32xf32>
    %324 = arith.addf %323, %322 : vector<2x32xf32>
    %325 = arith.divf %323, %324 : vector<2x32xf32>
    %326 = arith.mulf %317, %271 : vector<2x32xf32>
    %327 = arith.mulf %311, %319 : vector<2x32xf32>
    %328 = arith.addf %326, %327 : vector<2x32xf32>
    %329 = math.tanh %328 : vector<2x32xf32>
    %330 = arith.mulf %325, %329 : vector<2x32xf32>
    %331 = tpu.concatenate %330, %301 in 1 : vector<2x32xf32>, vector<2x32xf32> -> vector<2x64xf32>
    %cst_76 = arith.constant dense<0.000000e+00> : vector<2x128xf32>
    %332 = tpu.matmul %331, %4, %cst_76 {dimension_numbers = #tpu.dot_dimension_numbers<[1], [0], [0], [1], [0, 0, 1, 1], [], []>} : vector<2x64xf32>, vector<64x128xf32>, vector<2x128xf32> -> vector<2x128xf32>
    %333 = arith.addf %332, %8 : vector<2x128xf32>
    %334 = vector.extract_strided_slice %333 {offsets = [0, 0], sizes = [2, 32], strides = [1, 1]} : vector<2x128xf32> to vector<2x32xf32>
    %335 = arith.negf %334 : vector<2x32xf32>
    %336 = math.exp %335 : vector<2x32xf32>
    %cst_77 = arith.constant 1.000000e+00 : f32
    %337 = vector.broadcast %cst_77 : f32 to vector<2x32xf32>
    %338 = arith.addf %337, %336 : vector<2x32xf32>
    %339 = arith.divf %337, %338 : vector<2x32xf32>
    %340 = vector.extract_strided_slice %333 {offsets = [0, 32], sizes = [2, 32], strides = [1, 1]} : vector<2x128xf32> to vector<2x32xf32>
    %341 = arith.negf %340 : vector<2x32xf32>
    %342 = math.exp %341 : vector<2x32xf32>
    %cst_78 = arith.constant 1.000000e+00 : f32
    %343 = vector.broadcast %cst_78 : f32 to vector<2x32xf32>
    %344 = arith.addf %343, %342 : vector<2x32xf32>
    %345 = arith.divf %343, %344 : vector<2x32xf32>
    %346 = vector.extract_strided_slice %333 {offsets = [0, 64], sizes = [2, 32], strides = [1, 1]} : vector<2x128xf32> to vector<2x32xf32>
    %347 = math.tanh %346 : vector<2x32xf32>
    %348 = vector.extract_strided_slice %333 {offsets = [0, 96], sizes = [2, 32], strides = [1, 1]} : vector<2x128xf32> to vector<2x32xf32>
    %349 = arith.negf %348 : vector<2x32xf32>
    %350 = math.exp %349 : vector<2x32xf32>
    %cst_79 = arith.constant 1.000000e+00 : f32
    %351 = vector.broadcast %cst_79 : f32 to vector<2x32xf32>
    %352 = arith.addf %351, %350 : vector<2x32xf32>
    %353 = arith.divf %351, %352 : vector<2x32xf32>
    %354 = arith.mulf %345, %299 : vector<2x32xf32>
    %355 = arith.mulf %339, %347 : vector<2x32xf32>
    %356 = arith.addf %354, %355 : vector<2x32xf32>
    %357 = math.tanh %356 : vector<2x32xf32>
    %358 = arith.mulf %353, %357 : vector<2x32xf32>
    %c0_80 = arith.constant 0 : index
    %c6 = arith.constant 6 : index
    %c0_81 = arith.constant 0 : index
    %359 = vector.load %arg2[%c0_80, %c6, %c0_81] : memref<2x8x128xf32, #tpu.memory_space<vmem>>, vector<2x1x128xf32>
    %360 = vector.shape_cast %359 : vector<2x1x128xf32> to vector<2x128xf32>
    %cst_82 = arith.constant dense<0.000000e+00> : vector<2x128xf32>
    %361 = tpu.matmul %330, %3, %cst_82 {dimension_numbers = #tpu.dot_dimension_numbers<[1], [0], [0], [1], [0, 0, 1, 1], [], []>} : vector<2x32xf32>, vector<32x128xf32>, vector<2x128xf32> -> vector<2x128xf32>
    %362 = arith.addf %360, %361 : vector<2x128xf32>
    %363 = vector.extract_strided_slice %362 {offsets = [0, 0], sizes = [2, 32], strides = [1, 1]} : vector<2x128xf32> to vector<2x32xf32>
    %364 = arith.negf %363 : vector<2x32xf32>
    %365 = math.exp %364 : vector<2x32xf32>
    %cst_83 = arith.constant 1.000000e+00 : f32
    %366 = vector.broadcast %cst_83 : f32 to vector<2x32xf32>
    %367 = arith.addf %366, %365 : vector<2x32xf32>
    %368 = arith.divf %366, %367 : vector<2x32xf32>
    %369 = vector.extract_strided_slice %362 {offsets = [0, 32], sizes = [2, 32], strides = [1, 1]} : vector<2x128xf32> to vector<2x32xf32>
    %370 = arith.negf %369 : vector<2x32xf32>
    %371 = math.exp %370 : vector<2x32xf32>
    %cst_84 = arith.constant 1.000000e+00 : f32
    %372 = vector.broadcast %cst_84 : f32 to vector<2x32xf32>
    %373 = arith.addf %372, %371 : vector<2x32xf32>
    %374 = arith.divf %372, %373 : vector<2x32xf32>
    %375 = vector.extract_strided_slice %362 {offsets = [0, 64], sizes = [2, 32], strides = [1, 1]} : vector<2x128xf32> to vector<2x32xf32>
    %376 = math.tanh %375 : vector<2x32xf32>
    %377 = vector.extract_strided_slice %362 {offsets = [0, 96], sizes = [2, 32], strides = [1, 1]} : vector<2x128xf32> to vector<2x32xf32>
    %378 = arith.negf %377 : vector<2x32xf32>
    %379 = math.exp %378 : vector<2x32xf32>
    %cst_85 = arith.constant 1.000000e+00 : f32
    %380 = vector.broadcast %cst_85 : f32 to vector<2x32xf32>
    %381 = arith.addf %380, %379 : vector<2x32xf32>
    %382 = arith.divf %380, %381 : vector<2x32xf32>
    %383 = arith.mulf %374, %328 : vector<2x32xf32>
    %384 = arith.mulf %368, %376 : vector<2x32xf32>
    %385 = arith.addf %383, %384 : vector<2x32xf32>
    %386 = math.tanh %385 : vector<2x32xf32>
    %387 = arith.mulf %382, %386 : vector<2x32xf32>
    %388 = tpu.concatenate %387, %358 in 1 : vector<2x32xf32>, vector<2x32xf32> -> vector<2x64xf32>
    %cst_86 = arith.constant dense<0.000000e+00> : vector<2x128xf32>
    %389 = tpu.matmul %388, %4, %cst_86 {dimension_numbers = #tpu.dot_dimension_numbers<[1], [0], [0], [1], [0, 0, 1, 1], [], []>} : vector<2x64xf32>, vector<64x128xf32>, vector<2x128xf32> -> vector<2x128xf32>
    %390 = arith.addf %389, %8 : vector<2x128xf32>
    %391 = vector.extract_strided_slice %390 {offsets = [0, 0], sizes = [2, 32], strides = [1, 1]} : vector<2x128xf32> to vector<2x32xf32>
    %392 = arith.negf %391 : vector<2x32xf32>
    %393 = math.exp %392 : vector<2x32xf32>
    %cst_87 = arith.constant 1.000000e+00 : f32
    %394 = vector.broadcast %cst_87 : f32 to vector<2x32xf32>
    %395 = arith.addf %394, %393 : vector<2x32xf32>
    %396 = arith.divf %394, %395 : vector<2x32xf32>
    %397 = vector.extract_strided_slice %390 {offsets = [0, 32], sizes = [2, 32], strides = [1, 1]} : vector<2x128xf32> to vector<2x32xf32>
    %398 = arith.negf %397 : vector<2x32xf32>
    %399 = math.exp %398 : vector<2x32xf32>
    %cst_88 = arith.constant 1.000000e+00 : f32
    %400 = vector.broadcast %cst_88 : f32 to vector<2x32xf32>
    %401 = arith.addf %400, %399 : vector<2x32xf32>
    %402 = arith.divf %400, %401 : vector<2x32xf32>
    %403 = vector.extract_strided_slice %390 {offsets = [0, 64], sizes = [2, 32], strides = [1, 1]} : vector<2x128xf32> to vector<2x32xf32>
    %404 = math.tanh %403 : vector<2x32xf32>
    %405 = vector.extract_strided_slice %390 {offsets = [0, 96], sizes = [2, 32], strides = [1, 1]} : vector<2x128xf32> to vector<2x32xf32>
    %406 = arith.negf %405 : vector<2x32xf32>
    %407 = math.exp %406 : vector<2x32xf32>
    %cst_89 = arith.constant 1.000000e+00 : f32
    %408 = vector.broadcast %cst_89 : f32 to vector<2x32xf32>
    %409 = arith.addf %408, %407 : vector<2x32xf32>
    %410 = arith.divf %408, %409 : vector<2x32xf32>
    %411 = arith.mulf %402, %356 : vector<2x32xf32>
    %412 = arith.mulf %396, %404 : vector<2x32xf32>
    %413 = arith.addf %411, %412 : vector<2x32xf32>
    %414 = math.tanh %413 : vector<2x32xf32>
    %415 = arith.mulf %410, %414 : vector<2x32xf32>
    %c0_90 = arith.constant 0 : index
    %c7 = arith.constant 7 : index
    %c0_91 = arith.constant 0 : index
    %416 = vector.load %arg2[%c0_90, %c7, %c0_91] : memref<2x8x128xf32, #tpu.memory_space<vmem>>, vector<2x1x128xf32>
    %417 = vector.shape_cast %416 : vector<2x1x128xf32> to vector<2x128xf32>
    %cst_92 = arith.constant dense<0.000000e+00> : vector<2x128xf32>
    %418 = tpu.matmul %387, %3, %cst_92 {dimension_numbers = #tpu.dot_dimension_numbers<[1], [0], [0], [1], [0, 0, 1, 1], [], []>} : vector<2x32xf32>, vector<32x128xf32>, vector<2x128xf32> -> vector<2x128xf32>
    %419 = arith.addf %417, %418 : vector<2x128xf32>
    %420 = vector.extract_strided_slice %419 {offsets = [0, 0], sizes = [2, 32], strides = [1, 1]} : vector<2x128xf32> to vector<2x32xf32>
    %421 = arith.negf %420 : vector<2x32xf32>
    %422 = math.exp %421 : vector<2x32xf32>
    %cst_93 = arith.constant 1.000000e+00 : f32
    %423 = vector.broadcast %cst_93 : f32 to vector<2x32xf32>
    %424 = arith.addf %423, %422 : vector<2x32xf32>
    %425 = arith.divf %423, %424 : vector<2x32xf32>
    %426 = vector.extract_strided_slice %419 {offsets = [0, 32], sizes = [2, 32], strides = [1, 1]} : vector<2x128xf32> to vector<2x32xf32>
    %427 = arith.negf %426 : vector<2x32xf32>
    %428 = math.exp %427 : vector<2x32xf32>
    %cst_94 = arith.constant 1.000000e+00 : f32
    %429 = vector.broadcast %cst_94 : f32 to vector<2x32xf32>
    %430 = arith.addf %429, %428 : vector<2x32xf32>
    %431 = arith.divf %429, %430 : vector<2x32xf32>
    %432 = vector.extract_strided_slice %419 {offsets = [0, 64], sizes = [2, 32], strides = [1, 1]} : vector<2x128xf32> to vector<2x32xf32>
    %433 = math.tanh %432 : vector<2x32xf32>
    %434 = vector.extract_strided_slice %419 {offsets = [0, 96], sizes = [2, 32], strides = [1, 1]} : vector<2x128xf32> to vector<2x32xf32>
    %435 = arith.negf %434 : vector<2x32xf32>
    %436 = math.exp %435 : vector<2x32xf32>
    %cst_95 = arith.constant 1.000000e+00 : f32
    %437 = vector.broadcast %cst_95 : f32 to vector<2x32xf32>
    %438 = arith.addf %437, %436 : vector<2x32xf32>
    %439 = arith.divf %437, %438 : vector<2x32xf32>
    %440 = arith.mulf %431, %385 : vector<2x32xf32>
    %441 = arith.mulf %425, %433 : vector<2x32xf32>
    %442 = arith.addf %440, %441 : vector<2x32xf32>
    %443 = math.tanh %442 : vector<2x32xf32>
    %444 = arith.mulf %439, %443 : vector<2x32xf32>
    %445 = tpu.concatenate %444, %415 in 1 : vector<2x32xf32>, vector<2x32xf32> -> vector<2x64xf32>
    %cst_96 = arith.constant dense<0.000000e+00> : vector<2x128xf32>
    %446 = tpu.matmul %445, %4, %cst_96 {dimension_numbers = #tpu.dot_dimension_numbers<[1], [0], [0], [1], [0, 0, 1, 1], [], []>} : vector<2x64xf32>, vector<64x128xf32>, vector<2x128xf32> -> vector<2x128xf32>
    %447 = arith.addf %446, %8 : vector<2x128xf32>
    %448 = vector.extract_strided_slice %447 {offsets = [0, 0], sizes = [2, 32], strides = [1, 1]} : vector<2x128xf32> to vector<2x32xf32>
    %449 = arith.negf %448 : vector<2x32xf32>
    %450 = math.exp %449 : vector<2x32xf32>
    %cst_97 = arith.constant 1.000000e+00 : f32
    %451 = vector.broadcast %cst_97 : f32 to vector<2x32xf32>
    %452 = arith.addf %451, %450 : vector<2x32xf32>
    %453 = arith.divf %451, %452 : vector<2x32xf32>
    %454 = vector.extract_strided_slice %447 {offsets = [0, 32], sizes = [2, 32], strides = [1, 1]} : vector<2x128xf32> to vector<2x32xf32>
    %455 = arith.negf %454 : vector<2x32xf32>
    %456 = math.exp %455 : vector<2x32xf32>
    %cst_98 = arith.constant 1.000000e+00 : f32
    %457 = vector.broadcast %cst_98 : f32 to vector<2x32xf32>
    %458 = arith.addf %457, %456 : vector<2x32xf32>
    %459 = arith.divf %457, %458 : vector<2x32xf32>
    %460 = vector.extract_strided_slice %447 {offsets = [0, 64], sizes = [2, 32], strides = [1, 1]} : vector<2x128xf32> to vector<2x32xf32>
    %461 = math.tanh %460 : vector<2x32xf32>
    %462 = vector.extract_strided_slice %447 {offsets = [0, 96], sizes = [2, 32], strides = [1, 1]} : vector<2x128xf32> to vector<2x32xf32>
    %463 = arith.negf %462 : vector<2x32xf32>
    %464 = math.exp %463 : vector<2x32xf32>
    %cst_99 = arith.constant 1.000000e+00 : f32
    %465 = vector.broadcast %cst_99 : f32 to vector<2x32xf32>
    %466 = arith.addf %465, %464 : vector<2x32xf32>
    %467 = arith.divf %465, %466 : vector<2x32xf32>
    %468 = arith.mulf %459, %413 : vector<2x32xf32>
    %469 = arith.mulf %453, %461 : vector<2x32xf32>
    %470 = arith.addf %468, %469 : vector<2x32xf32>
    %471 = math.tanh %470 : vector<2x32xf32>
    %472 = arith.mulf %467, %471 : vector<2x32xf32>
    %473 = vector.shape_cast %73 : vector<2x32xf32> to vector<2x1x32xf32>
    %474 = vector.shape_cast %130 : vector<2x32xf32> to vector<2x1x32xf32>
    %475 = vector.shape_cast %187 : vector<2x32xf32> to vector<2x1x32xf32>
    %476 = vector.shape_cast %244 : vector<2x32xf32> to vector<2x1x32xf32>
    %477 = vector.shape_cast %301 : vector<2x32xf32> to vector<2x1x32xf32>
    %478 = vector.shape_cast %358 : vector<2x32xf32> to vector<2x1x32xf32>
    %479 = vector.shape_cast %415 : vector<2x32xf32> to vector<2x1x32xf32>
    %480 = vector.shape_cast %472 : vector<2x32xf32> to vector<2x1x32xf32>
    %481 = tpu.concatenate %473, %474, %475, %476, %477, %478, %479, %480 in 1 : vector<2x1x32xf32>, vector<2x1x32xf32>, vector<2x1x32xf32>, vector<2x1x32xf32>, vector<2x1x32xf32>, vector<2x1x32xf32>, vector<2x1x32xf32>, vector<2x1x32xf32> -> vector<2x8x32xf32>
    %482 = vector.shape_cast %481 : vector<2x8x32xf32> to vector<16x32xf32>
    %cst_100 = arith.constant dense<0.000000e+00> : vector<16x16xf32>
    %483 = tpu.matmul %482, %5, %cst_100 {dimension_numbers = #tpu.dot_dimension_numbers<[1], [0], [0], [1], [0, 0, 1, 1], [], []>} : vector<16x32xf32>, vector<32x16xf32>, vector<16x16xf32> -> vector<16x16xf32>
    %484 = vector.shape_cast %483 : vector<16x16xf32> to vector<2x8x16xf32>
    %c0_101 = arith.constant 0 : index
    %c0_102 = arith.constant 0 : index
    %485 = vector.load %arg7[%c0_101, %c0_102] : memref<1x16xf32, #tpu.memory_space<vmem>>, vector<1x16xf32>
    %486 = vector.shape_cast %485 : vector<1x16xf32> to vector<1x1x16xf32>
    %487 = vector.broadcast %486 : vector<1x1x16xf32> to vector<2x8x16xf32>
    %488 = arith.addf %484, %487 : vector<2x8x16xf32>
    %c0_103 = arith.constant 0 : index
    %c0_104 = arith.constant 0 : index
    %c0_105 = arith.constant 0 : index
    %489 = vector.load %arg10[%c0_103, %c0_104, %c0_105] : memref<2x8x16xf32, #tpu.memory_space<vmem>>, vector<2x8x16xf32>
    tpu.vector_store %arg10[%c0_103, %c0_104, %c0_105], %488 {strides = array<i32>} : memref<2x8x16xf32, #tpu.memory_space<vmem>>, vector<2x8x16xf32>,
    %490 = vector.shape_cast %444 : vector<2x32xf32> to vector<1x2x32xf32>
    %491 = vector.shape_cast %472 : vector<2x32xf32> to vector<1x2x32xf32>
    %492 = tpu.concatenate %490, %491 in 0 : vector<1x2x32xf32>, vector<1x2x32xf32> -> vector<2x2x32xf32>
    %493 = vector.shape_cast %442 : vector<2x32xf32> to vector<1x2x32xf32>
    %494 = vector.shape_cast %470 : vector<2x32xf32> to vector<1x2x32xf32>
    %495 = tpu.concatenate %493, %494 in 0 : vector<1x2x32xf32>, vector<1x2x32xf32> -> vector<2x2x32xf32>
    %c0_106 = arith.constant 0 : index
    %c0_107 = arith.constant 0 : index
    %c0_108 = arith.constant 0 : index
    %496 = vector.load %arg13[%c0_106, %c0_107, %c0_108] : memref<2x2x32xf32, #tpu.memory_space<vmem>>, vector<2x2x32xf32>
    tpu.vector_store %arg13[%c0_106, %c0_107, %c0_108], %492 {strides = array<i32>} : memref<2x2x32xf32, #tpu.memory_space<vmem>>, vector<2x2x32xf32>,
    %c0_109 = arith.constant 0 : index
    %c0_110 = arith.constant 0 : index
    %c0_111 = arith.constant 0 : index
    %497 = vector.load %arg14[%c0_109, %c0_110, %c0_111] : memref<2x2x32xf32, #tpu.memory_space<vmem>>, vector<2x2x32xf32>
    tpu.vector_store %arg14[%c0_109, %c0_110, %c0_111], %495 {strides = array<i32>} : memref<2x2x32xf32, #tpu.memory_space<vmem>>, vector<2x2x32xf32>,
    %c0_i32_112 = arith.constant 0 : i32
    %498 = arith.cmpi eq, %arg1, %c0_i32_112 : i32
    %499 = arith.extui %498 : i1 to i32
    %c0_i32_113 = arith.constant 0 : i32
    %500 = arith.cmpi ne, %499, %c0_i32_113 : i32
    scf.if %500 {
      %c0_114 = arith.constant 0 : index
      %c0_115 = arith.constant 0 : index
      %c0_116 = arith.constant 0 : index
      %501 = vector.load %arg11[%c0_114, %c0_115, %c0_116] : memref<2x2x32xf32, #tpu.memory_space<vmem>>, vector<2x2x32xf32>
      tpu.vector_store %arg11[%c0_114, %c0_115, %c0_116], %492 {strides = array<i32>} : memref<2x2x32xf32, #tpu.memory_space<vmem>>, vector<2x2x32xf32>,
      %c0_117 = arith.constant 0 : index
      %c0_118 = arith.constant 0 : index
      %c0_119 = arith.constant 0 : index
      %502 = vector.load %arg12[%c0_117, %c0_118, %c0_119] : memref<2x2x32xf32, #tpu.memory_space<vmem>>, vector<2x2x32xf32>
      tpu.vector_store %arg12[%c0_117, %c0_118, %c0_119], %495 {strides = array<i32>} : memref<2x2x32xf32, #tpu.memory_space<vmem>>, vector<2x2x32xf32>,
    } else {
    }
    return
  }
  func.func @transform_0(%arg0: i32, %arg1: i32) -> (i32, i32, i32) {
    %c0_i32 = arith.constant 0 : i32
    %c0_i32_0 = arith.constant 0 : i32
    return %arg0, %arg1, %c0_i32 : i32, i32, i32
  }
  func.func @transform_1(%arg0: i32, %arg1: i32) -> (i32, i32) {
    %c0_i32 = arith.constant 0 : i32
    %c0_i32_0 = arith.constant 0 : i32
    %c0_i32_1 = arith.constant 0 : i32
    return %c0_i32, %c0_i32_0 : i32, i32
  }
  func.func @transform_2(%arg0: i32, %arg1: i32) -> (i32, i32) {
    %c0_i32 = arith.constant 0 : i32
    %c0_i32_0 = arith.constant 0 : i32
    %c0_i32_1 = arith.constant 0 : i32
    return %c0_i32, %c0_i32_0 : i32, i32
  }
  func.func @transform_3(%arg0: i32, %arg1: i32) -> (i32, i32) {
    %c0_i32 = arith.constant 0 : i32
    %c0_i32_0 = arith.constant 0 : i32
    %c0_i32_1 = arith.constant 0 : i32
    return %c0_i32, %c0_i32_0 : i32, i32
  }
  func.func @transform_4(%arg0: i32, %arg1: i32) -> (i32, i32) {
    %c0_i32 = arith.constant 0 : i32
    %c0_i32_0 = arith.constant 0 : i32
    %c0_i32_1 = arith.constant 0 : i32
    return %c0_i32, %c0_i32_0 : i32, i32
  }
  func.func @transform_5(%arg0: i32, %arg1: i32) -> (i32, i32) {
    %c0_i32 = arith.constant 0 : i32
    %c0_i32_0 = arith.constant 0 : i32
    %c0_i32_1 = arith.constant 0 : i32
    return %c0_i32, %c0_i32_0 : i32, i32
  }
  func.func @transform_6(%arg0: i32, %arg1: i32) -> (i32, i32, i32) {
    %c0_i32 = arith.constant 0 : i32
    %c0_i32_0 = arith.constant 0 : i32
    %c0_i32_1 = arith.constant 0 : i32
    %c0_i32_2 = arith.constant 0 : i32
    return %c0_i32, %c0_i32_0, %c0_i32_1 : i32, i32, i32
  }
  func.func @transform_7(%arg0: i32, %arg1: i32) -> (i32, i32, i32) {
    %c0_i32 = arith.constant 0 : i32
    %c0_i32_0 = arith.constant 0 : i32
    %c0_i32_1 = arith.constant 0 : i32
    %c0_i32_2 = arith.constant 0 : i32
    return %c0_i32, %c0_i32_0, %c0_i32_1 : i32, i32, i32
  }
  func.func @transform_8(%arg0: i32, %arg1: i32) -> (i32, i32, i32) {
    %c0_i32 = arith.constant 0 : i32
    %c0_i32_0 = arith.constant 0 : i32
    return %arg0, %arg1, %c0_i32 : i32, i32, i32
  }
  func.func @transform_9(%arg0: i32, %arg1: i32) -> (i32, i32, i32) {
    %c0_i32 = arith.constant 0 : i32
    %c0_i32_0 = arith.constant 0 : i32
    %c0_i32_1 = arith.constant 0 : i32
    return %c0_i32, %arg0, %c0_i32_0 : i32, i32, i32
  }
  func.func @transform_10(%arg0: i32, %arg1: i32) -> (i32, i32, i32) {
    %c0_i32 = arith.constant 0 : i32
    %c0_i32_0 = arith.constant 0 : i32
    %c0_i32_1 = arith.constant 0 : i32
    return %c0_i32, %arg0, %c0_i32_0 : i32, i32, i32
  }
}

</mosaic_0001>

<bundles_post_ra>
// kernel: lstm_model_forward.2
= control target key start
LH: loop header
LB: loop body
LE: loop exit
PB: predicated region body
PF: predicated region fallthrough
CT: control target
= control target key end

     0   :  { %8 = vsyncpa [#allocation4], 0  ;;  %s469_s0 = inlined_call_operand.hbm [shape: f32[16,128], index: 0, kind: input, shape index: {}]   ;;  %s470_s1 = inlined_call_operand.hbm [shape: f32[128,128], index: 1, kind: input, shape index: {}]   ;;  %s471_s2 = inlined_call_operand.hbm [shape: f32[1,128], index: 2, kind: input, shape index: {}]   ;;  %s472_s3 = inlined_call_operand.hbm [shape: f32[16,128], index: 3, kind: output, shape index: {}]  }
   0x1   :  { %9 = vsyncpa [#allocation7], 0 }
   0x2   :  { %10 = vsyncpa [#allocation5], 0  ;;  %s379_s12 = smov [#allocation6]   ;;  %s380_s14 = smov [#allocation3]  }
   0x3   :  { %s28_s13 = sshll.u32 %s379_s12, 4  ;;  %s16_s15 = sshll.u32 %s380_s14, 4  ;;  %s29_s13 = int_to_ptr.vmem [resolvable:$true] %s28_s13  ;;  %s405_s15 = int_to_ptr.vmem [resolvable:$true] %s16_s15 }
   0x4   :  { %s285_s18 = scalar_lea.hbm %s470_s1, 2048 }
   0x5   :  { %p286_p0 = scmp.ne.s32.totalorder %s470_s1, %s285_s18  ;;  %p289_p1 = scmp.lt.u32.totalorder %s285_s18, %s470_s1 }
   0x7   :  { %p291_p2 = pnand %p289_p1, %p286_p0 }
   0x9   :  { %294 = shalt.err (!%p291_p2)
}
   0xa   :  { %s295_s23 = scalar_lea.vmem %s29_s13, 2048  ;;  %p300_p4 = scmp.lt.s32.totalorder %s29_s13, %s29_s13 }
   0xb   :  { %p296_p3 = scmp.ne.s32.totalorder %s29_s13, %s295_s23  ;;  %p301_p5 = scmp.lt.s32.totalorder %s295_s23, %s295_s23 }
   0xd   :  { %p302_p6 = por %p301_p5, %p300_p4 }
   0xf   :  { %p303_p7 = pnand %p302_p6, %p296_p3 }
  0x11   :  { %306 = shalt.err (!%p303_p7)
}
  0x12   :  { %s381_s24 = smov 128   ;;  %s382_s25 = smov 8  }
  0x13   :  { %34 = dma.hbm_to_vmem [thread:$0]  %s470_s1, 2048, %s29_s13, [#allocation7], %s381_s24, %s381_s24, %s382_s25  }
  0x14   :  { %s307_s30 = scalar_lea.hbm %s469_s0, 256 }
  0x15   :  { %p308_p8 = scmp.ne.s32.totalorder %s469_s0, %s307_s30  ;;  %p311_p9 = scmp.lt.u32.totalorder %s307_s30, %s469_s0 }
  0x17   :  { %p313_p10 = pnand %p311_p9, %p308_p8 }
  0x19   :  { %316 = shalt.err (!%p313_p10)
}
  0x1a   :  { %s317_s8 = scalar_lea.vmem %s405_s15, 256  ;;  %p322_p12 = scmp.lt.s32.totalorder %s405_s15, %s405_s15 }
  0x1b   :  { %p318_p11 = scmp.ne.s32.totalorder %s405_s15, %s317_s8  ;;  %p323_p13 = scmp.lt.s32.totalorder %s317_s8, %s317_s8 }
  0x1d   :  { %p324_p0 = por %p323_p13, %p322_p12 }
  0x1f   :  { %p325_p1 = pnand %p324_p0, %p318_p11 }
  0x21   :  { %328 = shalt.err (!%p325_p1)
}
  0x22   :  { %22 = dma.hbm_to_vmem [thread:$0]  %s469_s0, 256, %s405_s15, [#allocation4], %s381_s24, %s381_s24, %s382_s25  }
  0x23   :  { %s383_s10 = smov [#allocation8]   ;;  %s329_s14 = scalar_lea.hbm %s471_s2, 16 }
  0x24   :  { %s41_s11 = sshll.u32 %s383_s10, 4  ;;  %p330_p2 = scmp.ne.s32.totalorder %s471_s2, %s329_s14  ;;  %s42_s11 = int_to_ptr.vmem [resolvable:$true] %s41_s11 }
  0x25   :  { %p333_p3 = scmp.lt.u32.totalorder %s329_s14, %s471_s2 }
  0x27   :  { %p335_p4 = pnand %p333_p3, %p330_p2 }
  0x29   :  { %338 = shalt.err (!%p335_p4)
}
  0x2a   :  { %s339_s20 = scalar_lea.vmem %s42_s11, 16  ;;  %s343_s0 = scalar_lea.vmem %s42_s11, 32 }
  0x2b   :  { %p340_p5 = scmp.ne.s32.totalorder %s42_s11, %s339_s20  ;;  %p344_p6 = scmp.lt.s32.totalorder %s42_s11, %s42_s11 }
  0x2c   :  { %p345_p7 = scmp.lt.s32.totalorder %s343_s0, %s339_s20 }
  0x2e   :  { %p346_p8 = por %p345_p7, %p344_p6 }
  0x30   :  { %p347_p9 = pnand %p346_p8, %p340_p5 }
  0x32   :  { %350 = shalt.err (!%p347_p9)
}
  0x33   :  { %44 = dma.hbm_to_vmem [thread:$0]  %s471_s2, 16, %s42_s11, [#allocation7]  }
  0x34   :  { %373 = dma.done.wait [#allocation4], 256  }
  0x35   :  { %374 = vsyncadd [#allocation4], 4294967040 }
  0x36   :  { %375 = dma.done.wait [#allocation7], 2064  }
  0x37   :  { %376 = vsyncadd [#allocation7], 4294965232  ;;  %v64_v0 = vld [vmem:[#allocation6] sm:$0xff]  ;;  %v65_v1 = vld [vmem:[#allocation6 + $0x8] sm:$0xff]  ;;  %s384_s2 = smov [#allocation9]  }
  0x38   :  { %v66_v2 = vld [vmem:[#allocation6 + $0x10] sm:$0xff]  ;;  %v247_v3 = vpack.c.bf16 %v65_v1, %v64_v0  ;;  %v67_v4 = vld [vmem:[#allocation6 + $0x18] sm:$0xff]  ;;  %v68_v6 = vld [vmem:[#allocation6 + $0x20] sm:$0xff]  ;;  %s180_s22 = sshll.u32 %s384_s2, 4  ;;  %s181_s22 = int_to_ptr.vmem [resolvable:$true] %s180_s22 }
  0x39   :  { %v251_v5 = vpack.c.bf16 %v67_v4, %v66_v2  ;;  %v69_v7 = vld [vmem:[#allocation6 + $0x28] sm:$0xff]  ;;  %v62_v9 = vld [vmem:[#allocation3] sm:$0xff]  ;;  %v71_v11 = vld [vmem:[#allocation6 + $0x38] sm:$0xff]  ;;  %s351_s23 = scalar_lea.vmem %s181_s22, 256  ;;  %p356_p11 = scmp.lt.s32.totalorder %s181_s22, %s181_s22 }
  0x3a   :  { %248 = vmatprep.subr.bf16.mxu0 %v247_v3  ;;  %v255_v8 = vpack.c.bf16 %v69_v7, %v68_v6  ;;  %v70_v10 = vld [vmem:[#allocation6 + $0x30] sm:$0xff]  ;;  %244 = vmatprep.mubr.f32.mxu0 %v62_v9  ;;  %v72_v13 = vld [vmem:[#allocation6 + $0x40] sm:$0xff]  ;;  %v73_v14 = vld [vmem:[#allocation6 + $0x48] sm:$0xff]  ;;  %p352_p10 = scmp.ne.s32.totalorder %s181_s22, %s351_s23  ;;  %p357_p12 = scmp.lt.s32.totalorder %s351_s23, %s351_s23 }
  0x3b   :  { %250 = vmatpush3.bf16.msra.mxu0 %v247_v3  ;;  %v259_v12 = vpack.c.bf16 %v71_v11, %v70_v10  ;;  %v263_v15 = vpack.c.bf16 %v73_v14, %v72_v13  ;;  %v74_v16 = vld [vmem:[#allocation6 + $0x50] sm:$0xff]  ;;  %v75_v17 = vld [vmem:[#allocation6 + $0x58] sm:$0xff]  ;;  %v76_v19 = vld [vmem:[#allocation6 + $0x60] sm:$0xff] }
  0x3c   :  { %252 = vmatprep.subr.bf16.mxu0 %v251_v5  ;;  %v267_v18 = vpack.c.bf16 %v75_v17, %v74_v16  ;;  %v77_v20 = vld [vmem:[#allocation6 + $0x68] sm:$0xff]  ;;  %v78_v22 = vld [vmem:[#allocation6 + $0x70] sm:$0xff]  ;;  %v79_v23 = vld [vmem:[#allocation6 + $0x78] sm:$0xff]  ;;  %p358_p13 = por %p357_p12, %p356_p11 }
  0x3d   :  { %v271_v21 = vpack.c.bf16 %v77_v20, %v76_v19  ;;  %v275_v24 = vpack.c.bf16 %v79_v23, %v78_v22  ;;  %v63_v25 = vld [vmem:[#allocation3 + $0x8] sm:$0xff]  ;;  %v193_v26 = vld [vmem:[#allocation8] ss:$0 sm:$0xff] }
  0x3e   :  { %p359_p0 = pnand %p358_p13, %p352_p10 }
  0x3f   :  { %254 = vmatpush3.bf16.msra.mxu0 %v251_v5 }
  0x40   :  { %256 = vmatprep.subr.bf16.mxu0 %v255_v8 }
  0x43   :  { %258 = vmatpush3.bf16.msra.mxu0 %v255_v8 }
  0x44   :  { %260 = vmatprep.subr.bf16.mxu0 %v259_v12 }
  0x47   :  { %262 = vmatpush3.bf16.msra.mxu0 %v259_v12 }
  0x48   :  { %264 = vmatprep.subr.bf16.mxu0 %v263_v15 }
  0x4b   :  { %266 = vmatpush3.bf16.msra.mxu0 %v263_v15 }
  0x4c   :  { %268 = vmatprep.subr.bf16.mxu0 %v267_v18 }
  0x4f   :  { %270 = vmatpush3.bf16.msra.mxu0 %v267_v18 }
  0x50   :  { %272 = vmatprep.subr.bf16.mxu0 %v271_v21 }
  0x53   :  { %274 = vmatpush3.bf16.msra.mxu0 %v271_v21 }
  0x54   :  { %276 = vmatprep.subr.bf16.mxu0 %v275_v24 }
  0x57   :  { %278 = vmatpush3.bf16.msra.mxu0 %v275_v24 }
  0x5a   :  { %245 = vmatmul.mubr.f32.vlgmr.msra.gmra.mrb[0].mxu0 %v63_v25 }
 0x12d   :  { %v246_v27 = vpop.f32.mrb[0].mxu0 }
 0x12e   :  { %v172_v28 = vadd.f32 %v246_v27, %v193_v26  ;;  %v146_v29 = vpop.f32.mrb[1].mxu0 }
 0x12f   :  { %v171_v30 = vadd.f32 %v193_v26, %v146_v29 }
 0x130   :  { %174 = vst [vmem:[#allocation9 + $0x8] sm:$0xff] %v172_v28 }
 0x131   :  { %173 = vst [vmem:[#allocation9] sm:$0xff] %v171_v30 }
 0x132   :  { %362 = shalt.err (!%p359_p0)
}
 0x133   :  { %s363_s28 = scalar_lea.hbm %s472_s3, 256 }
 0x134   :  { %p364_p1 = scmp.ne.s32.totalorder %s472_s3, %s363_s28  ;;  %p367_p2 = scmp.lt.u32.totalorder %s363_s28, %s472_s3 }
 0x136   :  { %p369_p3 = pnand %p367_p2, %p364_p1 }
 0x138   :  { %372 = shalt.err (!%p369_p3)
}
 0x139   :  { %186 = dma.vmem_to_hbm [thread:$0]  %s181_s22, 256, %s472_s3, [#allocation5], %s381_s24, %s381_s24, %s382_s25  }
 0x13a   :  { %377 = dma.done.wait [#allocation5], 256  }
 0x13b   :  { %378 = vsyncadd [#allocation5], 4294967040 }
 0x13c   :  { %190 = vsyncpa [#allocation4], 1 }
 0x13d   :  { %191 = vsyncpa [#allocation7], 1 }
 0x13e   :  { %192 = vsyncpa [#allocation5], 1 }

// kernel: lstm_model_forward.3
= control target key start
LH: loop header
LB: loop body
LE: loop exit
PB: predicated region body
PF: predicated region fallthrough
CT: control target
= control target key end

     0   :  { %16 = vsyncpa [#allocation5], 0  ;;  %s4293_s0 = inlined_call_operand.hbm [shape: f32[2,8,128], index: 0, kind: input, shape index: {}]   ;;  %s4294_s1 = inlined_call_operand.hbm [shape: f32[32,128], index: 1, kind: input, shape index: {}]   ;;  %s4295_s2 = inlined_call_operand.hbm [shape: f32[64,128], index: 2, kind: input, shape index: {}]   ;;  %s4296_s3 = inlined_call_operand.hbm [shape: f32[1,128], index: 3, kind: input, shape index: {}]   ;;  %s4297_s4 = inlined_call_operand.hbm [shape: f32[32,16], index: 4, kind: input, shape index: {}]   ;;  %s4298_s5 = inlined_call_operand.hbm [shape: f32[1,16], index: 5, kind: input, shape index: {}]   ;;  %s4299_s6 = inlined_call_operand.hbm [shape: f32[2,2,32], index: 6, kind: input, shape index: {}, may-alias: {6,7}]   ;;  %s4300_s7 = inlined_call_operand.hbm [shape: f32[2,2,32], index: 7, kind: input, shape index: {}, may-alias: {6,7}]   ;;  %s4301_s8 = inlined_call_operand.hbm [shape: f32[2,8,16], index: 8, kind: output, shape index: {0}]   ;;  %s4302_s9 = inlined_call_operand.hbm [shape: f32[2,2,32], index: 9, kind: output, shape index: {1}]   ;;  %s4303_s10 = inlined_call_operand.hbm [shape: f32[2,2,32], index: 10, kind: output, shape index: {2}]  }
   0x1   :  { %17 = vsyncpa [#allocation8], 0 }
   0x2   :  { %18 = vsyncpa [#allocation11], 0 }
   0x3   :  { %19 = vsyncpa [#allocation14], 0 }
   0x4   :  { %20 = vsyncpa [#allocation17], 0 }
   0x5   :  { %21 = vsyncpa [#allocation6], 0 }
   0x6   :  { %22 = vsyncpa [#allocation20], 0  ;;  %s3584_s13 = smov [#allocation7]   ;;  %s3585_s15 = smov [#allocation10]  }
   0x7   :  { %s40_s14 = sshll.u32 %s3584_s13, 4  ;;  %s65_s16 = sshll.u32 %s3585_s15, 4  ;;  %s41_s14 = int_to_ptr.vmem [resolvable:$true] %s40_s14  ;;  %s3660_s16 = int_to_ptr.vmem [resolvable:$true] %s65_s16 }
   0x8   :  { %s3328_s19 = scalar_lea.hbm %s4294_s1, 512 }
   0x9   :  { %p3329_p0 = scmp.ne.s32.totalorder %s4294_s1, %s3328_s19  ;;  %p3332_p1 = scmp.lt.u32.totalorder %s3328_s19, %s4294_s1 }
   0xb   :  { %p3334_p2 = pnand %p3332_p1, %p3329_p0 }
   0xd   :  { %3337 = shalt.err (!%p3334_p2)
}
   0xe   :  { %s3338_s24 = scalar_lea.vmem %s41_s14, 512  ;;  %p3343_p4 = scmp.lt.s32.totalorder %s41_s14, %s41_s14 }
   0xf   :  { %p3339_p3 = scmp.ne.s32.totalorder %s41_s14, %s3338_s24  ;;  %p3344_p5 = scmp.lt.s32.totalorder %s3338_s24, %s3338_s24 }
  0x11   :  { %p3345_p6 = por %p3344_p5, %p3343_p4 }
  0x13   :  { %p3346_p7 = pnand %p3345_p6, %p3339_p3 }
  0x15   :  { %3349 = shalt.err (!%p3346_p7)
}
  0x16   :  { %s3586_s25 = smov 128   ;;  %s3587_s26 = smov 8  }
  0x17   :  { %46 = dma.hbm_to_vmem [thread:$0]  %s4294_s1, 512, %s41_s14, [#allocation8], %s3586_s25, %s3586_s25, %s3587_s26  }
  0x18   :  { %s3350_s11 = scalar_lea.hbm %s4296_s3, 16 }
  0x19   :  { %p3351_p8 = scmp.ne.s32.totalorder %s4296_s3, %s3350_s11  ;;  %p3354_p9 = scmp.lt.u32.totalorder %s3350_s11, %s4296_s3 }
  0x1b   :  { %p3356_p10 = pnand %p3354_p9, %p3351_p8 }
  0x1d   :  { %3359 = shalt.err (!%p3356_p10)
}
  0x1e   :  { %s3360_s18 = scalar_lea.vmem %s3660_s16, 16  ;;  %s3364_s1 = scalar_lea.vmem %s3660_s16, 32 }
  0x1f   :  { %p3361_p11 = scmp.ne.s32.totalorder %s3660_s16, %s3360_s18  ;;  %p3365_p12 = scmp.lt.s32.totalorder %s3660_s16, %s3660_s16 }
  0x20   :  { %p3366_p13 = scmp.lt.s32.totalorder %s3364_s1, %s3360_s18 }
  0x22   :  { %p3367_p0 = por %p3366_p13, %p3365_p12 }
  0x24   :  { %p3368_p1 = pnand %p3367_p0, %p3361_p11 }
  0x26   :  { %3371 = shalt.err (!%p3368_p1)
}
  0x27   :  { %68 = dma.hbm_to_vmem [thread:$0]  %s4296_s3, 16, %s3660_s16, [#allocation11]  }
  0x28   :  { %s3588_s20 = smov [#allocation13]   ;;  %s3589_s22 = smov [#allocation4]  }
  0x29   :  { %s87_s21 = sshll.u32 %s3588_s20, 4  ;;  %s28_s23 = sshll.u32 %s3589_s22, 4  ;;  %s88_s21 = int_to_ptr.vmem [resolvable:$true] %s87_s21  ;;  %s3695_s23 = int_to_ptr.vmem [resolvable:$true] %s28_s23 }
  0x2a   :  { %s3372_s28 = scalar_lea.hbm %s4298_s5, 16 }
  0x2b   :  { %p3373_p2 = scmp.ne.s32.totalorder %s4298_s5, %s3372_s28  ;;  %p3376_p3 = scmp.lt.u32.totalorder %s3372_s28, %s4298_s5 }
  0x2d   :  { %p3378_p4 = pnand %p3376_p3, %p3373_p2 }
  0x2f   :  { %3381 = shalt.err (!%p3378_p4)
}
  0x30   :  { %s3382_s3 = scalar_lea.vmem %s88_s21, 16  ;;  %s3386_s16 = scalar_lea.vmem %s88_s21, 32 }
  0x31   :  { %p3383_p5 = scmp.ne.s32.totalorder %s88_s21, %s3382_s3  ;;  %p3387_p6 = scmp.lt.s32.totalorder %s88_s21, %s88_s21 }
  0x32   :  { %p3388_p7 = scmp.lt.s32.totalorder %s3386_s16, %s3382_s3 }
  0x34   :  { %p3389_p8 = por %p3388_p7, %p3387_p6 }
  0x36   :  { %p3390_p9 = pnand %p3389_p8, %p3383_p5 }
  0x38   :  { %3393 = shalt.err (!%p3390_p9)
}
  0x39   :  { %90 = dma.hbm_to_vmem [thread:$0]  %s4298_s5, 16, %s88_s21, [#allocation14]  }
  0x3a   :  { %s3394_s1 = scalar_lea.hbm %s4293_s0, 256 }
  0x3b   :  { %p3395_p10 = scmp.ne.s32.totalorder %s4293_s0, %s3394_s1  ;;  %p3398_p11 = scmp.lt.u32.totalorder %s3394_s1, %s4293_s0 }
  0x3d   :  { %p3400_p12 = pnand %p3398_p11, %p3395_p10 }
  0x3f   :  { %3403 = shalt.err (!%p3400_p12)
}
  0x40   :  { %s3404_s24 = scalar_lea.vmem %s3695_s23, 256  ;;  %p3409_p0 = scmp.lt.s32.totalorder %s3695_s23, %s3695_s23 }
  0x41   :  { %p3405_p13 = scmp.ne.s32.totalorder %s3695_s23, %s3404_s24  ;;  %p3410_p1 = scmp.lt.s32.totalorder %s3404_s24, %s3404_s24 }
  0x43   :  { %p3411_p2 = por %p3410_p1, %p3409_p0 }
  0x45   :  { %p3412_p3 = pnand %p3411_p2, %p3405_p13 }
  0x47   :  { %3415 = shalt.err (!%p3412_p3)
}
  0x48   :  { %34 = dma.hbm_to_vmem [thread:$0]  %s4293_s0, 256, %s3695_s23, [#allocation5], %s3586_s25, %s3586_s25, %s3587_s26  }
  0x49   :  { %s3590_s27 = smov [#allocation9]   ;;  %s3591_s29 = smov [#allocation12]  }
  0x4a   :  { %s52_s28 = sshll.u32 %s3590_s27, 4  ;;  %s74_s30 = sshll.u32 %s3591_s29, 4  ;;  %s53_s28 = int_to_ptr.vmem [resolvable:$true] %s52_s28  ;;  %s3729_s30 = int_to_ptr.vmem [resolvable:$true] %s74_s30 }
  0x4b   :  { %s3416_s3 = scalar_lea.hbm %s4295_s2, 1024 }
  0x4c   :  { %p3417_p4 = scmp.ne.s32.totalorder %s4295_s2, %s3416_s3  ;;  %p3420_p5 = scmp.lt.u32.totalorder %s3416_s3, %s4295_s2 }
  0x4e   :  { %p3422_p6 = pnand %p3420_p5, %p3417_p4 }
  0x50   :  { %3425 = shalt.err (!%p3422_p6)
}
  0x51   :  { %s3426_s0 = scalar_lea.vmem %s53_s28, 1024  ;;  %p3431_p8 = scmp.lt.s32.totalorder %s53_s28, %s53_s28 }
  0x52   :  { %p3427_p7 = scmp.ne.s32.totalorder %s53_s28, %s3426_s0  ;;  %p3432_p9 = scmp.lt.s32.totalorder %s3426_s0, %s3426_s0 }
  0x54   :  { %p3433_p10 = por %p3432_p9, %p3431_p8 }
  0x56   :  { %p3434_p11 = pnand %p3433_p10, %p3427_p7 }
  0x58   :  { %3437 = shalt.err (!%p3434_p11)
}
  0x59   :  { %58 = dma.hbm_to_vmem [thread:$0]  %s4295_s2, 1024, %s53_s28, [#allocation8], %s3586_s25, %s3586_s25, %s3587_s26  }
  0x5a   :  { %s3438_s19 = scalar_lea.hbm %s4297_s4, 512 }
  0x5b   :  { %p3439_p12 = scmp.ne.s32.totalorder %s4297_s4, %s3438_s19  ;;  %p3442_p13 = scmp.lt.u32.totalorder %s3438_s19, %s4297_s4 }
  0x5d   :  { %p3444_p0 = pnand %p3442_p13, %p3439_p12 }
  0x5f   :  { %3447 = shalt.err (!%p3444_p0)
}
  0x60   :  { %s3448_s21 = scalar_lea.vmem %s3729_s30, 512  ;;  %p3453_p2 = scmp.lt.s32.totalorder %s3729_s30, %s3729_s30 }
  0x61   :  { %p3449_p1 = scmp.ne.s32.totalorder %s3729_s30, %s3448_s21  ;;  %p3454_p3 = scmp.lt.s32.totalorder %s3448_s21, %s3448_s21 }
  0x63   :  { %p3455_p4 = por %p3454_p3, %p3453_p2 }
  0x65   :  { %p3456_p5 = pnand %p3455_p4, %p3449_p1 }
  0x67   :  { %3459 = shalt.err (!%p3456_p5)
}
  0x68   :  { %80 = dma.hbm_to_vmem [thread:$0]  %s4297_s4, 512, %s3729_s30, [#allocation11], %s3586_s25, %s3586_s25, %s3587_s26  }
  0x69   :  { %s3592_s28 = smov [#allocation15]   ;;  %s3460_s3 = scalar_lea.hbm %s4299_s6, 64 }
  0x6a   :  { %s96_s29 = sshll.u32 %s3592_s28, 4  ;;  %p3461_p6 = scmp.ne.s32.totalorder %s4299_s6, %s3460_s3  ;;  %s97_s29 = int_to_ptr.vmem [resolvable:$true] %s96_s29 }
  0x6b   :  { %p3464_p7 = scmp.lt.u32.totalorder %s3460_s3, %s4299_s6 }
  0x6d   :  { %p3466_p8 = pnand %p3464_p7, %p3461_p6 }
  0x6f   :  { %3469 = shalt.err (!%p3466_p8)
}
  0x70   :  { %s3470_s0 = scalar_lea.vmem %s97_s29, 64  ;;  %p3475_p10 = scmp.lt.s32.totalorder %s97_s29, %s97_s29 }
  0x71   :  { %p3471_p9 = scmp.ne.s32.totalorder %s97_s29, %s3470_s0  ;;  %p3476_p11 = scmp.lt.s32.totalorder %s3470_s0, %s3470_s0 }
  0x73   :  { %p3477_p12 = por %p3476_p11, %p3475_p10 }
  0x75   :  { %p3478_p13 = pnand %p3477_p12, %p3471_p9 }
  0x77   :  { %3481 = shalt.err (!%p3478_p13)
}
  0x78   :  { %s3593_s4 = smov 32   ;;  %s3594_s30 = smov 2  }
  0x79   :  { %102 = dma.hbm_to_vmem [thread:$0]  %s4299_s6, 64, %s97_s29, [#allocation14], %s3593_s4, %s3593_s4, %s3594_s30  }
  0x7a   :  { %s3595_s1 = smov [#allocation16]   ;;  %s3482_s22 = scalar_lea.hbm %s4300_s7, 64 }
  0x7b   :  { %s108_s14 = sshll.u32 %s3595_s1, 4  ;;  %p3483_p0 = scmp.ne.s32.totalorder %s4300_s7, %s3482_s22  ;;  %s109_s14 = int_to_ptr.vmem [resolvable:$true] %s108_s14 }
  0x7c   :  { %p3486_p1 = scmp.lt.u32.totalorder %s3482_s22, %s4300_s7 }
  0x7e   :  { %p3488_p2 = pnand %p3486_p1, %p3483_p0 }
  0x80   :  { %3491 = shalt.err (!%p3488_p2)
}
  0x81   :  { %s3492_s27 = scalar_lea.vmem %s109_s14, 64  ;;  %p3497_p4 = scmp.lt.s32.totalorder %s109_s14, %s109_s14 }
  0x82   :  { %p3493_p3 = scmp.ne.s32.totalorder %s109_s14, %s3492_s27  ;;  %p3498_p5 = scmp.lt.s32.totalorder %s3492_s27, %s3492_s27 }
  0x84   :  { %p3499_p6 = por %p3498_p5, %p3497_p4 }
  0x86   :  { %p3500_p7 = pnand %p3499_p6, %p3493_p3 }
  0x88   :  { %3503 = shalt.err (!%p3500_p7)
}
  0x89   :  { %114 = dma.hbm_to_vmem [thread:$0]  %s4300_s7, 64, %s109_s14, [#allocation17], %s3593_s4, %s3593_s4, %s3594_s30  }
  0x8a   :  { %3570 = dma.done.wait [#allocation5], 256  }
  0x8b   :  { %3571 = vsyncadd [#allocation5], 4294967040 }
  0x8c   :  { %3572 = dma.done.wait [#allocation8], 1536  }
  0x8d   :  { %3573 = vsyncadd [#allocation8], 4294965760 }
  0x8e   :  { %3574 = dma.done.wait [#allocation11], 528  }
  0x8f   :  { %3575 = vsyncadd [#allocation11], 4294966768 }
  0x90   :  { %3576 = dma.done.wait [#allocation14], 80  }
  0x91   :  { %3577 = vsyncadd [#allocation14], 4294967216 }
  0x92   :  { %3578 = dma.done.wait [#allocation17], 64  }
  0x93   :  { %3579 = vsyncadd [#allocation17], 4294967232  ;;  %v3596_v0 = vmov 0.0|0.0   ;;  %vm3597_vm0 = vmmov 0   ;;  %v3598_v1 = vmov 0.0   ;;  %vm147_vm1 = vcmask 254976  }
  0x94   :  { %2962 = vmatprep.subr.bf16.mxu0 %v3596_v0  ;;  %2719 = vmatprep.mubr.msk.f32.mxu0 %vm3597_vm0, %v3598_v1  ;;  %v155_v2 = vld [vmem:[#allocation7] sm:$0xff]  ;;  %v156_v3 = vld [vmem:[#allocation7 + $0x8] sm:$0xff]  ;;  %v157_v4 = vld [vmem:[#allocation7 + $0x10] sm:$0xff]  ;;  %vm186_vm2 = vcmask 261120   ;;  %s3599_s7 = smov 64   ;;  %vm325_vm3 = vcmask 1041409  }
  0x95   :  { %2968 = vmatprep.subr.bf16.mxu1 %v3596_v0  ;;  %2738 = vmatprep.mubr.msk.f32.mxu1 %vm3597_vm0, %v3598_v1  ;;  %v3802_v5 = vpack.c.bf16 %v156_v3, %v155_v2  ;;  %v158_v6 = vld [vmem:[#allocation7 + $0x18] sm:$0xff]  ;;  %v145_v7 = vld [vmem:[#allocation15] sm:$0x3]  ;;  %v151_v8 = vld [vmem:[#allocation16] sm:$0x3]  ;;  %vm335_vm4 = vcmask 523264  }
  0x96   :  { %148 = vst.msk [vmem:[#allocation2] sm:$0x3] %vm147_vm1, %v145_v7  ;;  %153 = vst.msk [vmem:[#allocation3] sm:$0x3] %vm147_vm1, %v151_v8  ;;  %v3807_v9 = vpack.c.bf16 %v158_v6, %v157_v4  ;;  %v185_v13 = vld [vmem:[#allocation4 + $0x8] sm:$0x1] }
  0x97   :  { %2964 = vmatpush3.bf16.msra.mxu0 %v3802_v5  ;;  %v184_v17 = vld [vmem:[#allocation4] sm:$0x1]  ;;  %v146_v36 = vld [vmem:[#allocation15 + $0x2] sm:$0x3]  ;;  %v160_v44 = vld [vmem:[#allocation9 + $0x8] sm:$0xff]  ;;  %vm2345_vm5 = vcmask 1040384  }
  0x98   :  { %2965 = vmatprep.subr.bf16.mxu0 %v3596_v0  ;;  %149 = vst.msk [vmem:[#allocation2 + $0x2] sm:$0x3] %vm147_vm1, %v146_v36  ;;  %v159_v43 = vld [vmem:[#allocation9] sm:$0xff]  ;;  %v161_v45 = vld [vmem:[#allocation9 + $0x10] sm:$0xff]  ;;  %v162_v47 = vld [vmem:[#allocation9 + $0x18] sm:$0xff]  ;;  %vm2348_vm6 = vcmask 1041408  }
  0x99   :  { %v3832_v46 = vpack.c.bf16 %v160_v44, %v159_v43  ;;  %v3835_v48 = vpack.c.bf16 %v162_v47, %v161_v45  ;;  %v163_v49 = vld [vmem:[#allocation9 + $0x20] sm:$0xff]  ;;  %v164_v50 = vld [vmem:[#allocation9 + $0x28] sm:$0xff]  ;;  %v165_v53 = vld [vmem:[#allocation9 + $0x30] sm:$0xff]  ;;  %vm2351_vm7 = vcmask 1042432   ;;  %vm2354_vm8 = vcmask 1043456   ;;  %s3601_s29 = smov 96  }
  0x9a   :  { %v3840_v52 = vpack.c.bf16 %v164_v50, %v163_v49  ;;  %v166_v54 = vld [vmem:[#allocation9 + $0x38] sm:$0xff]  ;;  %v437_v6 = vld [vmem:[#allocation4 + $0x1] sm:$0x1]  ;;  %vm2357_vm9 = vcmask 1044480   ;;  %vm2360_vm10 = vcmask 1045504   ;;  %vm2363_vm11 = vcmask 1046528  }
  0x9b   :  { %2967 = vmatpush3.bf16.msra.mxu0 %v3807_v9  ;;  %2970 = vmatpush3.bf16.msra.mxu1 %v3832_v46  ;;  %v3845_v57 = vpack.c.bf16 %v166_v54, %v165_v53  ;;  %v438_v7 = vld [vmem:[#allocation4 + $0x9] sm:$0x1]  ;;  %s3602_s11 = smov [#allocation19]  }
  0x9c   :  { %2980 = vmatprep.subr.bf16.mxu0 %v3596_v0  ;;  %2971 = vmatprep.subr.bf16.mxu1 %v3596_v0  ;;  %s2512_s12 = sshll.u32 %s3602_s11, 4  ;;  %s2513_s12 = int_to_ptr.vmem [resolvable:$true] %s2512_s12 }
  0x9d   :  { %v178_v10 = vld [vmem:[#allocation2] sm:$0x3]  ;;  %v181_v11 = vld [vmem:[#allocation3] sm:$0x3]  ;;  %s3504_s3 = scalar_lea.vmem %s2513_s12, 64  ;;  %p3509_p9 = scmp.lt.s32.totalorder %s2513_s12, %s2513_s12 }
  0x9e   :  { %2720 = vmatmul.mubr.msk.f32.vlgmr.msra.gmra.mrb[0].mxu0 %vm186_vm2, %v178_v10  ;;  %v281_v12 = vrot.slane %v181_v11, 1  ;;  %p3505_p8 = scmp.ne.s32.totalorder %s2513_s12, %s3504_s3  ;;  %p3510_p10 = scmp.lt.s32.totalorder %s3504_s3, %s3504_s3 }
  0x9f   :  { %2982 = vmatpush3.bf16.msra.mxu0 %v3802_v5  ;;  %2749 = vmatprep.mubr.msk.f32.mxu0 %vm3597_vm0, %v3598_v1  ;;  %v180_v56 = vld [vmem:[#allocation2 + $0x2] sm:$0x3] }
  0xa0   :  { %284 = vrot.lane.b32.xlu1 %v281_v12, %s3593_s4  ;;  %2983 = vmatprep.subr.bf16.mxu0 %v3596_v0  ;;  %p3511_p11 = por %p3510_p10, %p3509_p9 }
  0xa1   :  { %2973 = vmatpush3.bf16.msra.mxu1 %v3835_v48 }
  0xa2   :  { %2974 = vmatprep.subr.bf16.mxu1 %v3596_v0  ;;  %p3512_p12 = pnand %p3511_p11, %p3505_p8 }
  0xa3   :  { %2985 = vmatpush3.bf16.msra.mxu0 %v3807_v9 }
  0xa4   :  { %282 = vrot.lane.b32.xlu1 %v181_v11, %s3593_s4  ;;  %2986 = vmatprep.subr.bf16.mxu0 %v3596_v0 }
  0xa5   :  { %2976 = vmatpush3.bf16.msra.mxu1 %v3840_v52 }
  0xa6   :  { %2977 = vmatprep.subr.bf16.mxu1 %v3596_v0 }
  0xa9   :  { %2979 = vmatpush3.bf16.msra.mxu1 %v3845_v57 }
  0xaa   :  { %2998 = vmatprep.subr.bf16.mxu1 %v3596_v0 }
 0x112   :  { %v285_v34 = vpop.permute.xlu1 %284 }
 0x116   :  { %v283_v37 = vpop.permute.xlu1 %282 }
 0x171   :  { %v256_v14 = vpop.f32.mrb[0].mxu0 }
 0x172   :  { %v261_v15 = vrot.slane %v256_v14, 1  ;;  %v2721_v16 = vpop.f32.mrb[1].mxu0  ;;  %v264_v19 = vadd.f32 %v256_v14, %v184_v17  ;;  %v3872_v17 = vld [vmem:[#allocation10] ss:$0 sm:$0xff] }
 0x174   :  { %v265_v18 = vadd.f32 %v261_v15, %v185_v13  ;;  %v2549_v23 = vmul.f32 -1.442695, %v264_v19  ;;  %v152_v15 = vld [vmem:[#allocation16 + $0x2] sm:$0x3] }
 0x175   :  { %154 = vst.msk [vmem:[#allocation3 + $0x2] sm:$0x3] %vm147_vm1, %v152_v15 }
 0x176   :  { %3135 = vtanh.f32 %v265_v18  ;;  %v2550_v22 = vmul.f32 -1.442695, %v265_v18 }
 0x177   :  { %3137 = vtanh.f32 %v264_v19 }
 0x178   :  { %3139 = vpow2.f32 %v2550_v22 }
 0x179   :  { %3141 = vpow2.f32 %v2549_v23 }
 0x180   :  { %v3136_v20 = vpop.eup %3135 }
 0x181   :  { %294 = vrot.lane.b32.xlu0 %v3136_v20, %s3599_s7  ;;  %v3138_v21 = vpop.eup %3137 }
 0x182   :  { %v3140_v24 = vpop.eup %3139 }
 0x183   :  { %v273_v25 = vadd.f32 1.0, %v3140_v24  ;;  %v3142_v26 = vpop.eup %3141 }
 0x184   :  { %v272_v27 = vadd.f32 1.0, %v3142_v26 }
 0x185   :  { %292 = vrot.lane.b32.xlu0 %v3138_v21, %s3599_s7  ;;  %3143 = vrcp.f32 %v273_v25 }
 0x186   :  { %3145 = vrcp.f32 %v272_v27 }
 0x18f   :  { %v3144_v28 = vpop.eup %3143 }
 0x190   :  { %v3146_v31 = vpop.eup %3145  ;;  %v289_v35 = vmul.f32 %v3144_v28, %v285_v34 }
 0x191   :  { %v288_v40 = vmul.f32 %v3146_v31, %v283_v37 }
 0x1f3   :  { %v295_v29 = vpop.permute.xlu0 %294 }
 0x1f4   :  { %v299_v30 = vmul.f32 %v3144_v28, %v295_v29 }
 0x1f6   :  { %304 = vrot.lane.b32.xlu0 %v299_v30, %s3593_s4 }
 0x1f7   :  { %v293_v32 = vpop.permute.xlu0 %292 }
 0x1f8   :  { %v298_v33 = vmul.f32 %v3146_v31, %v293_v32 }
 0x1fa   :  { %302 = vrot.lane.b32.xlu1 %v298_v33, %s3593_s4 }
 0x268   :  { %v305_v38 = vpop.permute.xlu0 %304 }
 0x269   :  { %v3826_v39 = vadd.f32 %v305_v38, %v289_v35 }
 0x26b   :  { %3147 = vtanh.f32 %v3826_v39 }
 0x26c   :  { %v303_v41 = vpop.permute.xlu1 %302 }
 0x26d   :  { %v3829_v42 = vadd.f32 %v303_v41, %v288_v40  ;;  %v183_v40 = vld [vmem:[#allocation3 + $0x2] sm:$0x3] }
 0x26f   :  { %3149 = vtanh.f32 %v3829_v42 }
 0x275   :  { %v3148_v51 = vpop.eup %3147 }
 0x276   :  { %316 = vrot.lane.b32.xlu0 %v3148_v51, %s3599_s7 }
 0x279   :  { %v3150_v55 = vpop.eup %3149 }
 0x27a   :  { %314 = vrot.lane.b32.xlu1 %v3150_v55, %s3599_s7 }
 0x27e   :  { %331 = vrot.lane.b32.xlu1 %v180_v56, %s3593_s4 }
 0x2e8   :  { %v317_v58 = vpop.permute.xlu0 %316 }
 0x2e9   :  { %v321_v59 = vmul.f32 %v3144_v28, %v317_v58 }
 0x2eb   :  { %v324_v61 = vrot.slane %v321_v59, 7 }
 0x2ec   :  { %v315_v60 = vpop.permute.xlu1 %314 }
 0x2ed   :  { %v320_v62 = vmul.f32 %v3146_v31, %v315_v60 }
 0x2ef   :  { %v326_v63 = vsel %vm325_vm3, %v324_v61, %v320_v62 }
 0x2f0   :  { %327 = vrot.lane.b32.xlu0 %v326_v63, %s3593_s4  ;;  %v332_v2 = vpop.permute.xlu1 %331 }
 0x362   :  { %v328_v3 = vpop.permute.xlu0 %327 }
 0x363   :  { %v334_v4 = vsel %vm186_vm2, %v328_v3, %v332_v2  ;;  %2750 = vmatmul.mubr.msk.f32.vlgmr.msra.gmra.mrb[2].mxu0 %vm186_vm2, %v328_v3 }
 0x364   :  { %2739 = vmatmul.mubr.msk.f32.vlgmr.msra.gmra.mrb[0].mxu1 %vm335_vm4, %v334_v4  ;;  %2988 = vmatpush3.bf16.msra.mxu0 %v3832_v46 }
 0x365   :  { %2989 = vmatprep.subr.bf16.mxu0 %v3596_v0  ;;  %3000 = vmatpush3.bf16.msra.mxu1 %v3802_v5 }
 0x366   :  { %3001 = vmatprep.subr.bf16.mxu1 %v3596_v0  ;;  %2779 = vmatprep.mubr.msk.f32.mxu1 %vm3597_vm0, %v3598_v1 }
 0x367   :  { %2768 = vmatprep.mubr.msk.f32.mxu0 %vm3597_vm0, %v3598_v1 }
 0x368   :  { %2991 = vmatpush3.bf16.msra.mxu0 %v3835_v48 }
 0x369   :  { %2992 = vmatprep.subr.bf16.mxu0 %v3596_v0  ;;  %3003 = vmatpush3.bf16.msra.mxu1 %v3807_v9 }
 0x36a   :  { %3004 = vmatprep.subr.bf16.mxu1 %v3596_v0 }
 0x36c   :  { %2994 = vmatpush3.bf16.msra.mxu0 %v3840_v52 }
 0x36d   :  { %2995 = vmatprep.subr.bf16.mxu0 %v3596_v0 }
 0x370   :  { %2997 = vmatpush3.bf16.msra.mxu0 %v3845_v57 }
 0x371   :  { %3016 = vmatprep.subr.bf16.mxu0 %v3596_v0 }
 0x436   :  { %v507_v8 = vpop.f32.mrb[2].mxu0 }
 0x437   :  { %v512_v10 = vrot.slane %v507_v8, 1  ;;  %v515_v11 = vadd.f32 %v507_v8, %v437_v6  ;;  %v405_v12 = vpop.f32.mrb[0].mxu1  ;;  %v2751_v13 = vpop.f32.mrb[3].mxu0  ;;  %v674_v8 = vld [vmem:[#allocation4 + $0x2] sm:$0x1] }
 0x438   :  { %v2740_v14 = vpop.f32.mrb[1].mxu1  ;;  %v406_v18 = vadd.f32 %v3872_v17, %v405_v12 }
 0x439   :  { %v516_v16 = vadd.f32 %v512_v10, %v438_v7  ;;  %3151 = vtanh.f32 %v515_v11  ;;  %v2554_v22 = vmul.f32 -1.442695, %v515_v11  ;;  %v675_v10 = vld [vmem:[#allocation4 + $0xa] sm:$0x1] }
 0x43a   :  { %v2552_v24 = vmul.f32 -1.442695, %v406_v18 }
 0x43b   :  { %3153 = vtanh.f32 %v516_v16  ;;  %v2555_v23 = vmul.f32 -1.442695, %v516_v16 }
 0x43c   :  { %3155 = vtanh.f32 %v406_v18 }
 0x43d   :  { %3157 = vpow2.f32 %v2554_v22 }
 0x43e   :  { %3159 = vpow2.f32 %v2555_v23 }
 0x43f   :  { %3161 = vpow2.f32 %v2552_v24 }
 0x443   :  { %v3152_v19 = vpop.eup %3151 }
 0x444   :  { %535 = vrot.lane.b32.xlu1 %v3152_v19, %s3599_s7 }
 0x445   :  { %v3154_v20 = vpop.eup %3153 }
 0x446   :  { %537 = vrot.lane.b32.xlu0 %v3154_v20, %s3599_s7  ;;  %v3156_v21 = vpop.eup %3155 }
 0x447   :  { %v3158_v25 = vpop.eup %3157 }
 0x448   :  { %v3160_v26 = vpop.eup %3159  ;;  %v523_v27 = vadd.f32 1.0, %v3158_v25 }
 0x449   :  { %v524_v28 = vadd.f32 1.0, %v3160_v26  ;;  %v3162_v29 = vpop.eup %3161 }
 0x44a   :  { %422 = vrot.lane.b32.xlu0 %v3156_v21, %s3599_s7  ;;  %3163 = vrcp.f32 %v523_v27  ;;  %v412_v30 = vadd.f32 1.0, %v3162_v29 }
 0x44b   :  { %3165 = vrcp.f32 %v524_v28 }
 0x44c   :  { %3167 = vrcp.f32 %v412_v30 }
 0x454   :  { %v3164_v31 = vpop.eup %3163 }
 0x455   :  { %v3166_v34 = vpop.eup %3165  ;;  %v531_v43 = vmul.f32 %v3164_v31, %v3829_v42 }
 0x456   :  { %v3168_v37 = vpop.eup %3167  ;;  %v532_v47 = vmul.f32 %v3166_v34, %v3826_v39 }
 0x4b6   :  { %v536_v32 = vpop.permute.xlu1 %535 }
 0x4b7   :  { %v541_v33 = vmul.f32 %v3164_v31, %v536_v32 }
 0x4b8   :  { %v538_v35 = vpop.permute.xlu0 %537 }
 0x4b9   :  { %545 = vrot.lane.b32.xlu0 %v541_v33, %s3593_s4  ;;  %v542_v36 = vmul.f32 %v3166_v34, %v538_v35 }
 0x4bb   :  { %547 = vrot.lane.b32.xlu1 %v542_v36, %s3593_s4 }
 0x4bc   :  { %v423_v38 = vpop.permute.xlu0 %422 }
 0x4bd   :  { %v425_v41 = vmul.f32 %v3168_v37, %v423_v38 }
 0x4bf   :  { %427 = vrot.lane.b32.xlu0 %v425_v41, %s3593_s4  ;;  %417 = vrot.lane.b32.xlu1 %v183_v40, %s3593_s4 }
 0x52b   :  { %v546_v44 = vpop.permute.xlu0 %545 }
 0x52c   :  { %v3884_v45 = vadd.f32 %v546_v44, %v531_v43 }
 0x52d   :  { %v548_v49 = vpop.permute.xlu1 %547 }
 0x52e   :  { %3169 = vtanh.f32 %v3884_v45  ;;  %v3888_v50 = vadd.f32 %v548_v49, %v532_v47 }
 0x530   :  { %3171 = vtanh.f32 %v3888_v50 }
 0x531   :  { %v418_v51 = vpop.permute.xlu1 %417  ;;  %v428_v54 = vpop.permute.xlu0 %427 }
 0x532   :  { %v420_v53 = vmul.f32 %v3168_v37, %v418_v51 }
 0x534   :  { %v3891_v55 = vadd.f32 %v428_v54, %v420_v53 }
 0x536   :  { %3173 = vtanh.f32 %v3891_v55 }
 0x538   :  { %v3170_v42 = vpop.eup %3169 }
 0x539   :  { %557 = vrot.lane.b32.xlu0 %v3170_v42, %s3599_s7 }
 0x53a   :  { %v3172_v56 = vpop.eup %3171 }
 0x53b   :  { %559 = vrot.lane.b32.xlu1 %v3172_v56, %s3599_s7 }
 0x540   :  { %v3174_v39 = vpop.eup %3173 }
 0x541   :  { %433 = vrot.lane.b32.xlu1 %v3174_v39, %s3599_s7 }
 0x5ab   :  { %v558_v58 = vpop.permute.xlu0 %557 }
 0x5ac   :  { %v563_v61 = vmul.f32 %v3164_v31, %v558_v58  ;;  %v3600_v58 = vmov 1966171168  }
 0x5ad   :  { %v560_v59 = vpop.permute.xlu1 %559 }
 0x5ae   :  { %v564_v60 = vmul.f32 %v3166_v34, %v560_v59  ;;  %v2097_v59 = vunpack.c.l.s4 %v3600_v58 }
 0x5b0   :  { %v567_v62 = vrot.slane %v564_v60, 7  ;;  %v2099_v60 = vlaneseq }
 0x5b2   :  { %v568_v63 = vsel %vm325_vm3, %v567_v62, %v563_v61  ;;  %v2098_v61 = vunpack.c.0.s8 %v2097_v59  ;;  %v2100_v62 = vshrl.u32 %v2099_v60, 7 }
 0x5b3   :  { %569 = vrot.lane.b32.xlu0 %v568_v63, %s3593_s4  ;;  %v434_v2 = vpop.permute.xlu1 %433 }
 0x5b4   :  { %v3899_v3 = vmul.f32 %v3168_v37, %v434_v2  ;;  %v3944_v2 = vsub.s32 %v2098_v61, %v2100_v62 }
 0x5b6   :  { %573 = vrot.lane.b32.xlu1 %v3899_v3, %s3599_s7 }
 0x625   :  { %v570_v4 = vpop.permute.xlu0 %569 }
 0x626   :  { %2780 = vmatmul.mubr.msk.f32.vlgmr.msra.gmra.mrb[2].mxu1 %vm186_vm2, %v570_v4 }
 0x627   :  { %3006 = vmatpush3.bf16.msra.mxu1 %v3832_v46  ;;  %2798 = vmatprep.mubr.msk.f32.mxu1 %vm3597_vm0, %v3598_v1 }
 0x628   :  { %v574_v6 = vpop.permute.xlu1 %573  ;;  %3007 = vmatprep.subr.bf16.mxu1 %v3596_v0 }
 0x629   :  { %v576_v7 = vsel %vm186_vm2, %v570_v4, %v574_v6 }
 0x62a   :  { %2769 = vmatmul.mubr.msk.f32.vlgmr.msra.gmra.mrb[4].mxu0 %vm335_vm4, %v576_v7 }
 0x62b   :  { %3009 = vmatpush3.bf16.msra.mxu1 %v3835_v48  ;;  %3018 = vmatpush3.bf16.msra.mxu0 %v3802_v5 }
 0x62c   :  { %3010 = vmatprep.subr.bf16.mxu1 %v3596_v0  ;;  %3019 = vmatprep.subr.bf16.mxu0 %v3596_v0 }
 0x62d   :  { %2809 = vmatprep.mubr.msk.f32.mxu0 %vm3597_vm0, %v3598_v1 }
 0x62f   :  { %3012 = vmatpush3.bf16.msra.mxu1 %v3840_v52  ;;  %3021 = vmatpush3.bf16.msra.mxu0 %v3807_v9 }
 0x630   :  { %3013 = vmatprep.subr.bf16.mxu1 %v3596_v0  ;;  %3022 = vmatprep.subr.bf16.mxu0 %v3596_v0 }
 0x633   :  { %3015 = vmatpush3.bf16.msra.mxu1 %v3845_v57 }
 0x634   :  { %3034 = vmatprep.subr.bf16.mxu1 %v3596_v0 }
 0x6f9   :  { %v744_v11 = vpop.f32.mrb[2].mxu1 }
 0x6fa   :  { %v749_v12 = vrot.slane %v744_v11, 1  ;;  %v752_v13 = vadd.f32 %v744_v11, %v674_v8  ;;  %v2781_v14 = vpop.f32.mrb[3].mxu1 }
 0x6fc   :  { %v753_v15 = vadd.f32 %v749_v12, %v675_v10  ;;  %3175 = vtanh.f32 %v752_v13  ;;  %v2559_v23 = vmul.f32 -1.442695, %v752_v13  ;;  %v2102_v10 = vrot.slane %v3899_v3, %v3944_v2 }
 0x6fd   :  { %v646_v16 = vpop.f32.mrb[4].mxu0  ;;  %v3950_v13 = vsub.s32 0, %v2100_v62 }
 0x6fe   :  { %v2770_v18 = vpop.f32.mrb[5].mxu0  ;;  %3177 = vtanh.f32 %v753_v15  ;;  %v647_v19 = vadd.f32 %v3872_v17, %v646_v16  ;;  %v2560_v24 = vmul.f32 -1.442695, %v753_v15  ;;  %v2103_v15 = vcombine.high %v2102_v10, %v2102_v10 }
 0x700   :  { %3179 = vtanh.f32 %v647_v19  ;;  %v2557_v25 = vmul.f32 -1.442695, %v647_v19  ;;  %v2110_v19 = vrot.slane %v2102_v10, %v3944_v2 }
 0x701   :  { %3181 = vpow2.f32 %v2559_v23 }
 0x702   :  { %3183 = vpow2.f32 %v2560_v24 }
 0x703   :  { %3185 = vpow2.f32 %v2557_v25 }
 0x706   :  { %v3176_v20 = vpop.eup %3175 }
 0x707   :  { %772 = vrot.lane.b32.xlu1 %v3176_v20, %s3599_s7 }
 0x708   :  { %v3178_v21 = vpop.eup %3177 }
 0x709   :  { %774 = vrot.lane.b32.xlu0 %v3178_v21, %s3599_s7  ;;  %v2117_v21 = vrot.slane %v2103_v15, %v3944_v2 }
 0x70a   :  { %v3180_v22 = vpop.eup %3179 }
 0x70b   :  { %v3182_v26 = vpop.eup %3181 }
 0x70c   :  { %v3184_v27 = vpop.eup %3183  ;;  %v760_v28 = vadd.f32 1.0, %v3182_v26 }
 0x70d   :  { %659 = vrot.lane.b32.xlu0 %v3180_v22, %s3599_s7  ;;  %v761_v29 = vadd.f32 1.0, %v3184_v27  ;;  %v3186_v30 = vpop.eup %3185 }
 0x70e   :  { %3187 = vrcp.f32 %v760_v28  ;;  %v653_v31 = vadd.f32 1.0, %v3186_v30  ;;  %v911_v28 = vld [vmem:[#allocation4 + $0x3] sm:$0x1] }
 0x70f   :  { %3189 = vrcp.f32 %v761_v29  ;;  %v912_v29 = vld [vmem:[#allocation4 + $0xb] sm:$0x1] }
 0x710   :  { %3191 = vrcp.f32 %v653_v31 }
 0x718   :  { %v3188_v32 = vpop.eup %3187 }
 0x719   :  { %v3190_v35 = vpop.eup %3189  ;;  %v768_v43 = vmul.f32 %v3188_v32, %v3884_v45 }
 0x71a   :  { %v3192_v38 = vpop.eup %3191  ;;  %v769_v49 = vmul.f32 %v3190_v35, %v3888_v50 }
 0x71b   :  { %v657_v54 = vmul.f32 %v3192_v38, %v3891_v55 }
 0x779   :  { %v773_v33 = vpop.permute.xlu1 %772 }
 0x77a   :  { %v778_v34 = vmul.f32 %v3188_v32, %v773_v33 }
 0x77b   :  { %v775_v36 = vpop.permute.xlu0 %774 }
 0x77c   :  { %782 = vrot.lane.b32.xlu0 %v778_v34, %s3593_s4  ;;  %v779_v37 = vmul.f32 %v3190_v35, %v775_v36 }
 0x77e   :  { %784 = vrot.lane.b32.xlu1 %v779_v37, %s3593_s4 }
 0x77f   :  { %v660_v40 = vpop.permute.xlu0 %659 }
 0x780   :  { %v662_v41 = vmul.f32 %v3192_v38, %v660_v40 }
 0x782   :  { %664 = vrot.lane.b32.xlu1 %v662_v41, %s3593_s4 }
 0x7ee   :  { %v783_v44 = vpop.permute.xlu0 %782 }
 0x7ef   :  { %v3930_v47 = vadd.f32 %v783_v44, %v768_v43 }
 0x7f0   :  { %v785_v51 = vpop.permute.xlu1 %784 }
 0x7f1   :  { %3193 = vtanh.f32 %v3930_v47  ;;  %v3934_v53 = vadd.f32 %v785_v51, %v769_v49 }
 0x7f3   :  { %3195 = vtanh.f32 %v3934_v53 }
 0x7f4   :  { %v665_v42 = vpop.permute.xlu1 %664 }
 0x7f5   :  { %v3938_v56 = vadd.f32 %v665_v42, %v657_v54 }
 0x7f7   :  { %3197 = vtanh.f32 %v3938_v56 }
 0x7fb   :  { %v3194_v45 = vpop.eup %3193 }
 0x7fc   :  { %794 = vrot.lane.b32.xlu1 %v3194_v45, %s3599_s7 }
 0x7fd   :  { %v3196_v39 = vpop.eup %3195 }
 0x7fe   :  { %796 = vrot.lane.b32.xlu0 %v3196_v39, %s3599_s7 }
 0x801   :  { %v3198_v50 = vpop.eup %3197 }
 0x802   :  { %670 = vrot.lane.b32.xlu0 %v3198_v50, %s3599_s7 }
 0x86e   :  { %v795_v55 = vpop.permute.xlu1 %794 }
 0x86f   :  { %v800_v6 = vmul.f32 %v3188_v32, %v795_v55 }
 0x870   :  { %v797_v63 = vpop.permute.xlu0 %796 }
 0x871   :  { %v801_v4 = vmul.f32 %v3190_v35, %v797_v63 }
 0x873   :  { %v804_v7 = vrot.slane %v801_v4, 7 }
 0x874   :  { %v671_v8 = vpop.permute.xlu0 %670 }
 0x875   :  { %v673_v11 = vmul.f32 %v3192_v38, %v671_v8  ;;  %v805_v12 = vsel %vm325_vm3, %v804_v7, %v800_v6 }
 0x876   :  { %806 = vrot.lane.b32.xlu1 %v805_v12, %s3593_s4 }
 0x877   :  { %v2126_v14 = vrot.slane %v673_v11, %v3944_v2  ;;  %810 = vrot.lane.b32.xlu0 %v673_v11, %s3599_s7 }
 0x879   :  { %v2127_v16 = vcombine.high %v2126_v14, %v2126_v14  ;;  %v2134_v18 = vrot.slane %v2126_v14, %v3944_v2 }
 0x87b   :  { %v2141_v3 = vrot.slane %v2127_v16, %v3944_v2  ;;  %v2278_v20 = vrot.slane %v2134_v18, %v3950_v13 }
 0x87d   :  { %v2282_v22 = vrot.slane %v2141_v3, %v3950_v13  ;;  %v3960_v23 = vsel %vm2345_vm5, %v2110_v19, %v2278_v20 }
 0x87f   :  { %v3962_v24 = vsel %vm2345_vm5, %v2117_v21, %v2282_v22 }
 0x8e8   :  { %v807_v25 = vpop.permute.xlu1 %806 }
 0x8e9   :  { %2810 = vmatmul.mubr.msk.f32.vlgmr.msra.gmra.mrb[6].mxu0 %vm186_vm2, %v807_v25  ;;  %v811_v26 = vpop.permute.xlu0 %810 }
 0x8ea   :  { %v813_v27 = vsel %vm186_vm2, %v807_v25, %v811_v26  ;;  %3024 = vmatpush3.bf16.msra.mxu0 %v3832_v46  ;;  %2828 = vmatprep.mubr.msk.f32.mxu0 %vm3597_vm0, %v3598_v1 }
 0x8eb   :  { %2799 = vmatmul.mubr.msk.f32.vlgmr.msra.gmra.mrb[4].mxu1 %vm335_vm4, %v813_v27  ;;  %3025 = vmatprep.subr.bf16.mxu0 %v3596_v0 }
 0x8ec   :  { %3036 = vmatpush3.bf16.msra.mxu1 %v3802_v5  ;;  %2839 = vmatprep.mubr.msk.f32.mxu1 %vm3597_vm0, %v3598_v1 }
 0x8ed   :  { %3037 = vmatprep.subr.bf16.mxu1 %v3596_v0 }
 0x8ee   :  { %3027 = vmatpush3.bf16.msra.mxu0 %v3835_v48 }
 0x8ef   :  { %3028 = vmatprep.subr.bf16.mxu0 %v3596_v0 }
 0x8f0   :  { %3039 = vmatpush3.bf16.msra.mxu1 %v3807_v9 }
 0x8f1   :  { %3040 = vmatprep.subr.bf16.mxu1 %v3596_v0 }
 0x8f2   :  { %3030 = vmatpush3.bf16.msra.mxu0 %v3840_v52 }
 0x8f3   :  { %3031 = vmatprep.subr.bf16.mxu0 %v3596_v0 }
 0x8f6   :  { %3033 = vmatpush3.bf16.msra.mxu0 %v3845_v57 }
 0x8f7   :  { %3052 = vmatprep.subr.bf16.mxu0 %v3596_v0 }
 0x9bc   :  { %v981_v30 = vpop.f32.mrb[6].mxu0 }
 0x9bd   :  { %v986_v31 = vrot.slane %v981_v30, 1  ;;  %v989_v32 = vadd.f32 %v981_v30, %v911_v28  ;;  %v2811_v33 = vpop.f32.mrb[7].mxu0 }
 0x9be   :  { %v883_v34 = vpop.f32.mrb[4].mxu1 }
 0x9bf   :  { %v990_v35 = vadd.f32 %v986_v31, %v912_v29  ;;  %3199 = vtanh.f32 %v989_v32  ;;  %v2800_v36 = vpop.f32.mrb[5].mxu1  ;;  %v884_v37 = vadd.f32 %v3872_v17, %v883_v34  ;;  %v2564_v43 = vmul.f32 -1.442695, %v989_v32 }
 0x9c1   :  { %3201 = vtanh.f32 %v990_v35  ;;  %v2565_v44 = vmul.f32 -1.442695, %v990_v35  ;;  %v2562_v49 = vmul.f32 -1.442695, %v884_v37 }
 0x9c2   :  { %3203 = vtanh.f32 %v884_v37 }
 0x9c3   :  { %3205 = vpow2.f32 %v2564_v43 }
 0x9c4   :  { %3207 = vpow2.f32 %v2565_v44 }
 0x9c5   :  { %3209 = vpow2.f32 %v2562_v49 }
 0x9c9   :  { %v3200_v38 = vpop.eup %3199 }
 0x9ca   :  { %1009 = vrot.lane.b32.xlu0 %v3200_v38, %s3599_s7 }
 0x9cb   :  { %v3202_v40 = vpop.eup %3201 }
 0x9cc   :  { %1011 = vrot.lane.b32.xlu1 %v3202_v40, %s3599_s7  ;;  %v3204_v41 = vpop.eup %3203 }
 0x9cd   :  { %v3206_v51 = vpop.eup %3205 }
 0x9ce   :  { %v3208_v54 = vpop.eup %3207  ;;  %v997_v42 = vadd.f32 1.0, %v3206_v51 }
 0x9cf   :  { %v998_v45 = vadd.f32 1.0, %v3208_v54  ;;  %v3210_v39 = vpop.eup %3209 }
 0x9d0   :  { %896 = vrot.lane.b32.xlu1 %v3204_v41, %s3599_s7  ;;  %3211 = vrcp.f32 %v997_v42  ;;  %v890_v50 = vadd.f32 1.0, %v3210_v39 }
 0x9d1   :  { %3213 = vrcp.f32 %v998_v45 }
 0x9d2   :  { %3215 = vrcp.f32 %v890_v50 }
 0x9da   :  { %v3212_v58 = vpop.eup %3211 }
 0x9db   :  { %v3214_v61 = vpop.eup %3213  ;;  %v1005_v7 = vmul.f32 %v3212_v58, %v3930_v47 }
 0x9dc   :  { %v3216_v63 = vpop.eup %3215  ;;  %v1006_v11 = vmul.f32 %v3214_v61, %v3934_v53 }
 0x9dd   :  { %v894_v15 = vmul.f32 %v3216_v63, %v3938_v56 }
 0xa3c   :  { %v1010_v59 = vpop.permute.xlu0 %1009 }
 0xa3d   :  { %v1015_v60 = vmul.f32 %v3212_v58, %v1010_v59 }
 0xa3e   :  { %v1012_v62 = vpop.permute.xlu1 %1011 }
 0xa3f   :  { %1019 = vrot.lane.b32.xlu1 %v1015_v60, %s3593_s4  ;;  %v1016_v55 = vmul.f32 %v3214_v61, %v1012_v62 }
 0xa41   :  { %1021 = vrot.lane.b32.xlu0 %v1016_v55, %s3593_s4 }
 0xa42   :  { %v897_v4 = vpop.permute.xlu1 %896 }
 0xa43   :  { %v899_v6 = vmul.f32 %v3216_v63, %v897_v4 }
 0xa45   :  { %901 = vrot.lane.b32.xlu0 %v899_v6, %s3593_s4 }
 0xab1   :  { %v1020_v8 = vpop.permute.xlu1 %1019 }
 0xab2   :  { %v3991_v10 = vadd.f32 %v1020_v8, %v1005_v7 }
 0xab3   :  { %v1022_v12 = vpop.permute.xlu0 %1021 }
 0xab4   :  { %3217 = vtanh.f32 %v3991_v10  ;;  %v3995_v14 = vadd.f32 %v1022_v12, %v1006_v11 }
 0xab6   :  { %3219 = vtanh.f32 %v3995_v14 }
 0xab7   :  { %v902_v16 = vpop.permute.xlu0 %901 }
 0xab8   :  { %v3999_v18 = vadd.f32 %v902_v16, %v894_v15 }
 0xaba   :  { %3221 = vtanh.f32 %v3999_v18 }
 0xabe   :  { %v3218_v47 = vpop.eup %3217 }
 0xabf   :  { %1031 = vrot.lane.b32.xlu0 %v3218_v47, %s3599_s7 }
 0xac0   :  { %v3220_v19 = vpop.eup %3219 }
 0xac1   :  { %1033 = vrot.lane.b32.xlu1 %v3220_v19, %s3599_s7 }
 0xac4   :  { %v3222_v53 = vpop.eup %3221 }
 0xac5   :  { %907 = vrot.lane.b32.xlu1 %v3222_v53, %s3599_s7 }
 0xb31   :  { %v1032_v3 = vpop.permute.xlu0 %1031 }
 0xb32   :  { %v1037_v22 = vmul.f32 %v3212_v58, %v1032_v3 }
 0xb33   :  { %v1034_v20 = vpop.permute.xlu1 %1033 }
 0xb34   :  { %v1038_v21 = vmul.f32 %v3214_v61, %v1034_v20 }
 0xb36   :  { %v1041_v25 = vrot.slane %v1038_v21, 7 }
 0xb37   :  { %v908_v56 = vpop.permute.xlu1 %907 }
 0xb38   :  { %v910_v26 = vmul.f32 %v3216_v63, %v908_v56  ;;  %v1042_v27 = vsel %vm325_vm3, %v1041_v25, %v1037_v22 }
 0xb39   :  { %1043 = vrot.lane.b32.xlu0 %v1042_v27, %s3593_s4 }
 0xb3a   :  { %v2148_v28 = vrot.slane %v910_v26, %v3944_v2  ;;  %1047 = vrot.lane.b32.xlu1 %v910_v26, %s3599_s7 }
 0xb3c   :  { %v2149_v29 = vcombine.high %v2148_v28, %v2148_v28  ;;  %v2156_v30 = vrot.slane %v2148_v28, %v3944_v2 }
 0xb3e   :  { %v2163_v31 = vrot.slane %v2149_v29, %v3944_v2  ;;  %v2288_v32 = vrot.slane %v2156_v30, %v3950_v13 }
 0xb40   :  { %v2292_v33 = vrot.slane %v2163_v31, %v3950_v13  ;;  %v4014_v34 = vsel %vm2348_vm6, %v3960_v23, %v2288_v32  ;;  %v1148_v23 = vld [vmem:[#allocation4 + $0x4] sm:$0x1] }
 0xb42   :  { %v4017_v35 = vsel %vm2348_vm6, %v3962_v24, %v2292_v33  ;;  %v1149_v24 = vld [vmem:[#allocation4 + $0xc] sm:$0x1] }
 0xbab   :  { %v1044_v36 = vpop.permute.xlu0 %1043 }
 0xbac   :  { %2840 = vmatmul.mubr.msk.f32.vlgmr.msra.gmra.mrb[6].mxu1 %vm186_vm2, %v1044_v36  ;;  %v1048_v37 = vpop.permute.xlu1 %1047 }
 0xbad   :  { %v1050_v38 = vsel %vm186_vm2, %v1044_v36, %v1048_v37  ;;  %3042 = vmatpush3.bf16.msra.mxu1 %v3832_v46  ;;  %2858 = vmatprep.mubr.msk.f32.mxu1 %vm3597_vm0, %v3598_v1 }
 0xbae   :  { %2829 = vmatmul.mubr.msk.f32.vlgmr.msra.gmra.mrb[8].mxu0 %vm335_vm4, %v1050_v38  ;;  %3043 = vmatprep.subr.bf16.mxu1 %v3596_v0 }
 0xbaf   :  { %3054 = vmatpush3.bf16.msra.mxu0 %v3802_v5  ;;  %2869 = vmatprep.mubr.msk.f32.mxu0 %vm3597_vm0, %v3598_v1 }
 0xbb0   :  { %3055 = vmatprep.subr.bf16.mxu0 %v3596_v0 }
 0xbb1   :  { %3045 = vmatpush3.bf16.msra.mxu1 %v3835_v48 }
 0xbb2   :  { %3046 = vmatprep.subr.bf16.mxu1 %v3596_v0 }
 0xbb3   :  { %3057 = vmatpush3.bf16.msra.mxu0 %v3807_v9 }
 0xbb4   :  { %3058 = vmatprep.subr.bf16.mxu0 %v3596_v0 }
 0xbb5   :  { %3048 = vmatpush3.bf16.msra.mxu1 %v3840_v52 }
 0xbb6   :  { %3049 = vmatprep.subr.bf16.mxu1 %v3596_v0 }
 0xbb9   :  { %3051 = vmatpush3.bf16.msra.mxu1 %v3845_v57 }
 0xbba   :  { %3070 = vmatprep.subr.bf16.mxu1 %v3596_v0 }
 0xc7f   :  { %v1218_v40 = vpop.f32.mrb[6].mxu1 }
 0xc80   :  { %v1223_v41 = vrot.slane %v1218_v40, 1  ;;  %v1226_v43 = vadd.f32 %v1218_v40, %v1148_v23  ;;  %v2841_v44 = vpop.f32.mrb[7].mxu1 }
 0xc81   :  { %v1120_v49 = vpop.f32.mrb[8].mxu0 }
 0xc82   :  { %v1227_v51 = vadd.f32 %v1223_v41, %v1149_v24  ;;  %3223 = vtanh.f32 %v1226_v43  ;;  %v2830_v54 = vpop.f32.mrb[9].mxu0  ;;  %v1121_v42 = vadd.f32 %v3872_v17, %v1120_v49  ;;  %v2569_v58 = vmul.f32 -1.442695, %v1226_v43 }
 0xc84   :  { %3225 = vtanh.f32 %v1227_v51  ;;  %v2570_v59 = vmul.f32 -1.442695, %v1227_v51  ;;  %v2567_v60 = vmul.f32 -1.442695, %v1121_v42 }
 0xc85   :  { %3227 = vtanh.f32 %v1121_v42 }
 0xc86   :  { %3229 = vpow2.f32 %v2569_v58 }
 0xc87   :  { %3231 = vpow2.f32 %v2570_v59 }
 0xc88   :  { %3233 = vpow2.f32 %v2567_v60 }
 0xc8c   :  { %v3224_v45 = vpop.eup %3223 }
 0xc8d   :  { %1246 = vrot.lane.b32.xlu1 %v3224_v45, %s3599_s7 }
 0xc8e   :  { %v3226_v39 = vpop.eup %3225 }
 0xc8f   :  { %1248 = vrot.lane.b32.xlu0 %v3226_v39, %s3599_s7  ;;  %v3228_v50 = vpop.eup %3227 }
 0xc90   :  { %v3230_v61 = vpop.eup %3229 }
 0xc91   :  { %v3232_v62 = vpop.eup %3231  ;;  %v1234_v55 = vadd.f32 1.0, %v3230_v61 }
 0xc92   :  { %v1235_v63 = vadd.f32 1.0, %v3232_v62  ;;  %v3234_v4 = vpop.eup %3233 }
 0xc93   :  { %1133 = vrot.lane.b32.xlu0 %v3228_v50, %s3599_s7  ;;  %3235 = vrcp.f32 %v1234_v55  ;;  %v1127_v6 = vadd.f32 1.0, %v3234_v4 }
 0xc94   :  { %3237 = vrcp.f32 %v1235_v63 }
 0xc95   :  { %3239 = vrcp.f32 %v1127_v6 }
 0xc9d   :  { %v3236_v7 = vpop.eup %3235 }
 0xc9e   :  { %v3238_v12 = vpop.eup %3237  ;;  %v1242_v3 = vmul.f32 %v3236_v7, %v3991_v10 }
 0xc9f   :  { %v3240_v47 = vpop.eup %3239  ;;  %v1243_v22 = vmul.f32 %v3238_v12, %v3995_v14 }
 0xca0   :  { %v1131_v26 = vmul.f32 %v3240_v47, %v3999_v18 }
 0xcff   :  { %v1247_v8 = vpop.permute.xlu1 %1246 }
 0xd00   :  { %v1252_v11 = vmul.f32 %v3236_v7, %v1247_v8 }
 0xd01   :  { %v1249_v15 = vpop.permute.xlu0 %1248 }
 0xd02   :  { %1256 = vrot.lane.b32.xlu0 %v1252_v11, %s3593_s4  ;;  %v1253_v16 = vmul.f32 %v3238_v12, %v1249_v15 }
 0xd04   :  { %1258 = vrot.lane.b32.xlu1 %v1253_v16, %s3593_s4 }
 0xd05   :  { %v1134_v19 = vpop.permute.xlu0 %1133 }
 0xd06   :  { %v1136_v53 = vmul.f32 %v3240_v47, %v1134_v19 }
 0xd08   :  { %1138 = vrot.lane.b32.xlu1 %v1136_v53, %s3593_s4 }
 0xd74   :  { %v1257_v20 = vpop.permute.xlu0 %1256 }
 0xd75   :  { %v4046_v21 = vadd.f32 %v1257_v20, %v1242_v3 }
 0xd76   :  { %v1259_v25 = vpop.permute.xlu1 %1258 }
 0xd77   :  { %3241 = vtanh.f32 %v4046_v21  ;;  %v4050_v56 = vadd.f32 %v1259_v25, %v1243_v22 }
 0xd79   :  { %3243 = vtanh.f32 %v4050_v56 }
 0xd7a   :  { %v1139_v27 = vpop.permute.xlu1 %1138 }
 0xd7b   :  { %v4054_v28 = vadd.f32 %v1139_v27, %v1131_v26 }
 0xd7d   :  { %3245 = vtanh.f32 %v4054_v28 }
 0xd81   :  { %v3242_v10 = vpop.eup %3241 }
 0xd82   :  { %1268 = vrot.lane.b32.xlu1 %v3242_v10, %s3599_s7 }
 0xd83   :  { %v3244_v29 = vpop.eup %3243 }
 0xd84   :  { %1270 = vrot.lane.b32.xlu0 %v3244_v29, %s3599_s7 }
 0xd87   :  { %v3246_v14 = vpop.eup %3245 }
 0xd88   :  { %1144 = vrot.lane.b32.xlu0 %v3246_v14, %s3599_s7 }
 0xdf4   :  { %v1269_v30 = vpop.permute.xlu1 %1268 }
 0xdf5   :  { %v1274_v33 = vmul.f32 %v3236_v7, %v1269_v30 }
 0xdf6   :  { %v1271_v31 = vpop.permute.xlu0 %1270 }
 0xdf7   :  { %v1275_v32 = vmul.f32 %v3238_v12, %v1271_v31 }
 0xdf9   :  { %v1278_v36 = vrot.slane %v1275_v32, 7 }
 0xdfa   :  { %v1145_v18 = vpop.permute.xlu0 %1144 }
 0xdfb   :  { %v1147_v37 = vmul.f32 %v3240_v47, %v1145_v18  ;;  %v1279_v38 = vsel %vm325_vm3, %v1278_v36, %v1274_v33 }
 0xdfc   :  { %1280 = vrot.lane.b32.xlu1 %v1279_v38, %s3593_s4 }
 0xdfd   :  { %v2170_v23 = vrot.slane %v1147_v37, %v3944_v2  ;;  %1284 = vrot.lane.b32.xlu0 %v1147_v37, %s3599_s7 }
 0xdff   :  { %v2171_v24 = vcombine.high %v2170_v23, %v2170_v23  ;;  %v2178_v40 = vrot.slane %v2170_v23, %v3944_v2 }
 0xe01   :  { %v2185_v41 = vrot.slane %v2171_v24, %v3944_v2  ;;  %v2298_v43 = vrot.slane %v2178_v40, %v3950_v13 }
 0xe03   :  { %v2302_v44 = vrot.slane %v2185_v41, %v3950_v13  ;;  %v4069_v49 = vsel %vm2351_vm7, %v4014_v34, %v2298_v43  ;;  %v1385_v34 = vld [vmem:[#allocation4 + $0x5] sm:$0x1] }
 0xe05   :  { %v4072_v51 = vsel %vm2351_vm7, %v4017_v35, %v2302_v44  ;;  %v1386_v35 = vld [vmem:[#allocation4 + $0xd] sm:$0x1] }
 0xe6e   :  { %v1281_v54 = vpop.permute.xlu1 %1280 }
 0xe6f   :  { %2870 = vmatmul.mubr.msk.f32.vlgmr.msra.gmra.mrb[10].mxu0 %vm186_vm2, %v1281_v54  ;;  %v1285_v42 = vpop.permute.xlu0 %1284 }
 0xe70   :  { %v1287_v45 = vsel %vm186_vm2, %v1281_v54, %v1285_v42  ;;  %3060 = vmatpush3.bf16.msra.mxu0 %v3832_v46  ;;  %2888 = vmatprep.mubr.msk.f32.mxu0 %vm3597_vm0, %v3598_v1 }
 0xe71   :  { %2859 = vmatmul.mubr.msk.f32.vlgmr.msra.gmra.mrb[8].mxu1 %vm335_vm4, %v1287_v45  ;;  %3061 = vmatprep.subr.bf16.mxu0 %v3596_v0 }
 0xe72   :  { %3072 = vmatpush3.bf16.msra.mxu1 %v3802_v5  ;;  %2899 = vmatprep.mubr.msk.f32.mxu1 %vm3597_vm0, %v3598_v1 }
 0xe73   :  { %3073 = vmatprep.subr.bf16.mxu1 %v3596_v0 }
 0xe74   :  { %3063 = vmatpush3.bf16.msra.mxu0 %v3835_v48 }
 0xe75   :  { %3064 = vmatprep.subr.bf16.mxu0 %v3596_v0 }
 0xe76   :  { %3075 = vmatpush3.bf16.msra.mxu1 %v3807_v9 }
 0xe77   :  { %3076 = vmatprep.subr.bf16.mxu1 %v3596_v0 }
 0xe78   :  { %3066 = vmatpush3.bf16.msra.mxu0 %v3840_v52 }
 0xe79   :  { %3067 = vmatprep.subr.bf16.mxu0 %v3596_v0 }
 0xe7c   :  { %3069 = vmatpush3.bf16.msra.mxu0 %v3845_v57 }
 0xe7d   :  { %3088 = vmatprep.subr.bf16.mxu0 %v3596_v0 }
 0xf42   :  { %v1455_v39 = vpop.f32.mrb[10].mxu0 }
 0xf43   :  { %v1460_v50 = vrot.slane %v1455_v39, 1  ;;  %v1463_v58 = vadd.f32 %v1455_v39, %v1385_v34  ;;  %v2871_v59 = vpop.f32.mrb[11].mxu0 }
 0xf44   :  { %v1357_v60 = vpop.f32.mrb[8].mxu1 }
 0xf45   :  { %v1464_v61 = vadd.f32 %v1460_v50, %v1386_v35  ;;  %3247 = vtanh.f32 %v1463_v58  ;;  %v2860_v62 = vpop.f32.mrb[9].mxu1  ;;  %v1358_v55 = vadd.f32 %v3872_v17, %v1357_v60  ;;  %v2574_v7 = vmul.f32 -1.442695, %v1463_v58 }
 0xf47   :  { %3249 = vtanh.f32 %v1464_v61  ;;  %v2575_v8 = vmul.f32 -1.442695, %v1464_v61  ;;  %v2572_v11 = vmul.f32 -1.442695, %v1358_v55 }
 0xf48   :  { %3251 = vtanh.f32 %v1358_v55 }
 0xf49   :  { %3253 = vpow2.f32 %v2574_v7 }
 0xf4a   :  { %3255 = vpow2.f32 %v2575_v8 }
 0xf4b   :  { %3257 = vpow2.f32 %v2572_v11 }
 0xf4f   :  { %v3248_v63 = vpop.eup %3247 }
 0xf50   :  { %1483 = vrot.lane.b32.xlu0 %v3248_v63, %s3599_s7 }
 0xf51   :  { %v3250_v4 = vpop.eup %3249 }
 0xf52   :  { %1485 = vrot.lane.b32.xlu1 %v3250_v4, %s3599_s7  ;;  %v3252_v6 = vpop.eup %3251 }
 0xf53   :  { %v3254_v12 = vpop.eup %3253 }
 0xf54   :  { %v3256_v15 = vpop.eup %3255  ;;  %v1471_v16 = vadd.f32 1.0, %v3254_v12 }
 0xf55   :  { %v1472_v17 = vadd.f32 1.0, %v3256_v15  ;;  %v3258_v47 = vpop.eup %3257 }
 0xf56   :  { %1370 = vrot.lane.b32.xlu1 %v3252_v6, %s3599_s7  ;;  %3259 = vrcp.f32 %v1471_v16  ;;  %v1364_v19 = vadd.f32 1.0, %v3258_v47 }
 0xf57   :  { %3261 = vrcp.f32 %v1472_v17 }
 0xf58   :  { %3263 = vrcp.f32 %v1364_v19 }
 0xf60   :  { %v3260_v53 = vpop.eup %3259 }
 0xf61   :  { %v3262_v22 = vpop.eup %3261  ;;  %v1479_v14 = vmul.f32 %v3260_v53, %v4046_v21 }
 0xf62   :  { %v3264_v27 = vpop.eup %3263  ;;  %v1480_v32 = vmul.f32 %v3262_v22, %v4050_v56 }
 0xf63   :  { %v1368_v18 = vmul.f32 %v3264_v27, %v4054_v28 }
 0xfc2   :  { %v1484_v3 = vpop.permute.xlu0 %1483 }
 0xfc3   :  { %v1489_v20 = vmul.f32 %v3260_v53, %v1484_v3 }
 0xfc4   :  { %v1486_v25 = vpop.permute.xlu1 %1485 }
 0xfc5   :  { %1493 = vrot.lane.b32.xlu1 %v1489_v20, %s3593_s4  ;;  %v1490_v26 = vmul.f32 %v3262_v22, %v1486_v25 }
 0xfc7   :  { %1495 = vrot.lane.b32.xlu0 %v1490_v26, %s3593_s4 }
 0xfc8   :  { %v1371_v10 = vpop.permute.xlu1 %1370 }
 0xfc9   :  { %v1373_v29 = vmul.f32 %v3264_v27, %v1371_v10 }
 0xfcb   :  { %1375 = vrot.lane.b32.xlu0 %v1373_v29, %s3593_s4 }
0x1037   :  { %v1494_v30 = vpop.permute.xlu1 %1493 }
0x1038   :  { %v4101_v31 = vadd.f32 %v1494_v30, %v1479_v14 }
0x1039   :  { %v1496_v33 = vpop.permute.xlu0 %1495 }
0x103a   :  { %3265 = vtanh.f32 %v4101_v31  ;;  %v4105_v36 = vadd.f32 %v1496_v33, %v1480_v32 }
0x103c   :  { %3267 = vtanh.f32 %v4105_v36 }
0x103d   :  { %v1376_v37 = vpop.permute.xlu0 %1375 }
0x103e   :  { %v4109_v38 = vadd.f32 %v1376_v37, %v1368_v18 }
0x1040   :  { %3269 = vtanh.f32 %v4109_v38 }
0x1044   :  { %v3266_v21 = vpop.eup %3265 }
0x1045   :  { %1505 = vrot.lane.b32.xlu0 %v3266_v21, %s3599_s7 }
0x1046   :  { %v3268_v23 = vpop.eup %3267 }
0x1047   :  { %1507 = vrot.lane.b32.xlu1 %v3268_v23, %s3599_s7 }
0x104a   :  { %v3270_v56 = vpop.eup %3269 }
0x104b   :  { %1381 = vrot.lane.b32.xlu1 %v3270_v56, %s3599_s7 }
0x10b7   :  { %v1506_v24 = vpop.permute.xlu0 %1505 }
0x10b8   :  { %v1511_v43 = vmul.f32 %v3260_v53, %v1506_v24 }
0x10b9   :  { %v1508_v40 = vpop.permute.xlu1 %1507 }
0x10ba   :  { %v1512_v41 = vmul.f32 %v3262_v22, %v1508_v40 }
0x10bc   :  { %v1515_v44 = vrot.slane %v1512_v41, 7 }
0x10bd   :  { %v1382_v28 = vpop.permute.xlu1 %1381 }
0x10be   :  { %v1384_v54 = vmul.f32 %v3264_v27, %v1382_v28  ;;  %v1516_v42 = vsel %vm325_vm3, %v1515_v44, %v1511_v43 }
0x10bf   :  { %1517 = vrot.lane.b32.xlu0 %v1516_v42, %s3593_s4 }
0x10c0   :  { %v2192_v45 = vrot.slane %v1384_v54, %v3944_v2  ;;  %1521 = vrot.lane.b32.xlu1 %v1384_v54, %s3599_s7 }
0x10c2   :  { %v2193_v34 = vcombine.high %v2192_v45, %v2192_v45  ;;  %v2200_v35 = vrot.slane %v2192_v45, %v3944_v2 }
0x10c4   :  { %v2207_v39 = vrot.slane %v2193_v34, %v3944_v2  ;;  %v2308_v50 = vrot.slane %v2200_v35, %v3950_v13 }
0x10c6   :  { %v2312_v58 = vrot.slane %v2207_v39, %v3950_v13  ;;  %v4124_v59 = vsel %vm2354_vm8, %v4069_v49, %v2308_v50  ;;  %v1623_v49 = vld [vmem:[#allocation4 + $0xe] sm:$0x1] }
0x10c8   :  { %v4127_v60 = vsel %vm2354_vm8, %v4072_v51, %v2312_v58 }
0x1131   :  { %v1518_v61 = vpop.permute.xlu0 %1517 }
0x1132   :  { %2900 = vmatmul.mubr.msk.f32.vlgmr.msra.gmra.mrb[10].mxu1 %vm186_vm2, %v1518_v61  ;;  %v1522_v62 = vpop.permute.xlu1 %1521 }
0x1133   :  { %v1524_v55 = vsel %vm186_vm2, %v1518_v61, %v1522_v62  ;;  %3078 = vmatpush3.bf16.msra.mxu1 %v3832_v46  ;;  %2918 = vmatprep.mubr.msk.f32.mxu1 %vm3597_vm0, %v3598_v1 }
0x1134   :  { %2889 = vmatmul.mubr.msk.f32.vlgmr.msra.gmra.mrb[12].mxu0 %vm335_vm4, %v1524_v55  ;;  %3079 = vmatprep.subr.bf16.mxu1 %v3596_v0 }
0x1135   :  { %3090 = vmatpush3.bf16.msra.mxu0 %v3802_v5  ;;  %2929 = vmatprep.mubr.msk.f32.mxu0 %vm3597_vm0, %v3598_v1  ;;  %v1622_v5 = vld [vmem:[#allocation4 + $0x6] sm:$0x1] }
0x1136   :  { %3091 = vmatprep.subr.bf16.mxu0 %v3596_v0 }
0x1137   :  { %3081 = vmatpush3.bf16.msra.mxu1 %v3835_v48 }
0x1138   :  { %3082 = vmatprep.subr.bf16.mxu1 %v3596_v0 }
0x1139   :  { %3093 = vmatpush3.bf16.msra.mxu0 %v3807_v9  ;;  %v4147_v9 = vld [vmem:[#allocation10] ss:$0 sm:$0xff] }
0x113a   :  { %3094 = vmatprep.subr.bf16.mxu0 %v3596_v0 }
0x113b   :  { %3084 = vmatpush3.bf16.msra.mxu1 %v3840_v52 }
0x113c   :  { %3085 = vmatprep.subr.bf16.mxu1 %v3596_v0 }
0x113f   :  { %3087 = vmatpush3.bf16.msra.mxu1 %v3845_v57 }
0x1205   :  { %v1692_v51 = vpop.f32.mrb[10].mxu1 }
0x1206   :  { %v1697_v63 = vrot.slane %v1692_v51, 1  ;;  %v1700_v4 = vadd.f32 %v1692_v51, %v1622_v5  ;;  %v2901_v6 = vpop.f32.mrb[11].mxu1 }
0x1207   :  { %v1594_v7 = vpop.f32.mrb[12].mxu0 }
0x1208   :  { %v1701_v8 = vadd.f32 %v1697_v63, %v1623_v49  ;;  %3271 = vtanh.f32 %v1700_v4  ;;  %v2890_v11 = vpop.f32.mrb[13].mxu0  ;;  %v1595_v12 = vadd.f32 %v4147_v9, %v1594_v7  ;;  %v2579_v47 = vmul.f32 -1.442695, %v1700_v4 }
0x120a   :  { %3273 = vtanh.f32 %v1701_v8  ;;  %v2580_v19 = vmul.f32 -1.442695, %v1701_v8  ;;  %v2577_v53 = vmul.f32 -1.442695, %v1595_v12 }
0x120b   :  { %3275 = vtanh.f32 %v1595_v12 }
0x120c   :  { %3277 = vpow2.f32 %v2579_v47 }
0x120d   :  { %3279 = vpow2.f32 %v2580_v19 }
0x120e   :  { %3281 = vpow2.f32 %v2577_v53 }
0x1212   :  { %v3272_v15 = vpop.eup %3271 }
0x1213   :  { %1720 = vrot.lane.b32.xlu1 %v3272_v15, %s3599_s7 }
0x1214   :  { %v3274_v16 = vpop.eup %3273 }
0x1215   :  { %1722 = vrot.lane.b32.xlu0 %v3274_v16, %s3599_s7  ;;  %v3276_v17 = vpop.eup %3275 }
0x1216   :  { %v3278_v3 = vpop.eup %3277 }
0x1217   :  { %v3280_v20 = vpop.eup %3279  ;;  %v1708_v22 = vadd.f32 1.0, %v3278_v3 }
0x1218   :  { %v1709_v25 = vadd.f32 1.0, %v3280_v20  ;;  %v3282_v26 = vpop.eup %3281 }
0x1219   :  { %1607 = vrot.lane.b32.xlu0 %v3276_v17, %s3599_s7  ;;  %3283 = vrcp.f32 %v1708_v22  ;;  %v1601_v27 = vadd.f32 1.0, %v3282_v26 }
0x121a   :  { %3285 = vrcp.f32 %v1709_v25 }
0x121b   :  { %3287 = vrcp.f32 %v1601_v27 }
0x1223   :  { %v3284_v10 = vpop.eup %3283 }
0x1224   :  { %v3286_v30 = vpop.eup %3285  ;;  %v1716_v23 = vmul.f32 %v3284_v10, %v4101_v31 }
0x1225   :  { %v3288_v18 = vpop.eup %3287  ;;  %v1717_v40 = vmul.f32 %v3286_v30, %v4105_v36 }
0x1226   :  { %v1605_v44 = vmul.f32 %v3288_v18, %v4109_v38 }
0x1285   :  { %v1721_v29 = vpop.permute.xlu1 %1720 }
0x1286   :  { %v1726_v14 = vmul.f32 %v3284_v10, %v1721_v29 }
0x1287   :  { %v1723_v32 = vpop.permute.xlu0 %1722 }
0x1288   :  { %1730 = vrot.lane.b32.xlu0 %v1726_v14, %s3593_s4  ;;  %v1727_v33 = vmul.f32 %v3286_v30, %v1723_v32 }
0x128a   :  { %1732 = vrot.lane.b32.xlu1 %v1727_v33, %s3593_s4 }
0x128b   :  { %v1608_v37 = vpop.permute.xlu0 %1607 }
0x128c   :  { %v1610_v21 = vmul.f32 %v3288_v18, %v1608_v37 }
0x128e   :  { %1612 = vrot.lane.b32.xlu1 %v1610_v21, %s3593_s4 }
0x12fa   :  { %v1731_v56 = vpop.permute.xlu0 %1730 }
0x12fb   :  { %v4157_v24 = vadd.f32 %v1731_v56, %v1716_v23 }
0x12fc   :  { %v1733_v41 = vpop.permute.xlu1 %1732 }
0x12fd   :  { %3289 = vtanh.f32 %v4157_v24  ;;  %v4161_v43 = vadd.f32 %v1733_v41, %v1717_v40 }
0x12ff   :  { %3291 = vtanh.f32 %v4161_v43 }
0x1300   :  { %v1613_v28 = vpop.permute.xlu1 %1612 }
0x1301   :  { %v4165_v54 = vadd.f32 %v1613_v28, %v1605_v44 }
0x1303   :  { %3293 = vtanh.f32 %v4165_v54 }
0x1307   :  { %v3290_v31 = vpop.eup %3289 }
0x1308   :  { %1742 = vrot.lane.b32.xlu1 %v3290_v31, %s3599_s7 }
0x1309   :  { %v3292_v42 = vpop.eup %3291 }
0x130a   :  { %1744 = vrot.lane.b32.xlu0 %v3292_v42, %s3599_s7 }
0x130d   :  { %v3294_v36 = vpop.eup %3293 }
0x130e   :  { %1618 = vrot.lane.b32.xlu0 %v3294_v36, %s3599_s7 }
0x137a   :  { %v1743_v45 = vpop.permute.xlu1 %1742 }
0x137b   :  { %v1748_v39 = vmul.f32 %v3284_v10, %v1743_v45 }
0x137c   :  { %v1745_v34 = vpop.permute.xlu0 %1744 }
0x137d   :  { %v1749_v35 = vmul.f32 %v3286_v30, %v1745_v34 }
0x137f   :  { %v1752_v50 = vrot.slane %v1749_v35, 7 }
0x1380   :  { %v1619_v38 = vpop.permute.xlu0 %1618 }
0x1381   :  { %v1621_v58 = vmul.f32 %v3288_v18, %v1619_v38  ;;  %v1753_v61 = vsel %vm325_vm3, %v1752_v50, %v1748_v39 }
0x1382   :  { %1754 = vrot.lane.b32.xlu1 %v1753_v61, %s3593_s4 }
0x1383   :  { %v2214_v62 = vrot.slane %v1621_v58, %v3944_v2  ;;  %1758 = vrot.lane.b32.xlu0 %v1621_v58, %s3599_s7 }
0x1385   :  { %v2215_v55 = vcombine.high %v2214_v62, %v2214_v62  ;;  %v2222_v5 = vrot.slane %v2214_v62, %v3944_v2 }
0x1387   :  { %v2229_v49 = vrot.slane %v2215_v55, %v3944_v2  ;;  %v2318_v51 = vrot.slane %v2222_v5, %v3950_v13 }
0x1389   :  { %v2322_v63 = vrot.slane %v2229_v49, %v3950_v13  ;;  %v4180_v4 = vsel %vm2357_vm9, %v4124_v59, %v2318_v51  ;;  %v1859_v59 = vld [vmem:[#allocation4 + $0x7] sm:$0x1] }
0x138b   :  { %v4183_v6 = vsel %vm2357_vm9, %v4127_v60, %v2322_v63  ;;  %v1860_v60 = vld [vmem:[#allocation4 + $0xf] sm:$0x1] }
0x13f4   :  { %v1755_v7 = vpop.permute.xlu1 %1754 }
0x13f5   :  { %2930 = vmatmul.mubr.msk.f32.vlgmr.msra.gmra.mrb[14].mxu0 %vm186_vm2, %v1755_v7  ;;  %v1759_v8 = vpop.permute.xlu0 %1758 }
0x13f6   :  { %v1761_v11 = vsel %vm186_vm2, %v1755_v7, %v1759_v8  ;;  %3096 = vmatpush3.bf16.msra.mxu0 %v3832_v46  ;;  %2948 = vmatprep.mubr.msk.f32.mxu0 %vm3597_vm0, %v3598_v1 }
0x13f7   :  { %2919 = vmatmul.mubr.msk.f32.vlgmr.msra.gmra.mrb[12].mxu1 %vm335_vm4, %v1761_v11  ;;  %3097 = vmatprep.subr.bf16.mxu0 %v3596_v0 }
0x13fa   :  { %3099 = vmatpush3.bf16.msra.mxu0 %v3835_v48 }
0x13fb   :  { %3100 = vmatprep.subr.bf16.mxu0 %v3596_v0 }
0x13fe   :  { %3102 = vmatpush3.bf16.msra.mxu0 %v3840_v52 }
0x13ff   :  { %3103 = vmatprep.subr.bf16.mxu0 %v3596_v0 }
0x1402   :  { %3105 = vmatpush3.bf16.msra.mxu0 %v3845_v57 }
0x14c8   :  { %v1929_v46 = vpop.f32.mrb[14].mxu0 }
0x14c9   :  { %v1934_v12 = vrot.slane %v1929_v46, 1  ;;  %v1937_v15 = vadd.f32 %v1929_v46, %v1859_v59  ;;  %v2931_v1 = vpop.f32.mrb[15].mxu0 }
0x14ca   :  { %v1831_v16 = vpop.f32.mrb[12].mxu1 }
0x14cb   :  { %v1938_v17 = vadd.f32 %v1934_v12, %v1860_v60  ;;  %3295 = vtanh.f32 %v1937_v15  ;;  %v2920_v47 = vpop.f32.mrb[13].mxu1  ;;  %v1832_v48 = vadd.f32 %v4147_v9, %v1831_v16  ;;  %v2584_v57 = vmul.f32 -1.442695, %v1937_v15 }
0x14cd   :  { %3297 = vtanh.f32 %v1938_v17  ;;  %v2585_v53 = vmul.f32 -1.442695, %v1938_v17  ;;  %v2582_v3 = vmul.f32 -1.442695, %v1832_v48 }
0x14ce   :  { %3299 = vtanh.f32 %v1832_v48 }
0x14cf   :  { %3301 = vpow2.f32 %v2584_v57 }
0x14d0   :  { %3303 = vpow2.f32 %v2585_v53 }
0x14d1   :  { %3305 = vpow2.f32 %v2582_v3 }
0x14d5   :  { %v3296_v19 = vpop.eup %3295 }
0x14d6   :  { %1957 = vrot.lane.b32.xlu0 %v3296_v19, %s3599_s7 }
0x14d7   :  { %v3298_v0 = vpop.eup %3297 }
0x14d8   :  { %1959 = vrot.lane.b32.xlu1 %v3298_v0, %s3599_s7  ;;  %v3300_v52 = vpop.eup %3299 }
0x14d9   :  { %v3302_v20 = vpop.eup %3301 }
0x14da   :  { %v3304_v22 = vpop.eup %3303  ;;  %v1945_v25 = vadd.f32 1.0, %v3302_v20  ;;  %v167_v20 = vld [vmem:[#allocation12] sm:$0xff] }
0x14db   :  { %v1946_v26 = vadd.f32 1.0, %v3304_v22  ;;  %v3306_v27 = vpop.eup %3305  ;;  %v168_v22 = vld [vmem:[#allocation12 + $0x8] sm:$0xff] }
0x14dc   :  { %1844 = vrot.lane.b32.xlu1 %v3300_v52, %s3599_s7  ;;  %3307 = vrcp.f32 %v1945_v25  ;;  %v1838_v10 = vadd.f32 1.0, %v3306_v27  ;;  %v169_v25 = vld [vmem:[#allocation12 + $0x10] sm:$0xff]  ;;  %v170_v27 = vld [vmem:[#allocation12 + $0x18] sm:$0xff] }
0x14dd   :  { %3309 = vrcp.f32 %v1946_v26  ;;  %v3106_v26 = vpack.c.bf16 %v168_v22, %v167_v20 }
0x14de   :  { %3311 = vrcp.f32 %v1838_v10  ;;  %v3110_v10 = vpack.c.bf16 %v170_v27, %v169_v25 }
0x14df   :  { %3107 = vmatprep.subr.bf16.mxu1 %v3106_v26 }
0x14e0   :  { %3109 = vmatpush3.bf16.msra.mxu1 %v3106_v26 }
0x14e1   :  { %3111 = vmatprep.subr.bf16.mxu1 %v3110_v10 }
0x14e4   :  { %3113 = vmatpush3.bf16.msra.mxu1 %v3110_v10 }
0x14e6   :  { %v3308_v29 = vpop.eup %3307 }
0x14e7   :  { %v3310_v32 = vpop.eup %3309  ;;  %v1953_v56 = vmul.f32 %v3308_v29, %v4157_v24 }
0x14e8   :  { %v3312_v37 = vpop.eup %3311  ;;  %v1954_v44 = vmul.f32 %v3310_v32, %v4161_v43 }
0x14e9   :  { %v1842_v36 = vmul.f32 %v3312_v37, %v4165_v54 }
0x1548   :  { %v1958_v14 = vpop.permute.xlu0 %1957 }
0x1549   :  { %v1963_v30 = vmul.f32 %v3308_v29, %v1958_v14 }
0x154a   :  { %v1960_v33 = vpop.permute.xlu1 %1959 }
0x154b   :  { %1967 = vrot.lane.b32.xlu1 %v1963_v30, %s3593_s4  ;;  %v1964_v18 = vmul.f32 %v3310_v32, %v1960_v33 }
0x154d   :  { %1969 = vrot.lane.b32.xlu0 %v1964_v18, %s3593_s4 }
0x154e   :  { %v1845_v21 = vpop.permute.xlu1 %1844 }
0x154f   :  { %v1847_v23 = vmul.f32 %v3312_v37, %v1845_v21 }
0x1551   :  { %1849 = vrot.lane.b32.xlu0 %v1847_v23, %s3593_s4 }
0x15bd   :  { %v1968_v40 = vpop.permute.xlu1 %1967 }
0x15be   :  { %v1973_v41 = vadd.f32 %v1968_v40, %v1953_v56 }
0x15bf   :  { %v1970_v28 = vpop.permute.xlu0 %1969 }
0x15c0   :  { %3313 = vtanh.f32 %v1973_v41  ;;  %v1974_v31 = vadd.f32 %v1970_v28, %v1954_v44 }
0x15c2   :  { %3315 = vtanh.f32 %v1974_v31  ;;  %v2476_v42 = vrot.slane %v1974_v31, 7 }
0x15c3   :  { %v1850_v45 = vpop.permute.xlu0 %1849 }
0x15c4   :  { %v1852_v34 = vadd.f32 %v1850_v45, %v1842_v36  ;;  %v4208_v35 = vsel %vm325_vm3, %v2476_v42, %v1973_v41 }
0x15c6   :  { %3317 = vtanh.f32 %v1852_v34 }
0x15ca   :  { %v3314_v39 = vpop.eup %3313 }
0x15cb   :  { %1979 = vrot.lane.b32.xlu0 %v3314_v39, %s3599_s7 }
0x15cc   :  { %v3316_v24 = vpop.eup %3315 }
0x15cd   :  { %1981 = vrot.lane.b32.xlu1 %v3316_v24, %s3599_s7 }
0x15d0   :  { %v3318_v43 = vpop.eup %3317 }
0x15d1   :  { %1855 = vrot.lane.b32.xlu1 %v3318_v43, %s3599_s7 }
0x163d   :  { %v1980_v50 = vpop.permute.xlu0 %1979 }
0x163e   :  { %v1985_v61 = vmul.f32 %v3308_v29, %v1980_v50 }
0x163f   :  { %v1982_v38 = vpop.permute.xlu1 %1981 }
0x1640   :  { %v1986_v58 = vmul.f32 %v3310_v32, %v1982_v38 }
0x1642   :  { %v1989_v54 = vrot.slane %v1986_v58, 7 }
0x1643   :  { %v1856_v62 = vpop.permute.xlu1 %1855 }
0x1644   :  { %v1858_v55 = vmul.f32 %v3312_v37, %v1856_v62  ;;  %v1990_v5 = vsel %vm325_vm3, %v1989_v54, %v1985_v61 }
0x1645   :  { %1991 = vrot.lane.b32.xlu0 %v1990_v5, %s3593_s4 }
0x1646   :  { %v2236_v49 = vrot.slane %v1858_v55, %v3944_v2  ;;  %1995 = vrot.lane.b32.xlu1 %v1858_v55, %s3599_s7 }
0x1648   :  { %v2237_v51 = vcombine.high %v2236_v49, %v2236_v49  ;;  %v2244_v63 = vrot.slane %v2236_v49, %v3944_v2 }
0x164a   :  { %v2251_v7 = vrot.slane %v2237_v51, %v3944_v2  ;;  %v2328_v8 = vrot.slane %v2244_v63, %v3950_v13 }
0x164c   :  { %v2361_v11 = vsel %vm2360_vm10, %v4180_v4, %v2328_v8  ;;  %v2332_v59 = vrot.slane %v2251_v7, %v3950_v13 }
0x164e   :  { %v2362_v60 = vsel %vm2360_vm10, %v4183_v6, %v2332_v59 }
0x16b7   :  { %v1992_v46 = vpop.permute.xlu0 %1991 }
0x16b8   :  { %2472 = vst.msk [vmem:[#allocation2] sm:$0x3] %vm147_vm1, %v1992_v46  ;;  %2491 = vst.msk [vmem:[#allocation19] sm:$0x3] %vm147_vm1, %v1992_v46  ;;  %v1996_v12 = vpop.permute.xlu1 %1995 }
0x16b9   :  { %v1998_v15 = vsel %vm186_vm2, %v1992_v46, %v1996_v12 }
0x16ba   :  { %2949 = vmatmul.mubr.msk.f32.vlgmr.msra.gmra.mrb[16].mxu0 %vm335_vm4, %v1998_v15 }
0x178d   :  { %v2068_v1 = vpop.f32.mrb[16].mxu0 }
0x178e   :  { %v2069_v16 = vadd.f32 %v4147_v9, %v2068_v1  ;;  %v2950_v17 = vpop.f32.mrb[17].mxu0 }
0x1790   :  { %3319 = vtanh.f32 %v2069_v16  ;;  %v2587_v47 = vmul.f32 -1.442695, %v2069_v16 }
0x1792   :  { %3321 = vpow2.f32 %v2587_v47 }
0x179a   :  { %v3320_v4 = vpop.eup %3319 }
0x179b   :  { %2081 = vrot.lane.b32.xlu0 %v3320_v4, %s3599_s7 }
0x179c   :  { %v3322_v6 = vpop.eup %3321 }
0x179d   :  { %v2075_v48 = vadd.f32 1.0, %v3322_v6 }
0x179f   :  { %3323 = vrcp.f32 %v2075_v48 }
0x17a9   :  { %v3324_v19 = vpop.eup %3323 }
0x17aa   :  { %v2079_v57 = vmul.f32 %v3324_v19, %v1852_v34 }
0x180d   :  { %v2082_v0 = vpop.permute.xlu0 %2081 }
0x180e   :  { %v2084_v52 = vmul.f32 %v3324_v19, %v2082_v0 }
0x1810   :  { %2086 = vrot.lane.b32.xlu1 %v2084_v52, %s3593_s4 }
0x1882   :  { %v2087_v53 = vpop.permute.xlu1 %2086 }
0x1883   :  { %v2089_v3 = vadd.f32 %v2087_v53, %v2079_v57 }
0x1885   :  { %3325 = vtanh.f32 %v2089_v3 }
0x188f   :  { %v3326_v9 = vpop.eup %3325 }
0x1890   :  { %2092 = vrot.lane.b32.xlu0 %v3326_v9, %s3599_s7 }
0x1902   :  { %v2093_v29 = vpop.permute.xlu0 %2092 }
0x1903   :  { %v2095_v14 = vmul.f32 %v3324_v19, %v2093_v29 }
0x1905   :  { %v2259_v30 = vrot.slane %v2095_v14, %v3944_v2 }
0x1907   :  { %v2260_v32 = vcombine.high %v2259_v30, %v2259_v30  ;;  %v2267_v33 = vrot.slane %v2259_v30, %v3944_v2 }
0x1909   :  { %v2274_v18 = vrot.slane %v2260_v32, %v3944_v2  ;;  %v2338_v37 = vrot.slane %v2267_v33, %v3950_v13 }
0x190b   :  { %v2364_v21 = vsel %vm2363_vm11, %v2361_v11, %v2338_v37  ;;  %v2342_v23 = vrot.slane %v2274_v18, %v3950_v13 }
0x190c   :  { %2368 = vrot.lane.b32.xlu1 %v2364_v21, %s3593_s4 }
0x190d   :  { %v2365_v56 = vsel %vm2363_vm11, %v2362_v60, %v2342_v23 }
0x190e   :  { %2370 = vrot.lane.b32.xlu0 %v2365_v56, %s3593_s4 }
0x1910   :  { %2468 = vrot.lane.b32.xlu1 %v2095_v14, %s3593_s4 }
0x1912   :  { %2480 = vrot.lane.b32.xlu0 %v4208_v35, %s3601_s29 }
0x1914   :  { %2482 = vrot.lane.b32.xlu1 %v2089_v3, %s3601_s29 }
0x197e   :  { %v2369_v40 = vpop.permute.xlu1 %2368 }
0x197f   :  { %2959 = vmatprep.mubr.msk.f32.mxu1 %vm186_vm2, %v2369_v40 }
0x1980   :  { %v2371_v2 = vpop.permute.xlu0 %2370 }
0x1981   :  { %2960 = vmatmul.mubr.msk.f32.vlgmr.msra.gmra.mrb[14].mxu1 %vm186_vm2, %v2371_v2 }
0x1982   :  { %v2469_v41 = vpop.permute.xlu1 %2468 }
0x1983   :  { %2473 = vst.msk [vmem:[#allocation2 + $0x2] sm:$0x3] %vm147_vm1, %v2469_v41  ;;  %2492 = vst.msk [vmem:[#allocation19 + $0x2] sm:$0x3] %vm147_vm1, %v2469_v41 }
0x1984   :  { %v2481_v13 = vpop.permute.xlu0 %2480 }
0x1985   :  { %2486 = vst.msk [vmem:[#allocation3] sm:$0x3] %vm147_vm1, %v2481_v13  ;;  %2493 = vst.msk [vmem:[#allocation21] sm:$0x3] %vm147_vm1, %v2481_v13 }
0x1986   :  { %v2483_v44 = vpop.permute.xlu1 %2482 }
0x1987   :  { %2487 = vst.msk [vmem:[#allocation3 + $0x2] sm:$0x3] %vm147_vm1, %v2483_v44  ;;  %2494 = vst.msk [vmem:[#allocation21 + $0x2] sm:$0x3] %vm147_vm1, %v2483_v44 }
0x1988   :  { %3515 = shalt.err (!%p3512_p12)
}
0x1989   :  { %s3516_s15 = scalar_lea.hbm %s4302_s9, 64 }
0x198a   :  { %p3517_p13 = scmp.ne.s32.totalorder %s4302_s9, %s3516_s15  ;;  %p3520_p0 = scmp.lt.u32.totalorder %s3516_s15, %s4302_s9 }
0x198c   :  { %p3522_p1 = pnand %p3520_p0, %p3517_p13 }
0x198e   :  { %3525 = shalt.err (!%p3522_p1)
}
0x198f   :  { %2518 = dma.vmem_to_hbm [thread:$0]  %s2513_s12, 64, %s4302_s9, [#allocation20], %s3593_s4, %s3593_s4, %s3594_s30  }
0x1990   :  { %s3603_s19 = smov [#allocation21]  }
0x1991   :  { %s2524_s20 = sshll.u32 %s3603_s19, 4  ;;  %s2525_s20 = int_to_ptr.vmem [resolvable:$true] %s2524_s20 }
0x1992   :  { %s3526_s22 = scalar_lea.vmem %s2525_s20, 64  ;;  %p3531_p3 = scmp.lt.s32.totalorder %s2525_s20, %s2525_s20 }
0x1993   :  { %p3527_p2 = scmp.ne.s32.totalorder %s2525_s20, %s3526_s22  ;;  %p3532_p4 = scmp.lt.s32.totalorder %s3526_s22, %s3526_s22 }
0x1995   :  { %p3533_p5 = por %p3532_p4, %p3531_p3 }
0x1997   :  { %p3534_p6 = pnand %p3533_p5, %p3527_p2 }
0x1999   :  { %3537 = shalt.err (!%p3534_p6)
}
0x199a   :  { %s3538_s21 = scalar_lea.hbm %s4303_s10, 64 }
0x199b   :  { %p3539_p7 = scmp.ne.s32.totalorder %s4303_s10, %s3538_s21  ;;  %p3542_p8 = scmp.lt.u32.totalorder %s3538_s21, %s4303_s10 }
0x199d   :  { %p3544_p9 = pnand %p3542_p8, %p3539_p7 }
0x199f   :  { %3547 = shalt.err (!%p3544_p9)
}
0x19a0   :  { %2530 = dma.vmem_to_hbm [thread:$0]  %s2525_s20, 64, %s4303_s10, [#allocation20], %s3593_s4, %s3593_s4, %s3594_s30   ;;  %v2590_v28 = vld [vmem:[#allocation13] ss:$0 sm:$0xff]  ;;  %vm2460_vm12 = vcmask 130048  }
0x19a1   :  { %s3604_s29 = smov [#allocation18]  }
0x19a2   :  { %s2500_s11 = sshll.u32 %s3604_s29, 4  ;;  %s2501_s11 = int_to_ptr.vmem [resolvable:$true] %s2500_s11 }
0x19a3   :  { %s3548_s12 = scalar_lea.vmem %s2501_s11, 256  ;;  %p3553_p11 = scmp.lt.s32.totalorder %s2501_s11, %s2501_s11 }
0x19a4   :  { %p3549_p10 = scmp.ne.s32.totalorder %s2501_s11, %s3548_s12  ;;  %p3554_p12 = scmp.lt.s32.totalorder %s3548_s12, %s3548_s12 }
0x19a6   :  { %p3555_p13 = por %p3554_p12, %p3553_p11 }
0x19a8   :  { %p3556_p0 = pnand %p3555_p13, %p3549_p10 }
0x1a54   :  { %v2961_v31 = vpop.f32.mrb[14].mxu1 }
0x1a55   :  { %v2459_v42 = vadd.f32 %v2961_v31, %v2590_v28  ;;  %v2442_v36 = vpop.f32.mrb[15].mxu1 }
0x1a56   :  { %v2458_v45 = vadd.f32 %v2590_v28, %v2442_v36 }
0x1a57   :  { %2462 = vst.msk [vmem:[#allocation18 + $0x8] sm:$0xff] %vm2460_vm12, %v2459_v42 }
0x1a58   :  { %2461 = vst.msk [vmem:[#allocation18] sm:$0xff] %vm2460_vm12, %v2458_v45 }
0x1a59   :  { %3559 = shalt.err (!%p3556_p0)
}
0x1a5a   :  { %s3560_s4 = scalar_lea.hbm %s4301_s8, 256 }
0x1a5b   :  { %p3561_p1 = scmp.ne.s32.totalorder %s4301_s8, %s3560_s4  ;;  %p3564_p2 = scmp.lt.u32.totalorder %s3560_s4, %s4301_s8 }
0x1a5d   :  { %p3566_p3 = pnand %p3564_p2, %p3561_p1 }
0x1a5f   :  { %3569 = shalt.err (!%p3566_p3)
}
0x1a60   :  { %2506 = dma.vmem_to_hbm [thread:$0]  %s2501_s11, 256, %s4301_s8, [#allocation6], %s3586_s25, %s3586_s25, %s3587_s26  }
0x1a61   :  { %3580 = dma.done.wait [#allocation6], 256  }
0x1a62   :  { %3581 = vsyncadd [#allocation6], 4294967040 }
0x1a63   :  { %3582 = dma.done.wait [#allocation20], 128  }
0x1a64   :  { %3583 = vsyncadd [#allocation20], 4294967168 }
0x1a65   :  { %2540 = vsyncpa [#allocation5], 1 }
0x1a66   :  { %2541 = vsyncpa [#allocation8], 1 }
0x1a67   :  { %2542 = vsyncpa [#allocation11], 1 }
0x1a68   :  { %2543 = vsyncpa [#allocation14], 1 }
0x1a69   :  { %2544 = vsyncpa [#allocation17], 1 }
0x1a6a   :  { %2545 = vsyncpa [#allocation6], 1 }
0x1a6b   :  { %2546 = vsyncpa [#allocation20], 1 }

</bundles_post_ra>
